<compile_context>
chip_gen: v6e
topology: v6e:2x2x1
jax: 0.10.0
libtpu: 0.0.40
codegen_flags: <defaults>
</compile_context>

<pallas_src>
import functools

import jax
import jax.numpy as jnp
from jax.experimental import pallas as pl
from jax.experimental.pallas import tpu as pltpu


# ----------------------------- Pallas kernel ------------------------------ #
def _conv_bn_relu_kernel(x_ref, w_ref, b_ref, o_ref, *,
                         kh, kw, oh, ow, stride, dilation):
    # x_ref: (1, Hp, Wp, Cin)  bf16 padded NHWC image for this grid step.
    # w_ref: (KH*KW, Cin, Cout_p) bf16, BN scale already folded in (resident).
    # b_ref: (1, Cout_p) f32 folded BN bias (resident).
    # o_ref: (1, OH*OW, Cout_p) f32 output (channels-last, lane-dense).
    cin = w_ref.shape[1]
    cout = o_ref.shape[-1]
    m = oh * ow

    acc = jnp.zeros((m, cout), jnp.float32)
    for i in range(kh):            # static unroll: KH*KW is small
        for j in range(kw):
            hi = i * dilation      # static Python ints -> aligned/static slices
            wj = j * dilation
            if stride == 1:
                win = x_ref[0, pl.ds(hi, oh), pl.ds(wj, ow), :]
            else:
                # Strided window read (not exercised by the stride=1 test below).
                win = x_ref[0, pl.ds(hi, oh, stride), pl.ds(wj, ow, stride), :]
            patch = win.reshape(m, cin)                      # (OH*OW, Cin) bf16
            acc = acc + jnp.dot(patch, w_ref[i * kw + j],
                                preferred_element_type=jnp.float32)

    y = acc + b_ref[...]                                     # folded BN bias (f32)
    o_ref[0] = jnp.maximum(y, 0.0).astype(o_ref.dtype)       # ReLU


# ------------------------------- wrapper ----------------------------------- #
@functools.partial(jax.jit,
                   static_argnames=("stride", "padding", "dilation",
                                    "compute_dtype"))
def basic_conv2d(x, conv_w, gamma, beta, running_mean, running_var,
                 *, stride=1, padding=0, dilation=1, eps=1e-5,
                 compute_dtype=jnp.bfloat16):
    """BasicConv2d forward.  x: (N, Cin, H, W) NCHW, conv_w: (Cout, Cin, KH, KW)."""
    N, Cin, H, W = x.shape
    Cout, _, KH, KW = conv_w.shape
    OH = (H + 2 * padding - dilation * (KH - 1) - 1) // stride + 1
    OW = (W + 2 * padding - dilation * (KW - 1) - 1) // stride + 1

    # BatchNorm2d (eval mode) folded into the conv weights + a bias.
    # TODO(synk): training-mode BN (batch statistics + running-stat update) not modeled.
    inv_std = jax.lax.rsqrt(running_var + eps)
    scale = gamma * inv_std                                   # (Cout,)
    bias = beta - running_mean * scale                        # (Cout,)

    # Fold scale into weights; OIHW -> (KH*KW, Cin, Cout).
    w = (conv_w * scale[:, None, None, None]).transpose(2, 3, 1, 0)
    w = w.reshape(KH * KW, Cin, Cout)

    # Lane-dense output channels (only worth padding for non-tiny Cout).
    Cout_p = ((Cout + 127) // 128) * 128 if Cout >= 64 else Cout
    if Cout_p != Cout:
        w = jnp.pad(w, ((0, 0), (0, 0), (0, Cout_p - Cout)))
        bias = jnp.pad(bias, (0, Cout_p - Cout))              # bias 0 -> ReLU(0)=0
    w = w.astype(compute_dtype)
    bias2d = bias.reshape(1, Cout_p).astype(jnp.float32)

    # NCHW -> NHWC, spatial zero-pad, bf16 cast (one fused XLA pass over x).
    xp = jnp.transpose(x, (0, 2, 3, 1))
    if padding:
        xp = jnp.pad(xp, ((0, 0), (padding, padding), (padding, padding), (0, 0)))
    xp = xp.astype(compute_dtype)
    Hp, Wp = xp.shape[1], xp.shape[2]

    kernel = functools.partial(_conv_bn_relu_kernel,
                               kh=KH, kw=KW, oh=OH, ow=OW,
                               stride=stride, dilation=dilation)

    flops = 2 * N * OH * OW * Cin * KH * KW * Cout_p
    bytes_accessed = (N * Hp * Wp * Cin * xp.dtype.itemsize
                      + KH * KW * Cin * Cout_p * w.dtype.itemsize
                      + Cout_p * 4
                      + N * OH * OW * Cout_p * 4)

    y = pl.pallas_call(
        kernel,
        out_shape=jax.ShapeDtypeStruct((N, OH * OW, Cout_p), jnp.float32),
        grid_spec=pltpu.PrefetchScalarGridSpec(
            num_scalar_prefetch=0,
            grid=(N,),
            in_specs=[
                pl.BlockSpec((1, Hp, Wp, Cin), lambda n: (n, 0, 0, 0)),
                pl.BlockSpec((KH * KW, Cin, Cout_p), lambda n: (0, 0, 0)),
                pl.BlockSpec((1, Cout_p), lambda n: (0, 0)),
            ],
            out_specs=pl.BlockSpec((1, OH * OW, Cout_p), lambda n: (n, 0, 0)),
        ),
        compiler_params=pltpu.CompilerParams(
            dimension_semantics=("parallel",),
            vmem_limit_bytes=32 * 1024 * 1024),
        cost_estimate=pl.CostEstimate(flops=flops, transcendentals=0,
                                      bytes_accessed=bytes_accessed),
    )(xp, w, bias2d)

    if Cout_p != Cout:
        y = y[:, :, :Cout]
    # Back to NCHW only because the PyTorch module contract is NCHW; a
    # channels-last consumer would use the (N, OH, OW, Cout) result directly.
    y = y.reshape(N, OH, OW, Cout).transpose(0, 3, 1, 2)
    return y


# --------------------------------- main ------------------------------------ #
if __name__ == "__main__":
    key = jax.random.PRNGKey(0)
    k_x, k_w, k_g, k_b, k_m, k_v = jax.random.split(key, 6)

    # BasicConv2d(in_planes=4, out_planes=8, kernel_size=3, stride=1, padding=1)
    N, Cin, H, W = 2, 4, 16, 16
    Cout, KH, KW = 8, 3, 3
    stride, padding, dilation = 1, 1, 1

    x = jax.random.normal(k_x, (N, Cin, H, W), dtype=jnp.float32)
    conv_w = jax.random.normal(k_w, (Cout, Cin, KH, KW), dtype=jnp.float32) * 0.1
    gamma = 1.0 + 0.1 * jax.random.normal(k_g, (Cout,), dtype=jnp.float32)
    beta = 0.1 * jax.random.normal(k_b, (Cout,), dtype=jnp.float32)
    running_mean = 0.1 * jax.random.normal(k_m, (Cout,), dtype=jnp.float32)
    running_var = jnp.abs(1.0 + 0.1 * jax.random.normal(k_v, (Cout,), dtype=jnp.float32))

    out = basic_conv2d(x, conv_w, gamma, beta, running_mean, running_var,
                       stride=stride, padding=padding, dilation=dilation)
    out = jax.block_until_ready(out)

    # Pure-JAX f32 reference (lax conv + BN(eval) + ReLU).
    ref_conv = jax.lax.conv_general_dilated(
        x, conv_w, window_strides=(stride, stride),
        padding=[(padding, padding), (padding, padding)],
        rhs_dilation=(dilation, dilation),
        dimension_numbers=("NCHW", "OIHW", "NCHW"),
        precision=jax.lax.Precision.HIGHEST)
    inv_std = 1.0 / jnp.sqrt(running_var + 1e-5)
    ref = ((ref_conv - running_mean[None, :, None, None])
           * (gamma * inv_std)[None, :, None, None]
           + beta[None, :, None, None])
    ref = jnp.maximum(ref, 0.0)

    assert out.shape == (N, Cout, H, W), out.shape
    max_err = float(jnp.max(jnp.abs(out - ref)))
    # Tolerance accounts for bf16 MXU inputs (f32 accumulation).
    assert jnp.allclose(out, ref, atol=5e-2, rtol=5e-2), f"max_err={max_err}"
    print("KERNEL_OK")
</pallas_src>

<mosaic_0001>
module attributes {stable_mosaic.version = 11 : i64} {
  func.func @_conv_bn_relu_kernel(%arg0: i32, %arg1: memref<1x18x18x4xbf16, #tpu.memory_space<vmem>>, %arg2: memref<9x4x8xbf16, #tpu.memory_space<vmem>>, %arg3: memref<1x8xf32, #tpu.memory_space<vmem>>, %arg4: memref<1x256x8xf32, #tpu.memory_space<vmem>>) attributes {dimension_semantics = [#tpu.dimension_semantics<parallel>], iteration_bounds = array<i64: 2>, scalar_prefetch = 0 : i64, scratch_operands = 0 : i64, tpu.core_type = #tpu.core_type<tc>, window_params = [{transform_indices = @transform_0, window_bounds = array<i64: 1, 18, 18, 4>}, {pipeline_mode = #tpu.pipeline_mode<synchronous>, transform_indices = @transform_1, window_bounds = array<i64: 9, 4, 8>}, {pipeline_mode = #tpu.pipeline_mode<synchronous>, transform_indices = @transform_2, window_bounds = array<i64: 1, 8>}, {transform_indices = @transform_3, window_bounds = array<i64: 1, 256, 8>}]} {
    %cst = arith.constant 0.000000e+00 : f32
    %0 = vector.broadcast %cst : f32 to vector<256x8xf32>
    %c0 = arith.constant 0 : index
    %c0_0 = arith.constant 0 : index
    %c0_1 = arith.constant 0 : index
    %c0_2 = arith.constant 0 : index
    %1 = vector.load %arg1[%c0, %c0_0, %c0_1, %c0_2] : memref<1x18x18x4xbf16, #tpu.memory_space<vmem>>, vector<1x16x16x4xbf16>
    %2 = vector.shape_cast %1 : vector<1x16x16x4xbf16> to vector<16x16x4xbf16>
    %3 = vector.shape_cast %2 : vector<16x16x4xbf16> to vector<256x4xbf16>
    %c0_3 = arith.constant 0 : index
    %c0_4 = arith.constant 0 : index
    %c0_5 = arith.constant 0 : index
    %4 = vector.load %arg2[%c0_3, %c0_4, %c0_5] : memref<9x4x8xbf16, #tpu.memory_space<vmem>>, vector<1x4x8xbf16>
    %5 = vector.shape_cast %4 : vector<1x4x8xbf16> to vector<4x8xbf16>
    %cst_6 = arith.constant dense<0.000000e+00> : vector<256x8xf32>
    %6 = tpu.matmul %3, %5, %cst_6 {dimension_numbers = #tpu.dot_dimension_numbers<[1], [0], [0], [1], [0, 0, 1, 1], [], []>} : vector<256x4xbf16>, vector<4x8xbf16>, vector<256x8xf32> -> vector<256x8xf32>
    %7 = arith.addf %0, %6 : vector<256x8xf32>
    %c0_7 = arith.constant 0 : index
    %c0_8 = arith.constant 0 : index
    %c1 = arith.constant 1 : index
    %c0_9 = arith.constant 0 : index
    %8 = vector.load %arg1[%c0_7, %c0_8, %c1, %c0_9] : memref<1x18x18x4xbf16, #tpu.memory_space<vmem>>, vector<1x16x16x4xbf16>
    %9 = vector.shape_cast %8 : vector<1x16x16x4xbf16> to vector<16x16x4xbf16>
    %10 = vector.shape_cast %9 : vector<16x16x4xbf16> to vector<256x4xbf16>
    %c1_10 = arith.constant 1 : index
    %c0_11 = arith.constant 0 : index
    %c0_12 = arith.constant 0 : index
    %11 = vector.load %arg2[%c1_10, %c0_11, %c0_12] : memref<9x4x8xbf16, #tpu.memory_space<vmem>>, vector<1x4x8xbf16>
    %12 = vector.shape_cast %11 : vector<1x4x8xbf16> to vector<4x8xbf16>
    %cst_13 = arith.constant dense<0.000000e+00> : vector<256x8xf32>
    %13 = tpu.matmul %10, %12, %cst_13 {dimension_numbers = #tpu.dot_dimension_numbers<[1], [0], [0], [1], [0, 0, 1, 1], [], []>} : vector<256x4xbf16>, vector<4x8xbf16>, vector<256x8xf32> -> vector<256x8xf32>
    %14 = arith.addf %7, %13 : vector<256x8xf32>
    %c0_14 = arith.constant 0 : index
    %c0_15 = arith.constant 0 : index
    %c2 = arith.constant 2 : index
    %c0_16 = arith.constant 0 : index
    %15 = vector.load %arg1[%c0_14, %c0_15, %c2, %c0_16] : memref<1x18x18x4xbf16, #tpu.memory_space<vmem>>, vector<1x16x16x4xbf16>
    %16 = vector.shape_cast %15 : vector<1x16x16x4xbf16> to vector<16x16x4xbf16>
    %17 = vector.shape_cast %16 : vector<16x16x4xbf16> to vector<256x4xbf16>
    %c2_17 = arith.constant 2 : index
    %c0_18 = arith.constant 0 : index
    %c0_19 = arith.constant 0 : index
    %18 = vector.load %arg2[%c2_17, %c0_18, %c0_19] : memref<9x4x8xbf16, #tpu.memory_space<vmem>>, vector<1x4x8xbf16>
    %19 = vector.shape_cast %18 : vector<1x4x8xbf16> to vector<4x8xbf16>
    %cst_20 = arith.constant dense<0.000000e+00> : vector<256x8xf32>
    %20 = tpu.matmul %17, %19, %cst_20 {dimension_numbers = #tpu.dot_dimension_numbers<[1], [0], [0], [1], [0, 0, 1, 1], [], []>} : vector<256x4xbf16>, vector<4x8xbf16>, vector<256x8xf32> -> vector<256x8xf32>
    %21 = arith.addf %14, %20 : vector<256x8xf32>
    %c0_21 = arith.constant 0 : index
    %c1_22 = arith.constant 1 : index
    %c0_23 = arith.constant 0 : index
    %c0_24 = arith.constant 0 : index
    %22 = vector.load %arg1[%c0_21, %c1_22, %c0_23, %c0_24] : memref<1x18x18x4xbf16, #tpu.memory_space<vmem>>, vector<1x16x16x4xbf16>
    %23 = vector.shape_cast %22 : vector<1x16x16x4xbf16> to vector<16x16x4xbf16>
    %24 = vector.shape_cast %23 : vector<16x16x4xbf16> to vector<256x4xbf16>
    %c3 = arith.constant 3 : index
    %c0_25 = arith.constant 0 : index
    %c0_26 = arith.constant 0 : index
    %25 = vector.load %arg2[%c3, %c0_25, %c0_26] : memref<9x4x8xbf16, #tpu.memory_space<vmem>>, vector<1x4x8xbf16>
    %26 = vector.shape_cast %25 : vector<1x4x8xbf16> to vector<4x8xbf16>
    %cst_27 = arith.constant dense<0.000000e+00> : vector<256x8xf32>
    %27 = tpu.matmul %24, %26, %cst_27 {dimension_numbers = #tpu.dot_dimension_numbers<[1], [0], [0], [1], [0, 0, 1, 1], [], []>} : vector<256x4xbf16>, vector<4x8xbf16>, vector<256x8xf32> -> vector<256x8xf32>
    %28 = arith.addf %21, %27 : vector<256x8xf32>
    %c0_28 = arith.constant 0 : index
    %c1_29 = arith.constant 1 : index
    %c1_30 = arith.constant 1 : index
    %c0_31 = arith.constant 0 : index
    %29 = vector.load %arg1[%c0_28, %c1_29, %c1_30, %c0_31] : memref<1x18x18x4xbf16, #tpu.memory_space<vmem>>, vector<1x16x16x4xbf16>
    %30 = vector.shape_cast %29 : vector<1x16x16x4xbf16> to vector<16x16x4xbf16>
    %31 = vector.shape_cast %30 : vector<16x16x4xbf16> to vector<256x4xbf16>
    %c4 = arith.constant 4 : index
    %c0_32 = arith.constant 0 : index
    %c0_33 = arith.constant 0 : index
    %32 = vector.load %arg2[%c4, %c0_32, %c0_33] : memref<9x4x8xbf16, #tpu.memory_space<vmem>>, vector<1x4x8xbf16>
    %33 = vector.shape_cast %32 : vector<1x4x8xbf16> to vector<4x8xbf16>
    %cst_34 = arith.constant dense<0.000000e+00> : vector<256x8xf32>
    %34 = tpu.matmul %31, %33, %cst_34 {dimension_numbers = #tpu.dot_dimension_numbers<[1], [0], [0], [1], [0, 0, 1, 1], [], []>} : vector<256x4xbf16>, vector<4x8xbf16>, vector<256x8xf32> -> vector<256x8xf32>
    %35 = arith.addf %28, %34 : vector<256x8xf32>
    %c0_35 = arith.constant 0 : index
    %c1_36 = arith.constant 1 : index
    %c2_37 = arith.constant 2 : index
    %c0_38 = arith.constant 0 : index
    %36 = vector.load %arg1[%c0_35, %c1_36, %c2_37, %c0_38] : memref<1x18x18x4xbf16, #tpu.memory_space<vmem>>, vector<1x16x16x4xbf16>
    %37 = vector.shape_cast %36 : vector<1x16x16x4xbf16> to vector<16x16x4xbf16>
    %38 = vector.shape_cast %37 : vector<16x16x4xbf16> to vector<256x4xbf16>
    %c5 = arith.constant 5 : index
    %c0_39 = arith.constant 0 : index
    %c0_40 = arith.constant 0 : index
    %39 = vector.load %arg2[%c5, %c0_39, %c0_40] : memref<9x4x8xbf16, #tpu.memory_space<vmem>>, vector<1x4x8xbf16>
    %40 = vector.shape_cast %39 : vector<1x4x8xbf16> to vector<4x8xbf16>
    %cst_41 = arith.constant dense<0.000000e+00> : vector<256x8xf32>
    %41 = tpu.matmul %38, %40, %cst_41 {dimension_numbers = #tpu.dot_dimension_numbers<[1], [0], [0], [1], [0, 0, 1, 1], [], []>} : vector<256x4xbf16>, vector<4x8xbf16>, vector<256x8xf32> -> vector<256x8xf32>
    %42 = arith.addf %35, %41 : vector<256x8xf32>
    %c0_42 = arith.constant 0 : index
    %c2_43 = arith.constant 2 : index
    %c0_44 = arith.constant 0 : index
    %c0_45 = arith.constant 0 : index
    %43 = vector.load %arg1[%c0_42, %c2_43, %c0_44, %c0_45] : memref<1x18x18x4xbf16, #tpu.memory_space<vmem>>, vector<1x16x16x4xbf16>
    %44 = vector.shape_cast %43 : vector<1x16x16x4xbf16> to vector<16x16x4xbf16>
    %45 = vector.shape_cast %44 : vector<16x16x4xbf16> to vector<256x4xbf16>
    %c6 = arith.constant 6 : index
    %c0_46 = arith.constant 0 : index
    %c0_47 = arith.constant 0 : index
    %46 = vector.load %arg2[%c6, %c0_46, %c0_47] : memref<9x4x8xbf16, #tpu.memory_space<vmem>>, vector<1x4x8xbf16>
    %47 = vector.shape_cast %46 : vector<1x4x8xbf16> to vector<4x8xbf16>
    %cst_48 = arith.constant dense<0.000000e+00> : vector<256x8xf32>
    %48 = tpu.matmul %45, %47, %cst_48 {dimension_numbers = #tpu.dot_dimension_numbers<[1], [0], [0], [1], [0, 0, 1, 1], [], []>} : vector<256x4xbf16>, vector<4x8xbf16>, vector<256x8xf32> -> vector<256x8xf32>
    %49 = arith.addf %42, %48 : vector<256x8xf32>
    %c0_49 = arith.constant 0 : index
    %c2_50 = arith.constant 2 : index
    %c1_51 = arith.constant 1 : index
    %c0_52 = arith.constant 0 : index
    %50 = vector.load %arg1[%c0_49, %c2_50, %c1_51, %c0_52] : memref<1x18x18x4xbf16, #tpu.memory_space<vmem>>, vector<1x16x16x4xbf16>
    %51 = vector.shape_cast %50 : vector<1x16x16x4xbf16> to vector<16x16x4xbf16>
    %52 = vector.shape_cast %51 : vector<16x16x4xbf16> to vector<256x4xbf16>
    %c7 = arith.constant 7 : index
    %c0_53 = arith.constant 0 : index
    %c0_54 = arith.constant 0 : index
    %53 = vector.load %arg2[%c7, %c0_53, %c0_54] : memref<9x4x8xbf16, #tpu.memory_space<vmem>>, vector<1x4x8xbf16>
    %54 = vector.shape_cast %53 : vector<1x4x8xbf16> to vector<4x8xbf16>
    %cst_55 = arith.constant dense<0.000000e+00> : vector<256x8xf32>
    %55 = tpu.matmul %52, %54, %cst_55 {dimension_numbers = #tpu.dot_dimension_numbers<[1], [0], [0], [1], [0, 0, 1, 1], [], []>} : vector<256x4xbf16>, vector<4x8xbf16>, vector<256x8xf32> -> vector<256x8xf32>
    %56 = arith.addf %49, %55 : vector<256x8xf32>
    %c0_56 = arith.constant 0 : index
    %c2_57 = arith.constant 2 : index
    %c2_58 = arith.constant 2 : index
    %c0_59 = arith.constant 0 : index
    %57 = vector.load %arg1[%c0_56, %c2_57, %c2_58, %c0_59] : memref<1x18x18x4xbf16, #tpu.memory_space<vmem>>, vector<1x16x16x4xbf16>
    %58 = vector.shape_cast %57 : vector<1x16x16x4xbf16> to vector<16x16x4xbf16>
    %59 = vector.shape_cast %58 : vector<16x16x4xbf16> to vector<256x4xbf16>
    %c8 = arith.constant 8 : index
    %c0_60 = arith.constant 0 : index
    %c0_61 = arith.constant 0 : index
    %60 = vector.load %arg2[%c8, %c0_60, %c0_61] : memref<9x4x8xbf16, #tpu.memory_space<vmem>>, vector<1x4x8xbf16>
    %61 = vector.shape_cast %60 : vector<1x4x8xbf16> to vector<4x8xbf16>
    %cst_62 = arith.constant dense<0.000000e+00> : vector<256x8xf32>
    %62 = tpu.matmul %59, %61, %cst_62 {dimension_numbers = #tpu.dot_dimension_numbers<[1], [0], [0], [1], [0, 0, 1, 1], [], []>} : vector<256x4xbf16>, vector<4x8xbf16>, vector<256x8xf32> -> vector<256x8xf32>
    %63 = arith.addf %56, %62 : vector<256x8xf32>
    %c0_63 = arith.constant 0 : index
    %c0_64 = arith.constant 0 : index
    %64 = vector.load %arg3[%c0_63, %c0_64] : memref<1x8xf32, #tpu.memory_space<vmem>>, vector<1x8xf32>
    %65 = vector.broadcast %64 : vector<1x8xf32> to vector<256x8xf32>
    %66 = arith.addf %63, %65 : vector<256x8xf32>
    %cst_65 = arith.constant 0.000000e+00 : f32
    %67 = vector.broadcast %cst_65 : f32 to vector<256x8xf32>
    %68 = arith.maximumf %66, %67 : vector<256x8xf32>
    %c0_66 = arith.constant 0 : index
    %c0_67 = arith.constant 0 : index
    %c0_68 = arith.constant 0 : index
    %69 = vector.load %arg4[%c0_66, %c0_67, %c0_68] : memref<1x256x8xf32, #tpu.memory_space<vmem>>, vector<1x256x8xf32>
    %70 = vector.shape_cast %69 : vector<1x256x8xf32> to vector<256x8xf32>
    %71 = vector.shape_cast %68 : vector<256x8xf32> to vector<1x256x8xf32>
    tpu.vector_store %arg4[%c0_66, %c0_67, %c0_68], %71 {strides = array<i32>} : memref<1x256x8xf32, #tpu.memory_space<vmem>>, vector<1x256x8xf32>,
    return
  }
  func.func @transform_0(%arg0: i32) -> (i32, i32, i32, i32) {
    %c0_i32 = arith.constant 0 : i32
    %c0_i32_0 = arith.constant 0 : i32
    %c0_i32_1 = arith.constant 0 : i32
    %c0_i32_2 = arith.constant 0 : i32
    return %arg0, %c0_i32, %c0_i32_0, %c0_i32_1 : i32, i32, i32, i32
  }
  func.func @transform_1(%arg0: i32) -> (i32, i32, i32) {
    %c0_i32 = arith.constant 0 : i32
    %c0_i32_0 = arith.constant 0 : i32
    %c0_i32_1 = arith.constant 0 : i32
    %c0_i32_2 = arith.constant 0 : i32
    return %c0_i32, %c0_i32_0, %c0_i32_1 : i32, i32, i32
  }
  func.func @transform_2(%arg0: i32) -> (i32, i32) {
    %c0_i32 = arith.constant 0 : i32
    %c0_i32_0 = arith.constant 0 : i32
    %c0_i32_1 = arith.constant 0 : i32
    return %c0_i32, %c0_i32_0 : i32, i32
  }
  func.func @transform_3(%arg0: i32) -> (i32, i32, i32) {
    %c0_i32 = arith.constant 0 : i32
    %c0_i32_0 = arith.constant 0 : i32
    %c0_i32_1 = arith.constant 0 : i32
    return %arg0, %c0_i32, %c0_i32_0 : i32, i32, i32
  }
}

</mosaic_0001>

<bundles_post_ra>
// kernel: basic_conv2d.1
= control target key start
LH: loop header
LB: loop body
LE: loop exit
PB: predicated region body
PF: predicated region fallthrough
CT: control target
= control target key end

     0   :  { %s5996_s12 = smov 0   ;;  %s8673_s0 = inlined_call_operand.vmem [shape: bf16[2,18,18,4], index: 0, kind: input, shape index: {}]   ;;  %s8674_s1 = inlined_call_operand.vmem [shape: bf16[9,4,8], index: 1, kind: input, shape index: {}]   ;;  %s8675_s2 = inlined_call_operand.vmem [shape: f32[1,8], index: 2, kind: input, shape index: {}]   ;;  %s8676_s3 = inlined_call_operand.vmem [shape: f32[2,256,8], index: 3, kind: output, shape index: {}]  }
   0x1 LB: > { %s4890_s13 = sadd.s32 4294967295, %s5974_s12   ;;  %p4894_p0 = scmp.ge.s32.totalorder %s5974_s12, 1  ;;  %s5974_s12 = sphi %s5996_s12, %s13_s12  }
   0x2   : > { %p137_p1 = scmp.lt.s32.totalorder %s5974_s12, 3 }
   0x4   : > { %p138_p2 = pnand %p4894_p0, %p137_p1 }
   0x6   : > { %141 = sbr.rel (%p138_p2) target bundleno = 556 (0x22c), region = 32 }
   0xb   : > { %v4898_v0 = vld [vmem:[%s8674_s1 + $0x2] sm:$0x3]  ;;  %vm707_vm0 = vcmask 1041408   ;;  %p161_p3 = scmp.lt.s32.totalorder %s4890_s13, 1  ;;  %v204_v2 = vld [vmem:[%s8674_s1] sm:$0x3] }
   0xc   : > { %5900 = vmatprep.subr.msk.bf16.mxu1 %vm707_vm0, %v4898_v0  ;;  %5899 = vmatprep.subr.msk.bf16.mxu0 %vm707_vm0, %v4898_v0  ;;  %v709_v1 = vsel %vm707_vm0, %v4898_v0, 0  ;;  %v4979_v3 = vld [vmem:[%s8674_s1 + $0x4] sm:$0x3]  ;;  %vm221_vm1 = vsmask.f32 3328  ;;  %v6027_v4 = vsel %vm707_vm0, %v204_v2, 0 }
   0xd   : > { %5898 = vmatpush3.bf16.msra.mxu1 %v709_v1  ;;  %5592 = vmatpush3.bf16.msra.mxu0 %v709_v1  ;;  %s8952_s13 = smov (!%p161_p3, %s4890_s13), 1  ;;  %vm222_vm2 = vsmask.f32 7440  ;;  %vm658_vm3 = vcmask 31744   ;;  %v6053_v16 = vsel %vm707_vm0, %v4979_v3, 0  ;;  %vm1212_vm5 = vcmask 1042432  }
   0xe   : > { %5901 = vmatprep.subr.msk.bf16.mxu1 %vm707_vm0, %v204_v2  ;;  %5902 = vmatprep.subr.msk.bf16.mxu0 %vm707_vm0, %v4979_v3  ;;  %s5909_s20 = smul.u32 216, %s8952_s13  ;;  %vm6068_vm4 = vmor %vm221_vm1, %vm222_vm2  ;;  %vm1213_vm6 = vcmask 1046532   ;;  %s5437_s11 = sshll.u32 %s8952_s13, 8  ;;  %vm4802_vm8 = vcmask 64512  }
   0xf   : > { %vm6354_vm7 = vmor %vm1212_vm5, %vm1213_vm6  ;;  %s8496_s15 = scalar_lea.vmem %s8676_s3, %s5437_s11 }
  0x10   : > { %s6024_s23 = scalar_lea.vmem %s8673_s0, %s5909_s20 }
  0x11   : > { %v6030_v5 = vld [vmem:[%s6024_s23] sm:$0xf]  ;;  %v6033_v6 = vld [vmem:[%s6024_s23 + $0x4] sm:$0xf]  ;;  %v6036_v7 = vld [vmem:[%s6024_s23 + $0x8] sm:$0x1] }
  0x12   : > { %v225_v8 = vshrl.u32 %v6030_v5, 16  ;;  %v228_v9 = vshll.u32 %v6030_v5, 16  ;;  %v234_v10 = vshll.u32 %v6033_v6, 16  ;;  %v238_v11 = vshrl.u32 %v6033_v6, 16  ;;  %v6043_v12 = vld [vmem:[%s6024_s23 + $0x60] sm:$0xf] }
  0x13   : > { %v244_v13 = vshll.u32 %v6036_v7, 16  ;;  %v6047_v14 = vld [vmem:[%s6024_s23 + $0x64] sm:$0xf]  ;;  %v6050_v15 = vld [vmem:[%s6024_s23 + $0x68] sm:$0x1]  ;;  %v417_v22 = vshrl.u32 %v6043_v12, 16 }
  0x14   : > { %v227_v17 = vrot.slane %v225_v8, 4  ;;  %v230_v18 = vrot.slane %v228_v9, 5  ;;  %v236_v19 = vrot.slane %v234_v10, 5  ;;  %v240_v20 = vrot.slane %v238_v11, 4  ;;  %v6061_v29 = vld [vmem:[%s6024_s23 + $0xc] sm:$0xf] }
  0x15   : > { %v246_v21 = vrot.slane %v244_v13, 5  ;;  %v420_v23 = vshll.u32 %v6043_v12, 16  ;;  %v426_v24 = vshll.u32 %v6047_v14, 16  ;;  %v430_v27 = vshrl.u32 %v6047_v14, 16  ;;  %v6064_v30 = vld [vmem:[%s6024_s23 + $0x10] sm:$0xf] }
  0x16   : > { %v231_v25 = vor.u32 %v230_v18, %v227_v17  ;;  %v241_v26 = vor.u32 %v240_v20, %v236_v19  ;;  %v436_v28 = vshll.u32 %v6050_v15, 16  ;;  %v419_v33 = vrot.slane %v417_v22, 4  ;;  %v6074_v41 = vld [vmem:[%s6024_s23 + $0x14] sm:$0x1]  ;;  %v6085_v53 = vld [vmem:[%s6024_s23 + $0x6c] sm:$0xf] }
  0x17   : > { %v422_v34 = vrot.slane %v420_v23, 5  ;;  %v428_v35 = vrot.slane %v426_v24, 5  ;;  %v432_v38 = vrot.slane %v430_v27, 4  ;;  %v249_v42 = vshrl.u32 %v6061_v29, 16  ;;  %v6089_v58 = vld [vmem:[%s6024_s23 + $0x70] sm:$0xf] }
  0x18   : > { %v232_v36 = vrot.slane %v231_v25, 4  ;;  %v242_v37 = vrot.slane %v241_v26, 4  ;;  %v438_v39 = vrot.slane %v436_v28, 5  ;;  %v252_v43 = vshll.u32 %v6061_v29, 16  ;;  %v6097_v63 = vld [vmem:[%s6024_s23 + $0x74] sm:$0x1] }
  0x19   : > { %v423_v40 = vor.u32 %v422_v34, %v419_v33  ;;  %v258_v44 = vshll.u32 %v6064_v30, 16  ;;  %v433_v47 = vor.u32 %v432_v38, %v428_v35  ;;  %v262_v48 = vshrl.u32 %v6064_v30, 16  ;;  %v6103_v8 = vld [vmem:[%s6024_s23 + $0x18] sm:$0xf]  ;;  %v6116_v25 = vld [vmem:[%s6024_s23 + $0x20] sm:$0x1] }
  0x1a   : > { %v237_v45 = vsel %vm6068_vm4, %v232_v36, %v236_v19  ;;  %v247_v46 = vsel %vm6068_vm4, %v242_v37, %v246_v21  ;;  %v251_v51 = vrot.slane %v249_v42, 4  ;;  %v254_v52 = vrot.slane %v252_v43, 5  ;;  %v6110_v21 = vld [vmem:[%s6024_s23 + $0x1c] sm:$0xf] }
  0x1b   : > { %v4899_v49 = vcombine.low %v237_v45, %v247_v46  ;;  %v424_v50 = vrot.slane %v423_v40, 4  ;;  %v434_v54 = vrot.slane %v433_v47, 4  ;;  %v260_v55 = vrot.slane %v258_v44, 5  ;;  %v6129_v40 = vld [vmem:[%s8674_s1 + $0x8] sm:$0x3] }
  0x1c   : > { %v264_v56 = vrot.slane %v262_v48, 4  ;;  %v268_v57 = vshll.u32 %v6074_v41, 16  ;;  %v255_v60 = vor.u32 %v254_v52, %v251_v51  ;;  %v441_v3 = vshrl.u32 %v6085_v53, 16  ;;  %v6134_v46 = vld [vmem:[%s6024_s23 + $0x7c] sm:$0xf] }
  0x1d   : > { %5593 = vmatprep.mubr.msk.bf16.mxu0 %vm658_vm3, %v4899_v49  ;;  %v429_v59 = vsel %vm6068_vm4, %v424_v50, %v428_v35  ;;  %v439_v0 = vsel %vm6068_vm4, %v434_v54, %v438_v39  ;;  %v444_v11 = vshll.u32 %v6085_v53, 16  ;;  %v450_v13 = vshll.u32 %v6089_v58, 16  ;;  %v6123_v35 = vld [vmem:[%s6024_s23 + $0x78] sm:$0xf] }
  0x1e   : > { %v265_v1 = vor.u32 %v264_v56, %v260_v55  ;;  %v270_v2 = vrot.slane %v268_v57, 5  ;;  %v4907_v9 = vcombine.low %v429_v59, %v439_v0  ;;  %v256_v10 = vrot.slane %v255_v60, 4  ;;  %v6141_v56 = vld [vmem:[%s6024_s23 + $0x80] sm:$0x1] }
  0x1f   : > { %v443_v18 = vrot.slane %v441_v3, 4  ;;  %v454_v19 = vshrl.u32 %v6089_v58, 16  ;;  %v460_v20 = vshll.u32 %v6097_v63, 16  ;;  %v446_v23 = vrot.slane %v444_v11, 5  ;;  %8712 = vst [vmem:[#allocation2_spill] sm:$0xff] %v6141_v56 }
  0x20   : > { %v266_v17 = vrot.slane %v265_v1, 4  ;;  %5609 = vmatprep.mubr.msk.bf16.mxu1 %vm658_vm3, %v4907_v9  ;;  %v261_v22 = vsel %vm6068_vm4, %v256_v10, %v260_v55  ;;  %v452_v24 = vrot.slane %v450_v13, 5  ;;  %v273_v26 = vshrl.u32 %v6103_v8, 16  ;;  %v6147_v1 = vld [vmem:[%s6024_s23 + $0x24] sm:$0xf] }
  0x21   : > { %v456_v28 = vrot.slane %v454_v19, 4  ;;  %v462_v33 = vrot.slane %v460_v20, 5  ;;  %v276_v34 = vshll.u32 %v6103_v8, 16  ;;  %v447_v37 = vor.u32 %v446_v23, %v443_v18  ;;  %v6155_v10 = vld [vmem:[%s6024_s23 + $0x28] sm:$0xf] }
  0x22   : > { %v271_v27 = vsel %vm6068_vm4, %v266_v17, %v270_v2  ;;  %v275_v38 = vrot.slane %v273_v26, 4  ;;  %v282_v39 = vshll.u32 %v6110_v21, 16  ;;  %v286_v44 = vshrl.u32 %v6110_v21, 16  ;;  %v6161_v19 = vld [vmem:[%s8674_s1 + $0x6] sm:$0x3] }
  0x23   : > { %v4900_v36 = vcombine.low %v261_v22, %v271_v27  ;;  %v457_v42 = vor.u32 %v456_v28, %v452_v24  ;;  %v278_v43 = vrot.slane %v276_v34, 5  ;;  %v292_v45 = vshll.u32 %v6116_v25, 16 }
  0x24   : > { %v448_v47 = vrot.slane %v447_v37, 4  ;;  %v284_v48 = vrot.slane %v282_v39, 5  ;;  %v465_v49 = vshrl.u32 %v6123_v35, 16  ;;  %v468_v50 = vshll.u32 %v6123_v35, 16 }
  0x25   : > { %5594 = vmatmul.mubr.msk.bf16.vlgmr.msra.gmra.mxu0 %vm658_vm3, %v4900_v36  ;;  %v458_v51 = vrot.slane %v457_v42, 4  ;;  %v279_v52 = vor.u32 %v278_v43, %v275_v38  ;;  %v288_v54 = vrot.slane %v286_v44, 4  ;;  %v294_v55 = vrot.slane %v292_v45, 5  ;;  %v6173_v36 = vld [vmem:[%s6024_s23 + $0x84] sm:$0xf] }
  0x26   : > { %5660 = vmatpush3.bf16.msra.mxu0 %v6053_v16  ;;  %v453_v57 = vsel %vm6068_vm4, %v448_v47, %v452_v24  ;;  %v467_v59 = vrot.slane %v465_v49, 4  ;;  %v470_v60 = vrot.slane %v468_v50, 5  ;;  %v474_v0 = vshll.u32 %v6134_v46, 16  ;;  %v6166_v24 = vld [vmem:[%s6024_s23 + $0x2c] sm:$0x1] }
  0x27   : > { %5904 = vmatprep.subr.msk.bf16.mxu0 %vm707_vm0, %v6129_v40  ;;  %v463_v16 = vsel %vm6068_vm4, %v458_v51, %v462_v33  ;;  %v280_v2 = vrot.slane %v279_v52, 4  ;;  %v289_v3 = vor.u32 %v288_v54, %v284_v48  ;;  %v478_v9 = vshrl.u32 %v6134_v46, 16  ;;  %v6180_v43 = vld [vmem:[%s6024_s23 + $0x88] sm:$0xf]  ;;  %v6188_v51 = vld [vmem:[%s6024_s23 + $0x8c] sm:$0x1] }
  0x28   : > { %v4908_v11 = vcombine.low %v453_v57, %v463_v16  ;;  %v471_v13 = vor.u32 %v470_v60, %v467_v59  ;;  %v476_v17 = vrot.slane %v474_v0, 5  ;;  %v484_v18 = vshll.u32 %v6141_v56, 16  ;;  %8713 = vst [vmem:[#allocation3_spill] sm:$0xff] %v6188_v51  ;;  %v6196_v60 = vld [vmem:[%s6024_s23 + $0x30] sm:$0xf] }
  0x29   : > { %v285_v20 = vsel %vm6068_vm4, %v280_v2, %v284_v48  ;;  %v290_v22 = vrot.slane %v289_v3, 4  ;;  %v480_v23 = vrot.slane %v478_v9, 4  ;;  %v297_v26 = vshrl.u32 %v6147_v1, 16  ;;  %v6201_v9 = vld [vmem:[%s6024_s23 + $0x34] sm:$0xf] }
  0x2a   : > { %5610 = vmatmul.mubr.msk.bf16.vlgmr.msra.gmra.mxu1 %vm658_vm3, %v4908_v11  ;;  %v472_v27 = vrot.slane %v471_v13, 4  ;;  %v486_v28 = vrot.slane %v484_v18, 5  ;;  %v300_v33 = vshll.u32 %v6147_v1, 16  ;;  %v306_v34 = vshll.u32 %v6155_v10, 16 }
  0x2b   : > { %5626 = vmatpush3.bf16.msra.mxu1 %v6027_v4  ;;  %v295_v37 = vsel %vm6068_vm4, %v290_v22, %v294_v55  ;;  %v481_v38 = vor.u32 %v480_v23, %v476_v17  ;;  %v299_v39 = vrot.slane %v297_v26, 4  ;;  %v310_v42 = vshrl.u32 %v6155_v10, 16 }
  0x2c   : > { %v4901_v44 = vcombine.low %v285_v20, %v295_v37  ;;  %v477_v45 = vsel %vm6068_vm4, %v472_v27, %v476_v17  ;;  %v302_v47 = vrot.slane %v300_v33, 5  ;;  %v308_v48 = vrot.slane %v306_v34, 5  ;;  %5903 = vmatprep.subr.msk.bf16.mxu1 %vm707_vm0, %v6161_v19  ;;  %v6209_v33 = vld [vmem:[%s6024_s23 + $0x38] sm:$0x1] }
  0x2d   : > { %v482_v4 = vrot.slane %v481_v38, 4  ;;  %v312_v49 = vrot.slane %v310_v42, 4  ;;  %v316_v50 = vshll.u32 %v6166_v24, 16  ;;  %v489_v52 = vshrl.u32 %v6173_v36, 16  ;;  %v6214_v38 = vld [vmem:[%s6024_s23 + $0x90] sm:$0xf] }
  0x2e   : > { %5597 = vmatprep.mubr.msk.bf16.mxu0 %vm658_vm3, %v4901_v44  ;;  %v303_v54 = vor.u32 %v302_v47, %v299_v39  ;;  %v492_v55 = vshll.u32 %v6173_v36, 16  ;;  %v498_v57 = vshll.u32 %v6180_v43, 16  ;;  %v502_v59 = vshrl.u32 %v6180_v43, 16  ;;  %8714 = vst [vmem:[#allocation4_spill] sm:$0xff] %v6214_v38  ;;  %v6219_v47 = vld [vmem:[%s6024_s23 + $0x94] sm:$0xf] }
  0x2f   : > { %v487_v0 = vsel %vm6068_vm4, %v482_v4, %v486_v28  ;;  %v313_v16 = vor.u32 %v312_v49, %v308_v48  ;;  %v318_v2 = vrot.slane %v316_v50, 5  ;;  %v491_v3 = vrot.slane %v489_v52, 4  ;;  %8715 = vst [vmem:[#allocation5_spill] sm:$0xff] %v6219_v47 }
  0x30   : > { %v4909_v11 = vcombine.low %v477_v45, %v487_v0  ;;  %v304_v13 = vrot.slane %v303_v54, 4  ;;  %v494_v17 = vrot.slane %v492_v55, 5  ;;  %v500_v18 = vrot.slane %v498_v57, 5 }
  0x31   : > { %v314_v20 = vrot.slane %v313_v16, 4  ;;  %v504_v22 = vrot.slane %v502_v59, 4  ;;  %v508_v23 = vshll.u32 %v6188_v51, 16  ;;  %v321_v26 = vshrl.u32 %v6196_v60, 16  ;;  %v6228_v16 = vld [vmem:[%s6024_s23 + $0x98] sm:$0x1] }
  0x32   : > { %5613 = vmatprep.mubr.msk.bf16.mxu1 %vm658_vm3, %v4909_v11  ;;  %v309_v27 = vsel %vm6068_vm4, %v304_v13, %v308_v48  ;;  %v495_v28 = vor.u32 %v494_v17, %v491_v3  ;;  %v324_v34 = vshll.u32 %v6196_v60, 16  ;;  %v330_v37 = vshll.u32 %v6201_v9, 16  ;;  %8716 = vst [vmem:[#allocation6_spill] sm:$0xff] %v6228_v16  ;;  %v6233_v11 = vld [vmem:[%s6024_s23 + $0x3c] sm:$0xf] }
  0x33   : > { %v319_v39 = vsel %vm6068_vm4, %v314_v20, %v318_v2  ;;  %v505_v42 = vor.u32 %v504_v22, %v500_v18  ;;  %v510_v44 = vrot.slane %v508_v23, 5  ;;  %v323_v45 = vrot.slane %v321_v26, 4  ;;  %v6238_v23 = vld [vmem:[%s6024_s23 + $0x40] sm:$0xf]  ;;  %v1165_v51 = vld [vmem:[%s6024_s23 + $0xc] sm:$0xe] }
  0x34   : > { %v4902_v48 = vcombine.low %v309_v27, %v319_v39  ;;  %v496_v4 = vrot.slane %v495_v28, 4  ;;  %v326_v49 = vrot.slane %v324_v34, 5  ;;  %v332_v50 = vrot.slane %v330_v37, 5 }
  0x35   : > { %v506_v52 = vrot.slane %v505_v42, 4  ;;  %v334_v54 = vshrl.u32 %v6201_v9, 16  ;;  %v340_v55 = vshll.u32 %v6209_v33, 16  ;;  %v513_v57 = vshrl.u32 %v6214_v38, 16 }
  0x36   : > { %5598 = vmatmul.mubr.msk.bf16.gmra.mxu0 %vm658_vm3, %v4902_v48  ;;  %v501_v59 = vsel %vm6068_vm4, %v496_v4, %v500_v18  ;;  %v327_v0 = vor.u32 %v326_v49, %v323_v45  ;;  %v516_v2 = vshll.u32 %v6214_v38, 16  ;;  %v522_v3 = vshll.u32 %v6219_v47, 16  ;;  %v6247_v48 = vld [vmem:[%s6024_s23 + $0x44] sm:$0x1] }
  0x37   : > { %v511_v13 = vsel %vm6068_vm4, %v506_v52, %v510_v44  ;;  %v336_v17 = vrot.slane %v334_v54, 4  ;;  %v342_v20 = vrot.slane %v340_v55, 5  ;;  %v515_v22 = vrot.slane %v513_v57, 4  ;;  %v6252_v52 = vld [vmem:[%s6024_s23 + $0x9c] sm:$0xf] }
  0x38   : > { %v4910_v18 = vcombine.low %v501_v59, %v511_v13  ;;  %v328_v26 = vrot.slane %v327_v0, 4  ;;  %v518_v27 = vrot.slane %v516_v2, 5  ;;  %v524_v28 = vrot.slane %v522_v3, 5  ;;  %8717 = vst [vmem:[#allocation7_spill] sm:$0xff] %v6252_v52  ;;  %v6256_v13 = vld [vmem:[%s6024_s23 + $0xa0] sm:$0xf] }
  0x39   : > { %v337_v34 = vor.u32 %v336_v17, %v332_v50  ;;  %v526_v37 = vshrl.u32 %v6219_v47, 16  ;;  %v532_v39 = vshll.u32 %v6228_v16, 16  ;;  %v345_v42 = vshrl.u32 %v6233_v11, 16  ;;  %8718 = vst [vmem:[#allocation8_spill] sm:$0xff] %v6256_v13 }
  0x3a   : > { %5614 = vmatmul.mubr.msk.bf16.gmra.mxu1 %vm658_vm3, %v4910_v18  ;;  %v333_v44 = vsel %vm6068_vm4, %v328_v26, %v332_v50  ;;  %v519_v45 = vor.u32 %v518_v27, %v515_v22  ;;  %v348_v4 = vshll.u32 %v6233_v11, 16  ;;  %v354_v49 = vshll.u32 %v6238_v23, 16  ;;  %v6262_v26 = vld [vmem:[%s6024_s23 + $0xa4] sm:$0x1] }
  0x3b   : > { %v338_v54 = vrot.slane %v337_v34, 4  ;;  %v528_v55 = vrot.slane %v526_v37, 4  ;;  %v534_v57 = vrot.slane %v532_v39, 5  ;;  %v347_v59 = vrot.slane %v345_v42, 4  ;;  %8719 = vst [vmem:[#allocation9_spill] sm:$0xff] %v6262_v26 }
  0x3c   : > { %v520_v0 = vrot.slane %v519_v45, 4  ;;  %v350_v2 = vrot.slane %v348_v4, 5  ;;  %v356_v3 = vrot.slane %v354_v49, 5  ;;  %v358_v50 = vshrl.u32 %v6238_v23, 16  ;;  %v6266_v34 = vld [vmem:[%s6024_s23 + $0x48] sm:$0xf] }
  0x3d   : > { %v343_v17 = vsel %vm6068_vm4, %v338_v54, %v342_v20  ;;  %v529_v22 = vor.u32 %v528_v55, %v524_v28  ;;  %v364_v18 = vshll.u32 %v6247_v48, 16  ;;  %v537_v27 = vshrl.u32 %v6252_v52, 16 }
  0x3e   : > { %v4903_v37 = vcombine.low %v333_v44, %v343_v17  ;;  %v525_v39 = vsel %vm6068_vm4, %v520_v0, %v524_v28  ;;  %v351_v42 = vor.u32 %v350_v2, %v347_v59  ;;  %v360_v45 = vrot.slane %v358_v50, 4  ;;  %v6275_v17 = vld [vmem:[%s6024_s23 + $0x4c] sm:$0xf]  ;;  %v6281_v2 = vld [vmem:[%s6024_s23 + $0x50] sm:$0x1] }
  0x3f   : > { %v530_v4 = vrot.slane %v529_v22, 4  ;;  %v366_v49 = vrot.slane %v364_v18, 5  ;;  %v539_v20 = vrot.slane %v537_v27, 4  ;;  %v540_v54 = vshll.u32 %v6252_v52, 16 }
  0x40   : > { %5601 = vmatprep.mubr.msk.bf16.mxu0 %vm658_vm3, %v4903_v37  ;;  %v352_v55 = vrot.slane %v351_v42, 4  ;;  %v361_v62 = vor.u32 %v360_v45, %v356_v3  ;;  %v546_v32 = vshll.u32 %v6256_v13, 16  ;;  %v550_v44 = vshrl.u32 %v6256_v13, 16  ;;  %v6287_v42 = vld [vmem:[%s6024_s23 + $0xa8] sm:$0xf] }
  0x41   : > { %v535_v28 = vsel %vm6068_vm4, %v530_v4, %v534_v57  ;;  %v542_v59 = vrot.slane %v540_v54, 5  ;;  %v556_v0 = vshll.u32 %v6262_v26, 16  ;;  %v369_v50 = vshrl.u32 %v6266_v34, 16  ;;  %8720 = vst [vmem:[#allocation10_spill] sm:$0xff] %v6287_v42 }
  0x42   : > { %v4911_v22 = vcombine.low %v525_v39, %v535_v28  ;;  %v357_v18 = vsel %vm6068_vm4, %v352_v55, %v356_v3  ;;  %v362_v27 = vrot.slane %v361_v62, 4  ;;  %v548_v37 = vrot.slane %v546_v32, 5 }
  0x43   : > { %v543_v45 = vor.u32 %v542_v59, %v539_v20  ;;  %v552_v61 = vrot.slane %v550_v44, 4  ;;  %v558_v57 = vrot.slane %v556_v0, 5  ;;  %v371_v4 = vrot.slane %v369_v50, 4  ;;  %v6297_v44 = vld [vmem:[%s6024_s23 + $0xac] sm:$0xf] }
  0x44   : > { %5617 = vmatprep.mubr.msk.bf16.mxu1 %vm658_vm3, %v4911_v22  ;;  %v367_v54 = vsel %vm6068_vm4, %v362_v27, %v366_v49  ;;  %v372_v39 = vshll.u32 %v6266_v34, 16  ;;  %v378_v28 = vshll.u32 %v6275_v17, 16  ;;  %v382_v62 = vshrl.u32 %v6275_v17, 16  ;;  %8721 = vst [vmem:[#allocation11_spill] sm:$0xff] %v6297_v44  ;;  %v6300_v22 = vld [vmem:[%s6024_s23 + $0xb0] sm:$0x1] }
  0x45   : > { %v4904_v3 = vcombine.low %v357_v18, %v367_v54  ;;  %v544_v32 = vrot.slane %v543_v45, 4  ;;  %v553_v55 = vor.u32 %v552_v61, %v548_v37  ;;  %v388_v20 = vshll.u32 %v6281_v2, 16  ;;  %8722 = vst [vmem:[#allocation12_spill] sm:$0xff] %v6300_v22 }
  0x46   : > { %v374_v59 = vrot.slane %v372_v39, 5  ;;  %v380_v0 = vrot.slane %v378_v28, 5  ;;  %v384_v50 = vrot.slane %v382_v62, 4  ;;  %v561_v49 = vshrl.u32 %v6287_v42, 16  ;;  %v6309_v62 = vld [vmem:[%s6024_s23 + $0x54] sm:$0xf] }
  0x47   : > { %5602 = vmatmul.mubr.msk.bf16.gmra.mxu0 %vm658_vm3, %v4904_v3  ;;  %v549_v18 = vsel %vm6068_vm4, %v544_v32, %v548_v37  ;;  %v554_v27 = vrot.slane %v553_v55, 4  ;;  %v390_v61 = vrot.slane %v388_v20, 5  ;;  %v564_v45 = vshll.u32 %v6287_v42, 16  ;;  %v6316_v55 = vld [vmem:[%s6024_s23 + $0x58] sm:$0xf] }
  0x48   : > { %v375_v54 = vor.u32 %v374_v59, %v371_v4  ;;  %v385_v56 = vor.u32 %v384_v50, %v380_v0  ;;  %v563_v39 = vrot.slane %v561_v49, 4  ;;  %v570_v28 = vshll.u32 %v6297_v44, 16  ;;  %v6319_v49 = vld [vmem:[%s6024_s23 + $0x5c] sm:$0x1] }
  0x49   : > { %v559_v3 = vsel %vm6068_vm4, %v554_v27, %v558_v57  ;;  %v566_v26 = vrot.slane %v564_v45, 5  ;;  %v574_v37 = vshrl.u32 %v6297_v44, 16  ;;  %v580_v32 = vshll.u32 %v6300_v22, 16  ;;  %v1164_v22 = vld [vmem:[%s6024_s23] sm:$0xe] }
  0x4a   : > { %v4912_v4 = vcombine.low %v549_v18, %v559_v3  ;;  %v376_v20 = vrot.slane %v375_v54, 4  ;;  %v386_v59 = vrot.slane %v385_v56, 4  ;;  %v572_v50 = vrot.slane %v570_v28, 5  ;;  %v6330_v54 = vld [vmem:[%s6024_s23 + $0xb4] sm:$0xf] }
  0x4b   : > { %v567_v42 = vor.u32 %v566_v26, %v563_v39  ;;  %v576_v52 = vrot.slane %v574_v37, 4  ;;  %v582_v13 = vrot.slane %v580_v32, 5  ;;  %v393_v57 = vshrl.u32 %v6309_v62, 16  ;;  %8723 = vst [vmem:[#allocation13_spill] sm:$0xff] %v6330_v54  ;;  %v6333_v37 = vld [vmem:[%s6024_s23 + $0xb8] sm:$0xf] }
  0x4c   : > { %5618 = vmatmul.mubr.msk.bf16.gmra.mxu1 %vm658_vm3, %v4912_v4  ;;  %v381_v27 = vsel %vm6068_vm4, %v376_v20, %v380_v0  ;;  %v391_v18 = vsel %vm6068_vm4, %v386_v59, %v390_v61  ;;  %v396_v56 = vshll.u32 %v6309_v62, 16  ;;  %v402_v45 = vshll.u32 %v6316_v55, 16  ;;  %v6338_v61 = vld [vmem:[%s6024_s23 + $0xbc] sm:$0x1] }
  0x4d   : > { %v4905_v26 = vcombine.low %v381_v27, %v391_v18  ;;  %v568_v39 = vrot.slane %v567_v42, 4  ;;  %v577_v28 = vor.u32 %v576_v52, %v572_v50  ;;  %v395_v3 = vrot.slane %v393_v57, 4 }
  0x4e   : > { %v398_v32 = vrot.slane %v396_v56, 5  ;;  %v404_v4 = vrot.slane %v402_v45, 5  ;;  %v406_v0 = vshrl.u32 %v6316_v55, 16  ;;  %v412_v20 = vshll.u32 %v6319_v49, 16 }
  0x4f   : > { %5605 = vmatprep.mubr.msk.bf16.mxu0 %vm658_vm3, %v4905_v26  ;;  %v573_v59 = vsel %vm6068_vm4, %v568_v39, %v572_v50  ;;  %v578_v27 = vrot.slane %v577_v28, 4  ;;  %v585_v52 = vshrl.u32 %v6330_v54, 16  ;;  %v588_v42 = vshll.u32 %v6330_v54, 16 }
  0x50   : > { %v399_v57 = vor.u32 %v398_v32, %v395_v3  ;;  %v408_v18 = vrot.slane %v406_v0, 4  ;;  %v414_v56 = vrot.slane %v412_v20, 5  ;;  %v594_v45 = vshll.u32 %v6333_v37, 16 }
  0x51   : > { %v583_v44 = vsel %vm6068_vm4, %v578_v27, %v582_v13  ;;  %v587_v16 = vrot.slane %v585_v52, 4  ;;  %v590_v26 = vrot.slane %v588_v42, 5  ;;  %v598_v38 = vshrl.u32 %v6333_v37, 16 }
  0x52   : > { %v4913_v50 = vcombine.low %v573_v59, %v583_v44  ;;  %v400_v39 = vrot.slane %v399_v57, 4  ;;  %v409_v28 = vor.u32 %v408_v18, %v404_v4  ;;  %v596_v47 = vrot.slane %v594_v45, 5  ;;  %v1166_v57 = vld [vmem:[%s6024_s23 + $0x18] sm:$0xe] }
  0x53   : > { %v591_v54 = vor.u32 %v590_v26, %v587_v16  ;;  %v600_v3 = vrot.slane %v598_v38, 4  ;;  %v604_v32 = vshll.u32 %v6338_v61, 16  ;;  %v4963_v13 = vrot.slane %v1164_v22, 9 }
  0x54   : > { %5621 = vmatprep.mubr.msk.bf16.mxu1 %vm658_vm3, %v4913_v50  ;;  %v405_v44 = vsel %vm6068_vm4, %v400_v39, %v404_v4  ;;  %v410_v20 = vrot.slane %v409_v28, 4  ;;  %v1217_v59 = vrot.slane %v6033_v6, 5  ;;  %v4932_v38 = vcombine.low %v6061_v29, %v6064_v30 }
  0x55   : > { %v592_v16 = vrot.slane %v591_v54, 4  ;;  %v601_v27 = vor.u32 %v600_v3, %v596_v47  ;;  %v606_v52 = vrot.slane %v604_v32, 5  ;;  %v4964_v42 = vrot.slane %v1165_v51, 9 }
  0x56   : > { %v415_v18 = vsel %vm6068_vm4, %v410_v20, %v414_v56  ;;  %v1218_v22 = vsel %vm6354_vm7, %v4963_v13, %v1217_v59  ;;  %v1219_v45 = vrot.slane %v1217_v59, 4  ;;  %v8726_v4 = vrot.slane %v6064_v30, 5 }
  0x57   : > { %v4906_v50 = vcombine.low %v405_v44, %v415_v18  ;;  %v597_v54 = vsel %vm6068_vm4, %v592_v16, %v596_v47  ;;  %v602_v39 = vrot.slane %v601_v27, 4  ;;  %v4931_v51 = vcombine.low %v6030_v5, %v6033_v6  ;;  %v1167_v27 = vld [vmem:[%s6024_s23 + $0x24] sm:$0xe] }
  0x58   : > { %v1226_v26 = vrot.slane %v8726_v4, 4  ;;  %v8727_v28 = vrot.slane %v6036_v7, 5  ;;  %v8728_v3 = vmov %v8726_v4  ;;  %v4933_v13 = vcombine.low %v6103_v8, %v6110_v21  ;;  %v1169_v4 = vld [vmem:[%s6024_s23 + $0x3c] sm:$0xe] }
  0x59   : > { %v1225_v32 = vsel %vm6354_vm7, %v4964_v42, %v8728_v3  ;;  %v4965_v44 = vrot.slane %v1166_v57, 9  ;;  %5606 = vmatmul.mubr.msk.bf16.gmra.mxu0 %vm658_vm3, %v4906_v50  ;;  %v607_v47 = vsel %vm6068_vm4, %v602_v39, %v606_v52  ;;  %v8729_v6 = vrot.slane %v6074_v41, 5  ;;  %v1168_v42 = vld [vmem:[%s6024_s23 + $0x30] sm:$0xe]  ;;  %v1170_v39 = vld [vmem:[%s6024_s23 + $0x48] sm:$0xe] }
  0x5a   : > { %v1221_v56 = vsel %vm6354_vm7, %v1219_v45, %v8727_v28  ;;  %v1231_v20 = vrot.slane %v6110_v21, 5  ;;  %v4914_v59 = vcombine.low %v597_v54, %v607_v47  ;;  %v1234_v16 = vrot.slane %v6116_v25, 5  ;;  %v1171_v47 = vld [vmem:[%s6024_s23 + $0x54] sm:$0xe]  ;;  %v6649_v21 = vld [vmem:[%s6024_s23 + $0x2c] sm:$0x1] }
  0x5b   : > { %v4980_v5 = vcombine.low %v1218_v22, %v1221_v56  ;;  %v1228_v7 = vsel %vm6354_vm7, %v1226_v26, %v8729_v6  ;;  %v1785_v52 = vsel %vm707_vm0, %v6161_v19, 0  ;;  %v1238_v18 = vrot.slane %v6155_v10, 5 }
  0x5c   : > { %v1232_v41 = vsel %vm6354_vm7, %v4965_v44, %v1231_v20  ;;  %v1233_v57 = vrot.slane %v1231_v20, 4  ;;  %5622 = vmatmul.mubr.msk.bf16.gmra.mxu1 %vm658_vm3, %v4914_v59  ;;  %v4981_v22 = vcombine.low %v1225_v32, %v1228_v7  ;;  %v2511_v25 = vsel %vm707_vm0, %v6129_v40, 0 }
  0x5d   : > { %5661 = vmatprep.mubr.msk.bf16.mxu0 %vm658_vm3, %v4980_v5  ;;  %v1245_v45 = vrot.slane %v6201_v9, 5  ;;  %5627 = vmatprep.mubr.msk.bf16.mxu1 %vm658_vm3, %v4931_v51  ;;  %v4966_v26 = vrot.slane %v1167_v27, 9  ;;  %v1241_v50 = vrot.slane %v6166_v24, 5  ;;  %v4967_v54 = vrot.slane %v1168_v42, 9  ;;  %v6421_v24 = vld [vmem:[%s8674_s1 + $0xc] sm:$0x3] }
  0x5e   : > { %v1235_v19 = vsel %vm6354_vm7, %v1233_v57, %v1234_v16  ;;  %v1240_v56 = vrot.slane %v1238_v18, 4  ;;  %v1248_v32 = vrot.slane %v6209_v33, 5  ;;  %v4968_v44 = vrot.slane %v1169_v4, 9 }
  0x5f   : > { %v4982_v28 = vcombine.low %v1232_v41, %v1235_v19  ;;  %v1247_v3 = vrot.slane %v1245_v45, 4  ;;  %v1252_v40 = vrot.slane %v6238_v23, 5  ;;  %v1276_v5 = vrot.slane %v6050_v15, 5 }
  0x60   : > { %v1255_v51 = vrot.slane %v6247_v48, 5  ;;  %v4969_v6 = vrot.slane %v1170_v39, 9  ;;  %v1259_v7 = vrot.slane %v6275_v17, 5  ;;  %v4934_v33 = vcombine.low %v6147_v1, %v6155_v10  ;;  %v1172_v1 = vld [vmem:[%s6024_s23 + $0x60] sm:$0xe] }
  0x61   : > { %5662 = vmatmul.mubr.msk.bf16.vlgmr.msra.gmra.mxu0 %vm658_vm3, %v4981_v22  ;;  %v1239_v20 = vsel %vm6354_vm7, %v4966_v26, %v1238_v18  ;;  %v1254_v59 = vrot.slane %v1252_v40, 4  ;;  %v1262_v16 = vrot.slane %v6281_v2, 5  ;;  %v1242_v48 = vsel %vm6354_vm7, %v1240_v56, %v1241_v50  ;;  %v6449_v22 = vld [vmem:[%s8674_s1 + $0xa] sm:$0x3]  ;;  %v6474_v50 = vld [vmem:[%s6024_s23 + $0x6c] sm:$0xe] }
  0x62   : > { %5728 = vmatpush3.bf16.msra.mxu0 %v2511_v25  ;;  %5665 = vmatprep.mubr.msk.bf16.mxu0 %vm658_vm3, %v4982_v28  ;;  %v1246_v27 = vsel %vm6354_vm7, %v4967_v54, %v1245_v45  ;;  %v1249_v42 = vsel %vm6354_vm7, %v1247_v3, %v1248_v32  ;;  %v1261_v41 = vrot.slane %v1259_v7, 4  ;;  %v6439_v10 = vsel %vm6354_vm7, %v4968_v44, %v1252_v40  ;;  %v1175_v39 = vld [vmem:[%s6024_s23 + $0x84] sm:$0xe]  ;;  %v6503_v44 = vld [vmem:[%s6024_s23 + $0x78] sm:$0xe] }
  0x63   : > { %v6443_v2 = vsel %vm6354_vm7, %v4969_v6, %v1259_v7  ;;  %v4970_v57 = vrot.slane %v1171_v47, 9  ;;  %v1266_v18 = vrot.slane %v6316_v55, 5  ;;  %5906 = vmatprep.subr.msk.bf16.mxu0 %vm707_vm0, %v6421_v24  ;;  %v6459_v25 = vsel %vm6354_vm7, %v1254_v59, %v1255_v51  ;;  %v1176_v40 = vld [vmem:[%s6024_s23 + $0x90] sm:$0xe] }
  0x64   : > { %5628 = vmatmul.mubr.msk.bf16.vlgmr.msra.gmra.mxu1 %vm658_vm3, %v4932_v38  ;;  %v6463_v45 = vsel %vm6354_vm7, %v1261_v41, %v1262_v16  ;;  %v1269_v4 = vrot.slane %v6319_v49, 5  ;;  %v1273_v19 = vrot.slane %v6047_v14, 5  ;;  %v4983_v29 = vcombine.low %v1239_v20, %v1242_v48  ;;  %v8730_v48 = vld [vmem:[#allocation3_spill] sm:$0xff] }
  0x65   : > { %5694 = vmatpush3.bf16.msra.mxu1 %v1785_v52  ;;  %5631 = vmatprep.mubr.msk.bf16.mxu1 %vm658_vm3, %v4933_v13  ;;  %v4935_v30 = vcombine.low %v6196_v60, %v6201_v9  ;;  %v1268_v38 = vrot.slane %v1266_v18, 4  ;;  %v4971_v26 = vrot.slane %v1172_v1, 9  ;;  %v4984_v49 = vcombine.low %v1246_v27, %v1249_v42  ;;  %v1177_v42 = vld [vmem:[%s6024_s23 + $0x9c] sm:$0xe] }
  0x66   : > { %v4936_v52 = vcombine.low %v6233_v11, %v6238_v23  ;;  %v4937_v8 = vcombine.low %v6266_v34, %v6275_v17  ;;  %5905 = vmatprep.subr.msk.bf16.mxu1 %vm707_vm0, %v6449_v22  ;;  %v4985_v60 = vcombine.low %v6439_v10, %v6459_v25  ;;  %v4986_v9 = vcombine.low %v6443_v2, %v6463_v45  ;;  %v8731_v10 = vld [vmem:[#allocation5_spill] sm:$0xff]  ;;  %v8732_v2 = vld [vmem:[#allocation4_spill] sm:$0xff] }
  0x67   : > { %v1275_v54 = vrot.slane %v1273_v19, 4  ;;  %v6493_v28 = vsel %vm6354_vm7, %v4970_v57, %v1266_v18  ;;  %v6497_v56 = vsel %vm6354_vm7, %v1268_v38, %v1269_v4  ;;  %v4972_v32 = vrot.slane %v6474_v50, 9  ;;  %v1178_v18 = vld [vmem:[%s6024_s23 + $0xa8] sm:$0xe]  ;;  %v8734_v38 = vld [vmem:[#allocation8_spill] sm:$0xff] }
  0x68   : > { %v6509_v47 = vsel %vm6354_vm7, %v4971_v26, %v1273_v19  ;;  %v1280_v51 = vrot.slane %v6089_v58, 5  ;;  %v1283_v6 = vrot.slane %v6097_v63, 5  ;;  %v4974_v59 = vrot.slane %v1175_v39, 9  ;;  %v8733_v19 = vld [vmem:[#allocation6_spill] sm:$0xff]  ;;  %v8735_v26 = vld [vmem:[#allocation7_spill] sm:$0xff] }
  0x69   : > { %5666 = vmatmul.mubr.msk.bf16.gmra.mxu0 %vm658_vm3, %v4983_v29  ;;  %v1294_v16 = vrot.slane %v6180_v43, 5  ;;  %v1297_v27 = vrot.slane %v8730_v48, 5  ;;  %v4987_v41 = vcombine.low %v6493_v28, %v6497_v56  ;;  %v6527_v63 = vsel %vm6354_vm7, %v1275_v54, %v1276_v5  ;;  %v8737_v48 = vld [vmem:[#allocation11_spill] sm:$0xff] }
  0x6a   : > { %5669 = vmatprep.mubr.msk.bf16.mxu0 %vm658_vm3, %v4984_v49  ;;  %v4973_v1 = vrot.slane %v6503_v44, 9  ;;  %v4975_v4 = vrot.slane %v1176_v40, 9  ;;  %v1301_v15 = vrot.slane %v8731_v10, 5  ;;  %v1282_v5 = vrot.slane %v1280_v51, 4  ;;  %v5077_v57 = vld [vmem:[%s6024_s23 + $0xc] sm:$0xf] }
  0x6b   : > { %v6536_v25 = vsel %vm6354_vm7, %v4974_v59, %v1294_v16  ;;  %v1296_v45 = vrot.slane %v1294_v16, 4  ;;  %v1304_v29 = vrot.slane %v8733_v19, 5  ;;  %v4976_v49 = vrot.slane %v1177_v42, 9  ;;  %v8736_v59 = vld [vmem:[#allocation9_spill] sm:$0xff]  ;;  %v8738_v42 = vld [vmem:[#allocation10_spill] sm:$0xff] }
  0x6c   : > { %5632 = vmatmul.mubr.msk.bf16.gmra.mxu1 %vm658_vm3, %v4934_v33  ;;  %v1287_v33 = vrot.slane %v6134_v46, 5  ;;  %v6550_v39 = vsel %vm6354_vm7, %v4975_v4, %v1301_v15  ;;  %v1303_v44 = vrot.slane %v1301_v15, 4  ;;  %v1308_v40 = vrot.slane %v8734_v38, 5  ;;  %v8739_v15 = vld [vmem:[#allocation12_spill] sm:$0xff] }
  0x6d   : > { %5635 = vmatprep.mubr.msk.bf16.mxu1 %vm658_vm3, %v4935_v30  ;;  %v6546_v54 = vsel %vm6354_vm7, %v1296_v45, %v1297_v27  ;;  %v1311_v16 = vrot.slane %v8736_v59, 5  ;;  %v4977_v45 = vrot.slane %v1178_v18, 9  ;;  %v1315_v4 = vrot.slane %v8737_v48, 5 }
  0x6e   : > { %v6560_v27 = vsel %vm6354_vm7, %v1303_v44, %v1304_v29  ;;  %v1318_v50 = vrot.slane %v8739_v15, 5  ;;  %v6570_v19 = vsel %vm6354_vm7, %v4976_v49, %v1308_v40  ;;  %v1310_v7 = vrot.slane %v1308_v40, 4  ;;  %v8740_v29 = vld [vmem:[#allocation13_spill] sm:$0xff]  ;;  %v8741_v15 = vld [vmem:[#allocation2_spill] sm:$0xff]  ;;  %v6585_v49 = vld [vmem:[%s6024_s23 + $0x10] sm:$0xf] }
  0x6f   : > { %v6577_v18 = vsel %vm6354_vm7, %v4972_v32, %v1280_v51  ;;  %v6582_v59 = vsel %vm6354_vm7, %v4977_v45, %v1315_v4  ;;  %v1317_v30 = vrot.slane %v1315_v4, 4  ;;  %v5080_v40 = vld [vmem:[%s6024_s23 + $0x18] sm:$0xf]  ;;  %v1289_v20 = vrot.slane %v1287_v33, 4 }
  0x70   : > { %v2029_v44 = vshrl.u32 %v5077_v57, 16  ;;  %v2032_v32 = vshll.u32 %v5077_v57, 16  ;;  %v4988_v51 = vcombine.low %v6509_v47, %v6527_v63  ;;  %v6600_v45 = vsel %vm6354_vm7, %v1282_v5, %v1283_v6  ;;  %v1179_v57 = vld [vmem:[%s6024_s23 + $0xb4] sm:$0xe]  ;;  %v6621_v47 = vld [vmem:[%s6024_s23 + $0x14] sm:$0x1] }
  0x71   : > { %5670 = vmatmul.mubr.msk.bf16.gmra.mxu0 %vm658_vm3, %v4985_v60  ;;  %v1290_v60 = vrot.slane %v8741_v15, 5  ;;  %v6615_v11 = vsel %vm6354_vm7, %v4973_v1, %v1287_v33  ;;  %v2038_v6 = vshll.u32 %v6585_v49, 16  ;;  %v5081_v63 = vld [vmem:[%s6024_s23 + $0x1c] sm:$0xf]  ;;  %v2042_v17 = vshrl.u32 %v6585_v49, 16 }
  0x72   : > { %5673 = vmatprep.mubr.msk.bf16.mxu0 %vm658_vm3, %v4986_v9  ;;  %v6590_v9 = vsel %vm6354_vm7, %v1310_v7, %v1311_v16  ;;  %v6606_v7 = vsel %vm6354_vm7, %v1317_v30, %v1318_v50  ;;  %v2031_v5 = vrot.slane %v2029_v44, 4  ;;  %v2034_v34 = vrot.slane %v2032_v32, 5  ;;  %v5083_v15 = vld [vmem:[%s6024_s23 + $0x24] sm:$0xf]  ;;  %v6634_v44 = vld [vmem:[%s6024_s23 + $0x28] sm:$0xf] }
  0x73   : > { %v2053_v50 = vshrl.u32 %v5080_v40, 16  ;;  %v1291_v1 = vsel %vm6354_vm7, %v1289_v20, %v1290_v60  ;;  %v4978_v33 = vrot.slane %v1179_v57, 9  ;;  %v6629_v30 = vrot.slane %v2038_v6, 5 }
  0x74   : > { %5636 = vmatmul.mubr.msk.bf16.gmra.mxu1 %vm658_vm3, %v4936_v52  ;;  %v1322_v52 = vrot.slane %v6333_v37, 5  ;;  %v2056_v16 = vshll.u32 %v5080_v40, 16  ;;  %v1325_v23 = vrot.slane %v6338_v61, 5  ;;  %v2044_v4 = vrot.slane %v2042_v17, 4 }
  0x75   : > { %5639 = vmatprep.mubr.msk.bf16.mxu1 %vm658_vm3, %v4937_v8  ;;  %v5082_v8 = vld [vmem:[%s6024_s23 + $0x20] sm:$0x1]  ;;  %v2055_v3 = vrot.slane %v2053_v50, 4  ;;  %v2062_v13 = vshll.u32 %v5081_v63, 16  ;;  %v2048_v20 = vshll.u32 %v6621_v47, 16  ;;  %v2066_v57 = vshrl.u32 %v5081_v63, 16 }
  0x76   : > { %v1324_v32 = vrot.slane %v1322_v52, 4  ;;  %v2058_v60 = vrot.slane %v2056_v16, 5  ;;  %v4989_v61 = vcombine.low %v6577_v18, %v6600_v45  ;;  %v4990_v40 = vcombine.low %v6615_v11, %v1291_v1 }
  0x77   : > { %v2035_v6 = vor.u32 %v2034_v34, %v2031_v5  ;;  %v6645_v17 = vrot.slane %v2062_v13, 5  ;;  %v2045_v28 = vor.u32 %v2044_v4, %v6629_v30  ;;  %v2072_v50 = vshll.u32 %v5082_v8, 16  ;;  %v6672_v5 = vld [vmem:[%s6024_s23 + $0x34] sm:$0xf] }
  0x78   : > { %v2059_v56 = vor.u32 %v2058_v60, %v2055_v3  ;;  %v6657_v18 = vsel %vm6354_vm7, %v4978_v33, %v1322_v52  ;;  %v2077_v13 = vshrl.u32 %v5083_v15, 16  ;;  %v2080_v45 = vshll.u32 %v5083_v15, 16  ;;  %v5086_v52 = vld [vmem:[%s6024_s23 + $0x30] sm:$0xf] }
  0x79   : > { %5674 = vmatmul.mubr.msk.bf16.gmra.mxu0 %vm658_vm3, %v4987_v41  ;;  %v2068_v41 = vrot.slane %v2066_v57, 4  ;;  %v2086_v11 = vshll.u32 %v6634_v44, 16  ;;  %v8743_v3 = vcombine.low %v6043_v12, %v6047_v14  ;;  %v6666_v4 = vsel %vm6354_vm7, %v1324_v32, %v1325_v23 }
  0x7a   : > { %5677 = vmatprep.mubr.msk.bf16.mxu0 %vm658_vm3, %v4988_v51  ;;  %v8742_v51 = vcombine.low %v6309_v62, %v6316_v55  ;;  %v2050_v62 = vrot.slane %v2048_v20, 5  ;;  %v2090_v63 = vshrl.u32 %v6634_v44, 16  ;;  %v2036_v34 = vrot.slane %v2035_v6, 4 }
  0x7b   : > { %v2069_v55 = vor.u32 %v2068_v41, %v6645_v17  ;;  %v2079_v8 = vrot.slane %v2077_v13, 4  ;;  %v2082_v1 = vrot.slane %v2080_v45, 5  ;;  %v6674_v33 = vrot.slane %v2086_v11, 5  ;;  %v6680_v41 = vld [vmem:[%s6024_s23 + $0x38] sm:$0x1] }
  0x7c   : > { %5640 = vmatmul.mubr.msk.bf16.gmra.mxu1 %vm658_vm3, %v8742_v51  ;;  %v2046_v12 = vrot.slane %v2045_v28, 4  ;;  %v2060_v14 = vrot.slane %v2059_v56, 4  ;;  %v2074_v16 = vrot.slane %v2072_v50, 5  ;;  %v2092_v23 = vrot.slane %v2090_v63, 4  ;;  %v5089_v13 = vld [vmem:[%s6024_s23 + $0x3c] sm:$0xf] }
  0x7d   : > { %5643 = vmatprep.mubr.msk.bf16.mxu1 %vm658_vm3, %v8743_v3  ;;  %v2070_v15 = vrot.slane %v2069_v55, 4  ;;  %v2096_v32 = vshll.u32 %v6649_v21, 16  ;;  %v2101_v20 = vshrl.u32 %v5086_v52, 16  ;;  %v2104_v60 = vshll.u32 %v5086_v52, 16 }
  0x7e   : > { %v2083_v57 = vor.u32 %v2082_v1, %v2079_v8  ;;  %v2093_v6 = vor.u32 %v2092_v23, %v6674_v33  ;;  %v2110_v28 = vshll.u32 %v6672_v5, 16  ;;  %v2114_v56 = vshrl.u32 %v6672_v5, 16  ;;  %v5092_v8 = vld [vmem:[%s6024_s23 + $0x48] sm:$0xf]  ;;  %v6707_v1 = vld [vmem:[%s6024_s23 + $0x4c] sm:$0xf] }
  0x7f   : > { %v2103_v50 = vrot.slane %v2101_v20, 4  ;;  %v2106_v51 = vrot.slane %v2104_v60, 5  ;;  %v8744_v3 = vcombine.low %v6085_v53, %v6089_v58  ;;  %v4995_v55 = vcombine.low %v6657_v18, %v6666_v4 }
  0x80   : > { %v6686_v45 = vrot.slane %v2110_v28, 5  ;;  %v2116_v11 = vrot.slane %v2114_v56, 4  ;;  %v2051_v63 = vsel %vm6068_vm4, %v2046_v12, %v2050_v62  ;;  %v2065_v52 = vsel %vm6068_vm4, %v2060_v14, %v6645_v17 }
  0x81   : > { %5678 = vmatmul.mubr.msk.bf16.gmra.mxu0 %vm658_vm3, %v4989_v61  ;;  %v6689_v61 = vld [vmem:[%s6024_s23 + $0x40] sm:$0xf]  ;;  %v8745_v53 = vcombine.low %v6123_v35, %v6134_v46  ;;  %v2075_v58 = vsel %vm6068_vm4, %v2070_v15, %v2074_v16  ;;  %v2084_v23 = vrot.slane %v2083_v57, 4  ;;  %v2107_v20 = vor.u32 %v2106_v51, %v2103_v50  ;;  %v6741_v50 = vld [vmem:[%s6024_s23 + $0x44] sm:$0x1] }
  0x82   : > { %5681 = vmatprep.mubr.msk.bf16.mxu0 %vm658_vm3, %v4990_v40  ;;  %v2041_v40 = vsel %vm6068_vm4, %v2036_v34, %v6629_v30  ;;  %v2094_v30 = vrot.slane %v2093_v6, 4  ;;  %v2098_v34 = vrot.slane %v2096_v32, 5  ;;  %v2120_v62 = vshll.u32 %v6680_v41, 16  ;;  %v5095_v51 = vld [vmem:[%s6024_s23 + $0x54] sm:$0xf] }
  0x83   : > { %v2125_v12 = vshrl.u32 %v5089_v13, 16  ;;  %v2128_v17 = vshll.u32 %v5089_v13, 16  ;;  %v6718_v14 = vsel %vm707_vm0, %v6449_v22, 0  ;;  %v2117_v35 = vor.u32 %v2116_v11, %v6686_v45 }
  0x84   : > { %5644 = vmatmul.mubr.msk.bf16.gmra.mxu1 %vm658_vm3, %v8744_v3  ;;  %v2134_v46 = vshll.u32 %v6689_v61, 16  ;;  %v2138_v16 = vshrl.u32 %v6689_v61, 16  ;;  %v6723_v15 = vcombine.low %v2041_v40, %v2051_v63  ;;  %v6727_v32 = vsel %vm707_vm0, %v6421_v24, 0  ;;  %v6750_v40 = vld [vmem:[%s6024_s23 + $0x58] sm:$0xf] }
  0x85   : > { %5647 = vmatprep.mubr.msk.bf16.mxu1 %vm658_vm3, %v8745_v53  ;;  %v2149_v60 = vshrl.u32 %v5092_v8, 16  ;;  %v2152_v57 = vshll.u32 %v5092_v8, 16  ;;  %v8746_v6 = vcombine.low %v6536_v25, %v6546_v54  ;;  %v6733_v22 = vcombine.low %v2065_v52, %v2075_v58  ;;  %v6755_v8 = vld [vmem:[%s6024_s23 + $0x50] sm:$0x1] }
  0x86   : > { %v2089_v28 = vsel %vm6068_vm4, %v2084_v23, %v6674_v33  ;;  %v2099_v56 = vsel %vm6068_vm4, %v2094_v30, %v2098_v34  ;;  %v2158_v24 = vshll.u32 %v6707_v1, 16  ;;  %v8747_v25 = vcombine.low %v6550_v39, %v6560_v27  ;;  %v5098_v34 = vld [vmem:[%s6024_s23 + $0x60] sm:$0xf] }
  0x87   : > { %v2108_v54 = vrot.slane %v2107_v20, 4  ;;  %v2122_v13 = vrot.slane %v2120_v62, 5  ;;  %v2127_v11 = vrot.slane %v2125_v12, 4  ;;  %v2130_v3 = vrot.slane %v2128_v17, 5 }
  0x88   : > { %v2118_v33 = vrot.slane %v2117_v35, 4  ;;  %v6752_v63 = vrot.slane %v2134_v46, 5  ;;  %v2140_v52 = vrot.slane %v2138_v16, 4  ;;  %v2162_v53 = vshrl.u32 %v6707_v1, 16  ;;  %v6772_v35 = vld [vmem:[%s6024_s23 + $0x5c] sm:$0x1] }
  0x89   : > { %5682 = vmatmul.mubr.msk.bf16.gmra.mxu0 %vm658_vm3, %v8746_v6  ;;  %v8748_v39 = vcombine.low %v6173_v36, %v6180_v43  ;;  %v2151_v27 = vrot.slane %v2149_v60, 4  ;;  %v2154_v58 = vrot.slane %v2152_v57, 5  ;;  %v2173_v23 = vshrl.u32 %v5095_v51, 16 }
  0x8a   : > { %5685 = vmatprep.mubr.msk.bf16.mxu0 %vm658_vm3, %v8747_v25  ;;  %v2176_v30 = vshll.u32 %v5095_v51, 16  ;;  %v8749_v20 = vcombine.low %v8732_v2, %v8731_v10  ;;  %v6767_v62 = vcombine.low %v2089_v28, %v2099_v56  ;;  %v6769_v12 = vrot.slane %v2158_v24, 5  ;;  %v6785_v28 = vld [vmem:[%s6024_s23 + $0x64] sm:$0xf] }
  0x8b   : > { %v2164_v17 = vrot.slane %v2162_v53, 4  ;;  %v2182_v36 = vshll.u32 %v6750_v40, 16  ;;  %v2144_v43 = vshll.u32 %v6741_v50, 16  ;;  %v2175_v46 = vrot.slane %v2173_v23, 4 }
  0x8c   : > { %5648 = vmatmul.mubr.msk.bf16.gmra.mxu1 %vm658_vm3, %v8748_v39  ;;  %v2178_v16 = vrot.slane %v2176_v30, 5  ;;  %v2186_v60 = vshrl.u32 %v6750_v40, 16  ;;  %v2113_v10 = vsel %vm6068_vm4, %v2108_v54, %v6686_v45  ;;  %v2123_v2 = vsel %vm6068_vm4, %v2118_v33, %v2122_v13  ;;  %v6807_v30 = vld [vmem:[%s6024_s23 + $0x68] sm:$0x1] }
  0x8d   : > { %5651 = vmatprep.mubr.msk.bf16.mxu1 %vm658_vm3, %v8749_v20  ;;  %v2131_v57 = vor.u32 %v2130_v3, %v2127_v11  ;;  %v6782_v6 = vrot.slane %v2182_v36, 5  ;;  %v2141_v56 = vor.u32 %v2140_v52, %v6752_v63  ;;  %v2155_v24 = vor.u32 %v2154_v58, %v2151_v27  ;;  %v5101_v3 = vld [vmem:[%s6024_s23 + $0x6c] sm:$0xf]  ;;  %v6804_v27 = vld [vmem:[%s6024_s23 + $0x70] sm:$0xf] }
  0x8e   : > { %v2168_v51 = vshll.u32 %v6755_v8, 16  ;;  %v2188_v25 = vrot.slane %v2186_v60, 4  ;;  %v8750_v53 = vcombine.low %v6570_v19, %v6590_v9  ;;  %v2165_v45 = vor.u32 %v2164_v17, %v6769_v12 }
  0x8f   : > { %v2179_v54 = vor.u32 %v2178_v16, %v2175_v46  ;;  %v2197_v13 = vshrl.u32 %v5098_v34, 16  ;;  %v2200_v11 = vshll.u32 %v5098_v34, 16  ;;  %v8751_v33 = vcombine.low %v6582_v59, %v6606_v7  ;;  %v5104_v16 = vld [vmem:[%s6024_s23 + $0x78] sm:$0xf] }
  0x90   : > { %v2189_v52 = vor.u32 %v2188_v25, %v6782_v6  ;;  %v2192_v39 = vshll.u32 %v6772_v35, 16  ;;  %v2206_v19 = vshll.u32 %v6785_v28, 16  ;;  %v2210_v9 = vshrl.u32 %v6785_v28, 16 }
  0x91   : > { %5686 = vmatmul.mubr.msk.bf16.gmra.mxu0 %vm658_vm3, %v8750_v53  ;;  %v2132_v58 = vrot.slane %v2131_v57, 4  ;;  %v2146_v23 = vrot.slane %v2144_v43, 5  ;;  %v2199_v34 = vrot.slane %v2197_v13, 4  ;;  %v2202_v20 = vrot.slane %v2200_v11, 5 }
  0x92   : > { %5689 = vmatprep.mubr.msk.bf16.mxu0 %vm658_vm3, %v8751_v33  ;;  %v8752_v59 = vcombine.low %v8735_v26, %v8734_v38  ;;  %v6813_v7 = vcombine.low %v2113_v10, %v2123_v2  ;;  %v2142_v17 = vrot.slane %v2141_v56, 4  ;;  %v2156_v36 = vrot.slane %v2155_v24, 4  ;;  %v6823_v2 = vld [vmem:[%s6024_s23 + $0x7c] sm:$0xf] }
  0x93   : > { %v6815_v46 = vrot.slane %v2206_v19, 5  ;;  %v8753_v43 = vcombine.low %v8738_v42, %v8737_v48  ;;  %v2166_v60 = vrot.slane %v2165_v45, 4  ;;  %v2170_v57 = vrot.slane %v2168_v51, 5  ;;  %8754 = vst [vmem:[#allocation3_spill] sm:$0xff] %v6823_v2  ;;  %v5107_v19 = vld [vmem:[%s6024_s23 + $0x84] sm:$0xf] }
  0x94   : > { %5652 = vmatmul.mubr.msk.bf16.gmra.mxu1 %vm658_vm3, %v8752_v59  ;;  %v2180_v25 = vrot.slane %v2179_v54, 4  ;;  %v2212_v38 = vrot.slane %v2210_v9, 4  ;;  %v2190_v26 = vrot.slane %v2189_v52, 4  ;;  %v2194_v53 = vrot.slane %v2192_v39, 5 }
  0x95   : > { %5655 = vmatprep.mubr.msk.bf16.mxu1 %vm658_vm3, %v8753_v43  ;;  %v2203_v13 = vor.u32 %v2202_v20, %v2199_v34  ;;  %v2221_v10 = vshrl.u32 %v5101_v3, 16  ;;  %v2137_v56 = vsel %vm6068_vm4, %v2132_v58, %v6752_v63  ;;  %v2224_v24 = vshll.u32 %v5101_v3, 16  ;;  %v5934_v63 = vld [vmem:[%s6024_s23 + $0xc] sm:$0xff]   ;;  %v6857_v34 = vld [vmem:[%s6024_s23 + $0x88] sm:$0xf] }
  0x96   : > { %v2230_v48 = vshll.u32 %v6804_v27, 16  ;;  %v2234_v42 = vshrl.u32 %v6804_v27, 16  ;;  %v2147_v51 = vsel %vm6068_vm4, %v2142_v17, %v2146_v23  ;;  %v2161_v45 = vsel %vm6068_vm4, %v2156_v36, %v6769_v12  ;;  %8755 = vst [vmem:[#allocation5_spill] sm:$0xff] %v6857_v34  ;;  %v6866_v36 = vld [vmem:[%s6024_s23 + $0x74] sm:$0x1] }
  0x97   : > { %v2213_v54 = vor.u32 %v2212_v38, %v6815_v46  ;;  %v2216_v11 = vshll.u32 %v6807_v30, 16  ;;  %v2171_v3 = vsel %vm6068_vm4, %v2166_v60, %v2170_v57  ;;  %v2185_v33 = vsel %vm6068_vm4, %v2180_v25, %v6782_v6  ;;  %8757 = vst [vmem:[#allocation4_spill] sm:$0xff] %v6866_v36  ;;  %v6876_v38 = vld [vmem:[%s6024_s23 + $0x80] sm:$0x1] }
  0x98   : > { %v2245_v52 = vshrl.u32 %v5104_v16, 16  ;;  %v2248_v12 = vshll.u32 %v5104_v16, 16  ;;  %v2195_v18 = vsel %vm6068_vm4, %v2190_v26, %v2194_v53  ;;  %v2204_v4 = vrot.slane %v2203_v13, 4  ;;  %8758 = vst [vmem:[#allocation6_spill] sm:$0xff] %v6876_v38  ;;  %v6879_v26 = vld [vmem:[%s6024_s23 + $0x8c] sm:$0x1] }
  0x99   : > { %5690 = vmatmul.mubr.msk.bf16.gmra.mxu0 %vm658_vm3, %v4995_v55  ;;  %v2223_v55 = vrot.slane %v2221_v10, 4  ;;  %v2254_v39 = vshll.u32 %v6823_v2, 16  ;;  %v2226_v9 = vrot.slane %v2224_v24, 5  ;;  %v6853_v58 = vrot.slane %v2230_v48, 5  ;;  %8759 = vst [vmem:[#allocation8_spill] sm:$0xff] %v6879_v26  ;;  %v5935_v10 = vld [vmem:[%s6024_s23 + $0x18] sm:$0xff]  }
  0x9a   : > { %5729 = vmatprep.mubr.msk.bf16.mxu0 %vm658_vm3, %v6723_v15  ;;  %v2236_v23 = vrot.slane %v2234_v42, 4  ;;  %v2258_v6 = vshrl.u32 %v6823_v2, 16  ;;  %v8756_v15 = vcombine.low %v8740_v29, %v6333_v37  ;;  %v6863_v20 = vcombine.low %v2137_v56, %v2147_v51  ;;  %v5110_v51 = vld [vmem:[%s6024_s23 + $0x90] sm:$0xf] }
  0x9b   : > { %v2214_v59 = vrot.slane %v2213_v54, 4  ;;  %v2218_v17 = vrot.slane %v2216_v11, 5  ;;  %v2247_v16 = vrot.slane %v2245_v52, 4  ;;  %v2250_v43 = vrot.slane %v2248_v12, 5 }
  0x9c   : > { %5656 = vmatmul.mubr.msk.bf16.gmra.mxu1 %vm658_vm3, %v8756_v15  ;;  %v6869_v60 = vrot.slane %v2254_v39, 5  ;;  %v2260_v57 = vrot.slane %v2258_v6, 4  ;;  %v2269_v25 = vshrl.u32 %v5107_v19, 16  ;;  %v6871_v37 = vcombine.low %v2161_v45, %v2171_v3  ;;  %v6890_v45 = vld [vmem:[%s6024_s23 + $0x94] sm:$0xf] }
  0x9d   : > { %5695 = vmatprep.mubr.msk.bf16.mxu1 %vm658_vm3, %v5934_v63  ;;  %v6873_v29 = vcombine.low %v2185_v33, %v2195_v18  ;;  %v2272_v53 = vshll.u32 %v5107_v19, 16  ;;  %v2278_v13 = vshll.u32 %v6857_v34, 16  ;;  %v2209_v56 = vsel %vm6068_vm4, %v2204_v4, %v6815_v46  ;;  %8760 = vst [vmem:[#allocation7_spill] sm:$0xff] %v6890_v45  ;;  %v6898_v33 = vld [vmem:[%s8674_s1 + $0x10] sm:$0x3]  ;;  %v5936_v46 = vld [vmem:[%s6024_s23 + $0x24] sm:$0xff]  }
  0x9e   : > { %v2227_v24 = vor.u32 %v2226_v9, %v2223_v55  ;;  %v2237_v48 = vor.u32 %v2236_v23, %v6853_v58  ;;  %v2240_v42 = vshll.u32 %v6866_v36, 16  ;;  %v2271_v54 = vrot.slane %v2269_v25, 4  ;;  %8761 = vst [vmem:[#allocation9_spill] sm:$0xff] %v6898_v33 }
  0x9f   : > { %v2274_v11 = vrot.slane %v2272_v53, 5  ;;  %v6892_v63 = vrot.slane %v2278_v13, 5  ;;  %v2282_v3 = vshrl.u32 %v6857_v34, 16  ;;  %v2219_v52 = vsel %vm6068_vm4, %v2214_v59, %v2218_v17 }
  0xa0   : > { %v2251_v12 = vor.u32 %v2250_v43, %v2247_v16  ;;  %v2261_v18 = vor.u32 %v2260_v57, %v6869_v60  ;;  %v2264_v4 = vshll.u32 %v6876_v38, 16  ;;  %v2293_v19 = vshrl.u32 %v5110_v51, 16  ;;  %v6932_v57 = vld [vmem:[%s6024_s23 + $0xa0] sm:$0xf] }
  0xa1   : > { %5730 = vmatmul.mubr.msk.bf16.vlgmr.msra.gmra.mxu0 %vm658_vm3, %v6733_v22  ;;  %v2275_v55 = vor.u32 %v2274_v11, %v2271_v54  ;;  %v2284_v39 = vrot.slane %v2282_v3, 4  ;;  %v2296_v9 = vshll.u32 %v5110_v51, 16  ;;  %v5113_v22 = vld [vmem:[%s6024_s23 + $0x9c] sm:$0xf]  ;;  %v6911_v23 = vrot.slane %v2227_v24, 4  ;;  %8763 = vst [vmem:[#allocation10_spill] sm:$0xff] %v6932_v57 }
  0xa2   : > { %5796 = vmatpush3.bf16.msra.mxu0 %v6727_v32  ;;  %5733 = vmatprep.mubr.msk.bf16.mxu0 %vm658_vm3, %v6767_v62  ;;  %v6913_v6 = vrot.slane %v2240_v42, 5  ;;  %v2288_v15 = vshll.u32 %v6879_v26, 16  ;;  %v2302_v59 = vshll.u32 %v6890_v45, 16  ;;  %v6920_v32 = vld [vmem:[%s8674_s1 + $0xe] sm:$0x3]  ;;  %v6925_v62 = vcombine.low %v2209_v56, %v2219_v52 }
  0xa3   : > { %8762 = vst [vmem:[#allocation11_spill] sm:$0xff] %v6920_v32  ;;  %5908 = vmatprep.subr.msk.bf16.mxu0 %vm707_vm0, %v6898_v33  ;;  %v6927_v17 = vrot.slane %v2237_v48, 4  ;;  %v2285_v16 = vor.u32 %v2284_v39, %v6892_v63  ;;  %v2306_v43 = vshrl.u32 %v6890_v45, 16  ;;  %v6936_v25 = vrot.slane %v2251_v12, 4  ;;  %v6945_v56 = vld [vmem:[%s6024_s23 + $0x98] sm:$0x1] }
  0xa4   : > { %5696 = vmatmul.mubr.msk.bf16.vlgmr.msra.gmra.mxu1 %vm658_vm3, %v5935_v10  ;;  %v6938_v53 = vrot.slane %v2261_v18, 4  ;;  %v6940_v13 = vrot.slane %v2264_v4, 5  ;;  %v6942_v10 = vrot.slane %v2275_v55, 4  ;;  %8764 = vst [vmem:[#allocation12_spill] sm:$0xff] %v6945_v56  ;;  %v2295_v24 = vrot.slane %v2293_v19, 4  ;;  %v5938_v19 = vld [vmem:[%s6024_s23 + $0x3c] sm:$0xff]  }
  0xa5   : > { %5762 = vmatpush3.bf16.msra.mxu1 %v6718_v14  ;;  %5699 = vmatprep.mubr.msk.bf16.mxu1 %vm658_vm3, %v5936_v46  ;;  %v2298_v48 = vrot.slane %v2296_v9, 5  ;;  %v2317_v42 = vshrl.u32 %v5113_v22, 16  ;;  %v2320_v51 = vshll.u32 %v5113_v22, 16  ;;  %v5937_v14 = vld [vmem:[%s6024_s23 + $0x30] sm:$0xff]   ;;  %v6954_v11 = vrot.slane %v2288_v15, 5 }
  0xa6   : > { %5907 = vmatprep.subr.msk.bf16.mxu1 %vm707_vm0, %v6920_v32  ;;  %v6956_v3 = vrot.slane %v2302_v59, 5  ;;  %v2326_v46 = vshll.u32 %v6932_v57, 16  ;;  %v5116_v52 = vld [vmem:[%s6024_s23 + $0xa8] sm:$0xf]  ;;  %v6960_v12 = vrot.slane %v2285_v16, 4  ;;  %v2308_v18 = vrot.slane %v2306_v43, 4 }
  0xa7   : > { %v2312_v4 = vshll.u32 %v6945_v56, 16  ;;  %v2330_v55 = vshrl.u32 %v6932_v57, 16  ;;  %v6965_v39 = vld [vmem:[%s6024_s23 + $0xac] sm:$0xf]  ;;  %v2299_v59 = vor.u32 %v2298_v48, %v2295_v24  ;;  %v6989_v16 = vld [vmem:[%s6024_s23 + $0xa4] sm:$0x1] }
  0xa8   : > { %8765 = vst [vmem:[#allocation13_spill] sm:$0xff] %v6965_v39  ;;  %8766 = vst [vmem:[#allocation2_spill] sm:$0xff] %v6989_v16  ;;  %v2319_v43 = vrot.slane %v2317_v42, 4  ;;  %v2322_v22 = vrot.slane %v2320_v51, 5  ;;  %v2341_v54 = vshrl.u32 %v5116_v52, 16  ;;  %v6991_v9 = vrot.slane %v2326_v46, 5 }
  0xa9   : > { %5734 = vmatmul.mubr.msk.bf16.gmra.mxu0 %vm658_vm3, %v6813_v7  ;;  %v2332_v32 = vrot.slane %v2330_v55, 4  ;;  %v2344_v15 = vshll.u32 %v5116_v52, 16  ;;  %v2350_v33 = vshll.u32 %v6965_v39, 16  ;;  %v5119_v57 = vld [vmem:[%s6024_s23 + $0xb4] sm:$0xf]  ;;  %v2309_v24 = vor.u32 %v2308_v18, %v6956_v3 }
  0xaa   : > { %5737 = vmatprep.mubr.msk.bf16.mxu0 %vm658_vm3, %v6863_v20  ;;  %v2291_v20 = vsel %vm6068_vm4, %v6960_v12, %v6954_v11  ;;  %v7001_v48 = vrot.slane %v2312_v4, 5  ;;  %v7004_v42 = vld [vmem:[%s6024_s23 + $0xb0] sm:$0x1]  ;;  %v2343_v51 = vrot.slane %v2341_v54, 4  ;;  %v7007_v46 = vld [vmem:[%s6024_s23 + $0xb8] sm:$0xf]  ;;  %v2323_v18 = vor.u32 %v2322_v22, %v2319_v43 }
  0xab   : > { %8767 = vst [vmem:[#allocation14_spill] sm:$0xff] %v7004_v42  ;;  %8768 = vst [vmem:[#allocation15_spill] sm:$0xff] %v7007_v46  ;;  %v2346_v52 = vrot.slane %v2344_v15, 5  ;;  %v7011_v55 = vrot.slane %v2350_v33, 5  ;;  %v2354_v11 = vshrl.u32 %v6965_v39, 16  ;;  %v7014_v12 = vrot.slane %v2299_v59, 4 }
  0xac   : > { %5700 = vmatmul.mubr.msk.bf16.gmra.mxu1 %vm658_vm3, %v5937_v14  ;;  %v2336_v14 = vshll.u32 %v6989_v16, 16  ;;  %v7017_v4 = vld [vmem:[%s6024_s23 + $0xbc] sm:$0x1]  ;;  %v2365_v54 = vshrl.u32 %v5119_v57, 16  ;;  %v2368_v7 = vshll.u32 %v5119_v57, 16  ;;  %v2333_v56 = vor.u32 %v2332_v32, %v6991_v9  ;;  %v5939_v16 = vld [vmem:[%s6024_s23 + $0x48] sm:$0xff]  }
  0xad   : > { %5703 = vmatprep.mubr.msk.bf16.mxu1 %vm658_vm3, %v5938_v19  ;;  %v2356_v45 = vrot.slane %v2354_v11, 4  ;;  %v2360_v19 = vshll.u32 %v7004_v42, 16  ;;  %v2374_v15 = vshll.u32 %v7007_v46, 16  ;;  %v5122_v33 = vld [vmem:[%s6024_s23 + $0xc0] sm:$0xf]  ;;  %v2347_v26 = vor.u32 %v2346_v52, %v2343_v51  ;;  %v5940_v57 = vld [vmem:[%s6024_s23 + $0x54] sm:$0xff]  }
  0xae   : > { %v2367_v39 = vrot.slane %v2365_v54, 4  ;;  %v2370_v34 = vrot.slane %v2368_v7, 5  ;;  %v2378_v59 = vshrl.u32 %v7007_v46, 16  ;;  %v7026_v22 = vld [vmem:[%s6024_s23 + $0xc4] sm:$0xf]  ;;  %v2310_v43 = vrot.slane %v2309_v24, 4 }
  0xaf   : > { %v2338_v32 = vrot.slane %v2336_v14, 5  ;;  %v2357_v11 = vor.u32 %v2356_v45, %v7011_v55  ;;  %v2376_v42 = vrot.slane %v2374_v15, 5  ;;  %v2384_v7 = vshll.u32 %v7017_v4, 16  ;;  %v7038_v45 = vld [vmem:[%s6024_s23 + $0xc8] sm:$0x1] }
  0xb0   : > { %v2371_v51 = vor.u32 %v2370_v34, %v2367_v39  ;;  %v2380_v52 = vrot.slane %v2378_v59, 4  ;;  %v2389_v54 = vshrl.u32 %v5122_v33, 16  ;;  %v2324_v46 = vrot.slane %v2323_v18, 4 }
  0xb1   : > { %5738 = vmatmul.mubr.msk.bf16.gmra.mxu0 %vm658_vm3, %v6871_v37  ;;  %v2334_v38 = vrot.slane %v2333_v56, 4  ;;  %v2392_v2 = vshll.u32 %v5122_v33, 16  ;;  %v2398_v37 = vshll.u32 %v7026_v22, 16  ;;  %v2348_v24 = vrot.slane %v2347_v26, 4 }
  0xb2   : > { %5741 = vmatprep.mubr.msk.bf16.mxu0 %vm658_vm3, %v6873_v29  ;;  %v2362_v14 = vrot.slane %v2360_v19, 5  ;;  %v2381_v36 = vor.u32 %v2380_v52, %v2376_v42  ;;  %v2391_v15 = vrot.slane %v2389_v54, 4  ;;  %v2358_v34 = vrot.slane %v2357_v11, 4 }
  0xb3   : > { %v2394_v29 = vrot.slane %v2392_v2, 5  ;;  %v7041_v39 = vrot.slane %v2398_v37, 5  ;;  %v2402_v56 = vshrl.u32 %v7026_v22, 16  ;;  %v8769_v26 = vsel %vm6068_vm4, %v6927_v17, %v6913_v6 }
  0xb4   : > { %5704 = vmatmul.mubr.msk.bf16.gmra.mxu1 %vm658_vm3, %v5939_v16  ;;  %v8770_v16 = vsel %vm6068_vm4, %v6911_v23, %v6853_v58  ;;  %v2372_v19 = vrot.slane %v2371_v51, 4  ;;  %v2382_v33 = vrot.slane %v2381_v36, 4  ;;  %v2386_v2 = vrot.slane %v2384_v7, 5  ;;  %v5941_v23 = vld [vmem:[%s6024_s23 + $0x60] sm:$0xff]  }
  0xb5   : > { %5707 = vmatprep.mubr.msk.bf16.mxu1 %vm658_vm3, %v5940_v57  ;;  %v5134_v18 = vcombine.low %v8770_v16, %v8769_v26  ;;  %v8771_v59 = vsel %vm6068_vm4, %v6938_v53, %v6940_v13  ;;  %v8772_v6 = vsel %vm6068_vm4, %v6936_v25, %v6869_v60  ;;  %v2395_v57 = vor.u32 %v2394_v29, %v2391_v15  ;;  %v5160_v13 = vld [vmem:[%s6024_s23 + $0x24] sm:$0xe]  ;;  %v5163_v26 = vld [vmem:[%s6024_s23 + $0x48] sm:$0xe] }
  0xb6   : > { %v5135_v17 = vcombine.low %v8772_v6, %v8771_v59  ;;  %v2404_v11 = vrot.slane %v2402_v56, 4  ;;  %v2408_v58 = vshll.u32 %v7038_v45, 16  ;;  %v8773_v36 = vsel %vm6068_vm4, %v6942_v10, %v6892_v63  ;;  %v5942_v63 = vld [vmem:[%s6024_s23 + $0x6c] sm:$0xff]   ;;  %v5164_v6 = vld [vmem:[%s6024_s23 + $0x54] sm:$0xe] }
  0xb7   : > { %v5136_v51 = vcombine.low %v8773_v36, %v2291_v20  ;;  %v2305_v53 = vsel %vm6068_vm4, %v7014_v12, %v6956_v3  ;;  %v2315_v60 = vsel %vm6068_vm4, %v2310_v43, %v7001_v48  ;;  %v2329_v25 = vsel %vm6068_vm4, %v2324_v46, %v6991_v9  ;;  %v7094_v12 = vld [vmem:[%s6024_s23 + $0xc] sm:$0xe] }
  0xb8   : > { %v2339_v10 = vsel %vm6068_vm4, %v2334_v38, %v2338_v32  ;;  %v2353_v3 = vsel %vm6068_vm4, %v2348_v24, %v7011_v55  ;;  %v2363_v20 = vsel %vm6068_vm4, %v2358_v34, %v2362_v14  ;;  %v2405_v48 = vor.u32 %v2404_v11, %v7041_v39  ;;  %v5161_v55 = vld [vmem:[%s6024_s23 + $0x30] sm:$0xe]  ;;  %v5162_v14 = vld [vmem:[%s6024_s23 + $0x3c] sm:$0xe] }
  0xb9   : > { %5742 = vmatmul.mubr.msk.bf16.gmra.mxu0 %vm658_vm3, %v6925_v62  ;;  %v2377_v62 = vsel %vm6068_vm4, %v2372_v19, %v2376_v42  ;;  %v2387_v38 = vsel %vm6068_vm4, %v2382_v33, %v2386_v2  ;;  %v7101_v9 = vrot.slane %v2395_v57, 4  ;;  %v2772_v46 = vrot.slane %v6585_v49, 5  ;;  %v5943_v57 = vld [vmem:[%s6024_s23 + $0x78] sm:$0xff]  }
  0xba   : > { %5745 = vmatprep.mubr.msk.bf16.mxu0 %vm658_vm3, %v5134_v18  ;;  %v7105_v43 = vcombine.low %v2305_v53, %v2315_v60  ;;  %v7107_v32 = vrot.slane %v2405_v48, 4  ;;  %v7109_v52 = vrot.slane %v2408_v58, 5  ;;  %v5176_v7 = vrot.slane %v5160_v13, 9  ;;  %v5944_v53 = vld [vmem:[%s6024_s23 + $0x84] sm:$0xff]   ;;  %v5165_v13 = vld [vmem:[%s6024_s23 + $0x60] sm:$0xe] }
  0xbb   : > { %v7112_v54 = vcombine.low %v2329_v25, %v2339_v10  ;;  %v7114_v42 = vcombine.low %v2353_v3, %v2363_v20  ;;  %v5174_v37 = vrot.slane %v7094_v12, 9  ;;  %v2786_v24 = vrot.slane %v6634_v44, 5  ;;  %v5950_v49 = vld [vmem:[%s6024_s23 + $0x18] sm:$0xff]  }
  0xbc   : > { %5708 = vmatmul.mubr.msk.bf16.gmra.mxu1 %vm658_vm3, %v5941_v23  ;;  %v7120_v15 = vcombine.low %v2377_v62, %v2387_v38  ;;  %v2775_v34 = vrot.slane %v6621_v47, 5  ;;  %v2789_v29 = vrot.slane %v6649_v21, 5  ;;  %v5177_v56 = vrot.slane %v5161_v55, 9  ;;  %v5167_v55 = vld [vmem:[%s6024_s23 + $0x78] sm:$0xe] }
  0xbd   : > { %5711 = vmatprep.mubr.msk.bf16.mxu1 %vm658_vm3, %v5942_v63  ;;  %v2401_v16 = vsel %vm6068_vm4, %v7101_v9, %v7041_v39  ;;  %v7131_v44 = vrot.slane %v2772_v46, 4  ;;  %v7135_v18 = vsel %vm6354_vm7, %v5176_v7, %v2786_v24  ;;  %v2788_v19 = vrot.slane %v2786_v24, 4 }
  0xbe   : > { %v2411_v21 = vsel %vm6068_vm4, %v7107_v32, %v7109_v52  ;;  %v2793_v33 = vrot.slane %v6672_v5, 5  ;;  %v2796_v2 = vrot.slane %v6680_v41, 5  ;;  %v5178_v59 = vrot.slane %v5162_v14, 9  ;;  %v5949_v52 = vld [vmem:[%s6024_s23 + $0xc0] sm:$0xff]  }
  0xbf   : > { %v7147_v11 = vsel %vm6354_vm7, %v2788_v19, %v2789_v29  ;;  %v2800_v58 = vrot.slane %v6689_v61, 5  ;;  %v2803_v23 = vrot.slane %v6741_v50, 5  ;;  %v5179_v36 = vrot.slane %v5163_v26, 9  ;;  %v5168_v19 = vld [vmem:[%s6024_s23 + $0x84] sm:$0xe] }
  0xc0   : > { %v5193_v5 = vcombine.low %v7135_v18, %v7147_v11  ;;  %v7157_v41 = vsel %vm6354_vm7, %v5177_v56, %v2793_v33  ;;  %v2795_v60 = vrot.slane %v2793_v33, 4  ;;  %v2807_v25 = vrot.slane %v6707_v1, 5 }
  0xc1   : > { %5746 = vmatmul.mubr.msk.bf16.gmra.mxu0 %vm658_vm3, %v5135_v17  ;;  %v7164_v61 = vsel %vm6354_vm7, %v5178_v59, %v2800_v58  ;;  %v2802_v50 = vrot.slane %v2800_v58, 4  ;;  %v2810_v17 = vrot.slane %v6755_v8, 5  ;;  %v5180_v63 = vrot.slane %v5164_v6, 9  ;;  %v8774_v59 = vld [vmem:[#allocation4_spill] sm:$0xff] }
  0xc2   : > { %5749 = vmatprep.mubr.msk.bf16.mxu0 %vm658_vm3, %v5136_v51  ;;  %v7169_v10 = vsel %vm6354_vm7, %v2795_v60, %v2796_v2  ;;  %v7173_v3 = vsel %vm6354_vm7, %v5179_v36, %v2807_v25  ;;  %v2809_v1 = vrot.slane %v2807_v25, 4  ;;  %v2814_v20 = vrot.slane %v6750_v40, 5  ;;  %v5166_v51 = vld [vmem:[%s6024_s23 + $0x6c] sm:$0xe]  ;;  %v5945_v58 = vld [vmem:[%s6024_s23 + $0x90] sm:$0xff]  }
  0xc3   : > { %v5194_v48 = vcombine.low %v7157_v41, %v7169_v10  ;;  %v7182_v8 = vsel %vm6354_vm7, %v2802_v50, %v2803_v23  ;;  %v2817_v62 = vrot.slane %v6772_v35, 5  ;;  %v5181_v38 = vrot.slane %v5165_v13, 9  ;;  %v8775_v36 = vld [vmem:[#allocation3_spill] sm:$0xff]  ;;  %v5169_v60 = vld [vmem:[%s6024_s23 + $0x90] sm:$0xe]  ;;  %v8776_v50 = vld [vmem:[#allocation6_spill] sm:$0xff] }
  0xc4   : > { %5712 = vmatmul.mubr.msk.bf16.gmra.mxu1 %vm658_vm3, %v5943_v57  ;;  %v5195_v40 = vcombine.low %v7164_v61, %v7182_v8  ;;  %v7191_v7 = vsel %vm6354_vm7, %v2809_v1, %v2810_v17  ;;  %v7195_v24 = vsel %vm6354_vm7, %v5180_v63, %v2814_v20  ;;  %v2816_v14 = vrot.slane %v2814_v20, 4 }
  0xc5   : > { %5715 = vmatprep.mubr.msk.bf16.mxu1 %vm658_vm3, %v5944_v53  ;;  %v5196_v35 = vcombine.low %v7173_v3, %v7191_v7  ;;  %v2821_v29 = vrot.slane %v6785_v28, 5  ;;  %v2824_v56 = vrot.slane %v6807_v30, 5  ;;  %v5182_v26 = vrot.slane %v5166_v51, 9  ;;  %v8777_v51 = vld [vmem:[#allocation5_spill] sm:$0xff]  ;;  %v5300_v3 = vld [vmem:[%s6024_s23 + $0x48] sm:$0xf] }
  0xc6   : > { %v7204_v33 = vsel %vm6354_vm7, %v2816_v14, %v2817_v62  ;;  %v2828_v2 = vrot.slane %v6804_v27, 5  ;;  %v2831_v6 = vrot.slane %v8774_v59, 5  ;;  %v5183_v57 = vrot.slane %v5167_v55, 9  ;;  %v5946_v27 = vld [vmem:[%s6024_s23 + $0x9c] sm:$0xff]   ;;  %v8785_v55 = vld [vmem:[#allocation15_spill] sm:$0xff] }
  0xc7   : > { %v5197_v23 = vcombine.low %v7195_v24, %v7204_v33  ;;  %v7213_v28 = vsel %vm6354_vm7, %v5181_v38, %v2821_v29  ;;  %v2823_v30 = vrot.slane %v2821_v29, 4  ;;  %v2835_v53 = vrot.slane %v8775_v36, 5  ;;  %v5170_v38 = vld [vmem:[%s6024_s23 + $0x9c] sm:$0xe]  ;;  %v8780_v36 = vld [vmem:[#allocation12_spill] sm:$0xff] }
  0xc8   : > { %v7222_v25 = vsel %vm6354_vm7, %v5182_v26, %v2828_v2  ;;  %v2830_v13 = vrot.slane %v2828_v2, 4  ;;  %v2838_v17 = vrot.slane %v8776_v50, 5  ;;  %v5184_v63 = vrot.slane %v5168_v19, 9  ;;  %v5171_v26 = vld [vmem:[%s6024_s23 + $0xa8] sm:$0xe] }
  0xc9   : > { %5750 = vmatmul.mubr.msk.bf16.gmra.mxu0 %vm658_vm3, %v7105_v43  ;;  %v7229_v1 = vsel %vm6354_vm7, %v2823_v30, %v2824_v56  ;;  %v7233_v43 = vsel %vm6354_vm7, %v5183_v57, %v2835_v53  ;;  %v2837_v20 = vrot.slane %v2835_v53, 4  ;;  %v2842_v62 = vrot.slane %v8777_v51, 5  ;;  %v5173_v57 = vld [vmem:[%s6024_s23 + $0xc0] sm:$0xe]  ;;  %v5947_v19 = vld [vmem:[%s6024_s23 + $0xa8] sm:$0xff]  }
  0xca   : > { %5753 = vmatprep.mubr.msk.bf16.mxu0 %vm658_vm3, %v7112_v54  ;;  %v7241_v14 = vsel %vm6354_vm7, %v2830_v13, %v2831_v6  ;;  %v8778_v54 = vld [vmem:[#allocation8_spill] sm:$0xff]  ;;  %v5185_v56 = vrot.slane %v5169_v60, 9  ;;  %v2852_v53 = vrot.slane %v8780_v36, 5  ;;  %v5186_v60 = vrot.slane %v5170_v38, 9  ;;  %v8783_v38 = vld [vmem:[#allocation13_spill] sm:$0xff] }
  0xcb   : > { %v2845_v29 = vrot.slane %v8778_v54, 5  ;;  %v7250_v2 = vsel %vm6354_vm7, %v2837_v20, %v2838_v17  ;;  %v7254_v59 = vsel %vm6354_vm7, %v5184_v63, %v2842_v62  ;;  %v2844_v6 = vrot.slane %v2842_v62, 4  ;;  %v5172_v13 = vld [vmem:[%s6024_s23 + $0xb4] sm:$0xe]  ;;  %v8781_v17 = vld [vmem:[#allocation10_spill] sm:$0xff] }
  0xcc   : > { %5716 = vmatmul.mubr.msk.bf16.gmra.mxu1 %vm658_vm3, %v5945_v58  ;;  %v8779_v58 = vld [vmem:[#allocation7_spill] sm:$0xff]  ;;  %v2856_v63 = vrot.slane %v8781_v17, 5  ;;  %v8782_v20 = vld [vmem:[#allocation2_spill] sm:$0xff]  ;;  %v5187_v62 = vrot.slane %v5171_v26, 9  ;;  %v2863_v36 = vrot.slane %v8783_v38, 5  ;;  %v5188_v26 = vrot.slane %v5172_v13, 9 }
  0xcd   : > { %5719 = vmatprep.mubr.msk.bf16.mxu1 %vm658_vm3, %v5946_v27  ;;  %v2849_v30 = vrot.slane %v8779_v58, 5  ;;  %v7264_v50 = vsel %vm6354_vm7, %v2844_v6, %v2845_v29  ;;  %v2859_v51 = vrot.slane %v8782_v20, 5  ;;  %v8784_v17 = vld [vmem:[#allocation14_spill] sm:$0xff]  ;;  %v5948_v27 = vld [vmem:[%s6024_s23 + $0xb4] sm:$0xff]   ;;  %v2776_v39 = vsel %vm6354_vm7, %v7131_v44, %v2775_v34  ;;  %v7481_v7 = vld [vmem:[%s6024_s23 + $0x4c] sm:$0xf] }
  0xce   : > { %v7279_v29 = vsel %vm6354_vm7, %v5186_v60, %v2856_v63  ;;  %v2858_v6 = vrot.slane %v2856_v63, 4  ;;  %v2866_v20 = vrot.slane %v8784_v17, 5  ;;  %v2865_v38 = vrot.slane %v2863_v36, 4  ;;  %v5967_v44 = vld [vmem:[%s6024_s23 + $0x20] sm:$0x1] }
  0xcf   : > { %v7272_v54 = vsel %vm6354_vm7, %v5185_v56, %v2849_v30  ;;  %v2851_v58 = vrot.slane %v2849_v30, 4  ;;  %v7291_v30 = vsel %vm6354_vm7, %v5187_v62, %v2863_v36  ;;  %v2870_v60 = vrot.slane %v8785_v55, 5 }
  0xd0   : > { %v5189_v63 = vrot.slane %v5173_v57, 9  ;;  %v7307_v55 = vsel %vm6354_vm7, %v2865_v38, %v2866_v20  ;;  %v2877_v57 = vrot.slane %v7026_v22, 5  ;;  %v2773_v22 = vsel %vm6354_vm7, %v5174_v37, %v2772_v46  ;;  %v5952_v38 = vld [vmem:[%s6024_s23 + $0x30] sm:$0xff]  }
  0xd1   : > { %5754 = vmatmul.mubr.msk.bf16.gmra.mxu0 %vm658_vm3, %v7114_v42  ;;  %v7287_v56 = vsel %vm6354_vm7, %v2851_v58, %v2852_v53  ;;  %v7300_v42 = vsel %vm6354_vm7, %v2858_v6, %v2859_v51  ;;  %v2873_v53 = vrot.slane %v7017_v4, 5  ;;  %v2872_v58 = vrot.slane %v2870_v60, 4 }
  0xd2   : > { %5757 = vmatprep.mubr.msk.bf16.mxu0 %vm658_vm3, %v7120_v15  ;;  %v7311_v15 = vsel %vm6354_vm7, %v5188_v26, %v2870_v60  ;;  %v2880_v51 = vrot.slane %v7038_v45, 5  ;;  %v5159_v45 = vld [vmem:[%s6024_s23 + $0x18] sm:$0xe]  ;;  %v7351_v9 = vsel %vm6354_vm7, %v5189_v63, %v2877_v57  ;;  %v2879_v46 = vrot.slane %v2877_v57, 4  ;;  %v5951_v26 = vld [vmem:[%s6024_s23 + $0x24] sm:$0xff]  }
  0xd3   : > { %v7339_v32 = vsel %vm6354_vm7, %v2872_v58, %v2873_v53  ;;  %v5175_v37 = vrot.slane %v5159_v45, 9  ;;  %v5191_v34 = vcombine.low %v2773_v22, %v2776_v39  ;;  %v8786_v60 = vld [vmem:[#allocation9_spill] sm:$0xff] }
  0xd4   : > { %5720 = vmatmul.mubr.msk.bf16.gmra.mxu1 %vm658_vm3, %v5947_v19  ;;  %v5141_v19 = vcombine.low %v2401_v16, %v2411_v21  ;;  %v7356_v47 = vsel %vm6354_vm7, %v2879_v46, %v2880_v51  ;;  %v2782_v21 = vrot.slane %v5967_v44, 5  ;;  %v4536_v53 = vsel %vm707_vm0, %v8786_v60, 0  ;;  %v5288_v63 = vld [vmem:[%s6024_s23 + $0x18] sm:$0xf]  ;;  %v5289_v57 = vld [vmem:[%s6024_s23 + $0x1c] sm:$0xf] }
  0xd5   : > { %5723 = vmatprep.mubr.msk.bf16.mxu1 %vm658_vm3, %v5948_v27  ;;  %v5966_v27 = vld [vmem:[%s6024_s23 + $0x1c] sm:$0xf]  ;;  %v5291_v51 = vld [vmem:[%s6024_s23 + $0x24] sm:$0xf]  ;;  %v3584_v45 = vshrl.u32 %v5288_v63, 16  ;;  %v3593_v39 = vshll.u32 %v5289_v57, 16 }
  0xd6   : > { %v2779_v36 = vrot.slane %v5966_v27, 5  ;;  %v3587_v27 = vshll.u32 %v5288_v63, 16  ;;  %v3608_v46 = vshrl.u32 %v5291_v51, 16  ;;  %v5954_v44 = vld [vmem:[%s6024_s23 + $0x48] sm:$0xff]   ;;  %v5369_v60 = vld [vmem:[%s6024_s23 + $0x18] sm:$0xe] }
  0xd7   : > { %v7397_v63 = vld [vmem:[%s6024_s23 + $0x2c] sm:$0x1] }
  0xd8   : > { %v2781_v16 = vrot.slane %v2779_v36, 4  ;;  %v2780_v17 = vsel %vm6354_vm7, %v5175_v37, %v2779_v36  ;;  %v7381_v36 = vld [vmem:[%s6024_s23 + $0x28] sm:$0xf]  ;;  %v5953_v37 = vld [vmem:[%s6024_s23 + $0x3c] sm:$0xff]   ;;  %v3610_v18 = vrot.slane %v3608_v46, 4 }
  0xd9   : > { %5758 = vmatmul.mubr.msk.bf16.gmra.mxu0 %vm658_vm3, %v5141_v19  ;;  %v8787_v19 = vld [vmem:[#allocation11_spill] sm:$0xff] }
  0xda   : > { %5797 = vmatprep.mubr.msk.bf16.mxu0 %vm658_vm3, %v5950_v49  ;;  %v2783_v20 = vsel %vm6354_vm7, %v2781_v16, %v2782_v21  ;;  %v4066_v22 = vsel %vm707_vm0, %v8787_v19, 0  ;;  %v3597_v49 = vshrl.u32 %v5289_v57, 16  ;;  %v3621_v16 = vshrl.u32 %v7381_v36, 16  ;;  %v5290_v21 = vld [vmem:[%s6024_s23 + $0x20] sm:$0x1] }
  0xdb   : > { %v5192_v58 = vcombine.low %v2780_v17, %v2783_v20  ;;  %v3586_v17 = vrot.slane %v3584_v45, 4  ;;  %v3589_v20 = vrot.slane %v3587_v27, 5  ;;  %v5294_v19 = vld [vmem:[%s6024_s23 + $0x30] sm:$0xf]  ;;  %v3603_v45 = vshll.u32 %v5290_v21, 16 }
  0xdc   : > { %5724 = vmatmul.mubr.msk.bf16.gmra.mxu1 %vm658_vm3, %v5949_v52  ;;  %v3611_v52 = vshll.u32 %v5291_v51, 16  ;;  %v3623_v51 = vrot.slane %v3621_v16, 4  ;;  %v5385_v27 = vrot.slane %v5369_v60, 9  ;;  %v4330_v46 = vrot.slane %v5290_v21, 5  ;;  %v5370_v16 = vld [vmem:[%s6024_s23 + $0x24] sm:$0xe] }
  0xdd   : > { %5763 = vmatprep.mubr.msk.bf16.mxu1 %vm658_vm3, %v5191_v34  ;;  %v3617_v34 = vshll.u32 %v7381_v36, 16  ;;  %v5955_v21 = vld [vmem:[%s6024_s23 + $0x54] sm:$0xff]   ;;  %v3635_v10 = vshll.u32 %v5294_v19, 16  ;;  %v5956_v60 = vld [vmem:[%s6024_s23 + $0x60] sm:$0xff]  }
  0xde   : > { %v3613_v11 = vrot.slane %v3611_v52, 5  ;;  %v3627_v52 = vshll.u32 %v7397_v63, 16 }
  0xe1   : > { %5798 = vmatmul.mubr.msk.bf16.vlgmr.msra.gmra.mxu0 %vm658_vm3, %v5951_v26  ;;  %v7393_v26 = vrot.slane %v3593_v39, 5 }
  0xe2   : > { %5864 = vmatpush3.bf16.msra.mxu0 %v4536_v53  ;;  %5801 = vmatprep.mubr.msk.bf16.mxu0 %vm658_vm3, %v5952_v38  ;;  %v3599_v38 = vrot.slane %v3597_v49, 4  ;;  %v4327_v53 = vrot.slane %v5289_v57, 5  ;;  %v7407_v57 = vld [vmem:[%s6024_s23 + $0x34] sm:$0xf] }
  0xe4   : > { %5764 = vmatmul.mubr.msk.bf16.vlgmr.msra.gmra.mxu1 %vm658_vm3, %v5192_v58  ;;  %v7402_v58 = vrot.slane %v3617_v34, 5  ;;  %v3600_v39 = vor.u32 %v3599_v38, %v7393_v26  ;;  %v4329_v49 = vrot.slane %v4327_v53, 4  ;;  %v3614_v34 = vor.u32 %v3613_v11, %v3610_v18 }
  0xe5   : > { %5830 = vmatpush3.bf16.msra.mxu1 %v4066_v22  ;;  %5767 = vmatprep.mubr.msk.bf16.mxu1 %vm658_vm3, %v5193_v5  ;;  %v7400_v5 = vpop.f32.mrf.mxu0  ;;  %v3590_v22 = vor.u32 %v3589_v20, %v3586_v17  ;;  %v3632_v17 = vshrl.u32 %v5294_v19, 16  ;;  %v3645_v38 = vshrl.u32 %v7407_v57, 16  ;;  %v7432_v61 = vsel %vm6354_vm7, %v5385_v27, %v4327_v53  ;;  %v5297_v19 = vld [vmem:[%s6024_s23 + $0x3c] sm:$0xf] }
  0xe6   : > { %v3624_v41 = vor.u32 %v3623_v51, %v7402_v58  ;;  %v3601_v8 = vrot.slane %v3600_v39, 4  ;;  %v3629_v11 = vrot.slane %v3627_v52, 5  ;;  %v5386_v51 = vrot.slane %v5370_v16, 9  ;;  %v7446_v39 = vld [vmem:[%s6024_s23 + $0x38] sm:$0x1] }
  0xe7   : > { %v7424_v20 = vpop.f32.mrf.mxu0  ;;  %v3591_v18 = vrot.slane %v3590_v22, 4  ;;  %v3615_v12 = vrot.slane %v3614_v34, 4  ;;  %v4337_v22 = vrot.slane %v7397_v63, 5  ;;  %v3647_v52 = vrot.slane %v3645_v38, 4 }
  0xe8   : > { %v3625_v27 = vrot.slane %v3624_v41, 4  ;;  %v3656_v34 = vshrl.u32 %v5297_v19, 16  ;;  %v3659_v16 = vshll.u32 %v5297_v19, 16  ;;  %v7459_v41 = vld [vmem:[%s6024_s23 + $0x40] sm:$0xf] }
  0xe9   : > { %5802 = vmatmul.mubr.msk.bf16.gmra.mxu0 %vm658_vm3, %v5953_v37  ;;  %v7443_v53 = vpop.f32.mrf.mxu0  ;;  %v3596_v63 = vsel %vm6068_vm4, %v3591_v18, %v7393_v26  ;;  %v3620_v26 = vsel %vm6068_vm4, %v3615_v12, %v7402_v58  ;;  %v5371_v18 = vld [vmem:[%s6024_s23 + $0x30] sm:$0xe]  ;;  %v3665_v24 = vshll.u32 %v7459_v41, 16  ;;  %v3669_v33 = vshrl.u32 %v7459_v41, 16 }
  0xea   : > { %5805 = vmatprep.mubr.msk.bf16.mxu0 %vm658_vm3, %v5954_v44  ;;  %v7415_v37 = vpop.f32.mrf.mxu1  ;;  %v4334_v44 = vrot.slane %v7381_v36, 5  ;;  %v3605_v36 = vrot.slane %v3603_v45, 5  ;;  %v3634_v45 = vrot.slane %v3632_v17, 4  ;;  %v3630_v58 = vsel %vm6068_vm4, %v3625_v27, %v3629_v11 }
  0xeb   : > { %8788 = vst [vmem:[#allocation4_spill] sm:$0xff] %v7415_v37  ;;  %v7488_v12 = vpop.f32.mrf.mxu0  ;;  %v3661_v19 = vrot.slane %v3659_v16, 5  ;;  %v3693_v11 = vshrl.u32 %v7481_v7, 16 }
  0xec   : > { %5768 = vmatmul.mubr.msk.bf16.gmra.mxu1 %vm658_vm3, %v5194_v48  ;;  %v3641_v48 = vshll.u32 %v7407_v57, 16  ;;  %v7439_v6 = vpop.f32.mrf.mxu1  ;;  %v4336_v4 = vrot.slane %v4334_v44, 4  ;;  %v3606_v17 = vsel %vm6068_vm4, %v3601_v8, %v3605_v36  ;;  %v4341_v36 = vrot.slane %v7407_v57, 5  ;;  %v5958_v8 = vld [vmem:[%s6024_s23 + $0x78] sm:$0xff]  }
  0xed   : > { %5771 = vmatprep.mubr.msk.bf16.mxu1 %vm658_vm3, %v5195_v40  ;;  %v7436_v40 = vsel %vm6354_vm7, %v4329_v49, %v4330_v46  ;;  %8789 = vst [vmem:[#allocation3_spill] sm:$0xff] %v7439_v6  ;;  %v3637_v49 = vrot.slane %v3635_v10, 5  ;;  %v7502_v27 = vcombine.low %v3596_v63, %v3606_v17  ;;  %v7504_v57 = vcombine.low %v3620_v26, %v3630_v58  ;;  %v7518_v17 = vld [vmem:[%s6024_s23 + $0x58] sm:$0xf]  ;;  %v7524_v58 = vld [vmem:[%s6024_s23 + $0x44] sm:$0x1] }
  0xee   : > { %v7448_v46 = vrot.slane %v3641_v48, 5  ;;  %v7465_v10 = vpop.f32.mrf.mxu1  ;;  %v7472_v48 = vsel %vm6354_vm7, %v5386_v51, %v4334_v44  ;;  %v7476_v38 = vsel %vm6354_vm7, %v4336_v4, %v4337_v22  ;;  %v3658_v51 = vrot.slane %v3656_v34, 4  ;;  %v5303_v34 = vld [vmem:[%s6024_s23 + $0x54] sm:$0xf] }
  0xef   : > { %8790 = vst [vmem:[#allocation6_spill] sm:$0xff] %v7465_v10  ;;  %v3638_v44 = vor.u32 %v3637_v49, %v3634_v45  ;;  %v3683_v22 = vshll.u32 %v5300_v3, 16  ;;  %v4343_v13 = vrot.slane %v4341_v36, 4  ;;  %v4344_v63 = vrot.slane %v7446_v39, 5  ;;  %v5372_v49 = vld [vmem:[%s6024_s23 + $0x3c] sm:$0xe] }
  0xf0   : > { %v3648_v4 = vor.u32 %v3647_v52, %v7448_v46  ;;  %v7500_v45 = vpop.f32.mrf.mxu1  ;;  %v5387_v52 = vrot.slane %v5371_v18, 9  ;;  %v3662_v18 = vor.u32 %v3661_v19, %v3658_v51  ;;  %v8793_v6 = vcombine.low %v7213_v28, %v7229_v1 }
  0xf1   : > { %5806 = vmatmul.mubr.msk.bf16.gmra.mxu0 %vm658_vm3, %v5955_v21  ;;  %v3689_v21 = vshll.u32 %v7481_v7, 16  ;;  %8791 = vst [vmem:[#allocation5_spill] sm:$0xff] %v7500_v45  ;;  %v3685_v45 = vrot.slane %v3683_v22, 5  ;;  %v3704_v51 = vshrl.u32 %v5303_v34, 16  ;;  %v3707_v19 = vshll.u32 %v5303_v34, 16 }
  0xf2   : > { %5809 = vmatprep.mubr.msk.bf16.mxu0 %vm658_vm3, %v5956_v60  ;;  %v3651_v60 = vshll.u32 %v7446_v39, 16  ;;  %v7521_v26 = vrot.slane %v3648_v4, 4  ;;  %v3695_v39 = vrot.slane %v3693_v11, 4  ;;  %v7559_v22 = vsel %vm6354_vm7, %v4343_v13, %v4344_v63 }
  0xf3   : > { %v7529_v10 = vrot.slane %v3689_v21, 5  ;;  %v8795_v21 = vcombine.low %v7222_v25, %v7241_v14  ;;  %v4348_v25 = vrot.slane %v7459_v41, 5  ;;  %v5960_v14 = vld [vmem:[%s6024_s23 + $0x90] sm:$0xff]   ;;  %v5388_v1 = vrot.slane %v5372_v49, 9  ;;  %v5306_v41 = vld [vmem:[%s6024_s23 + $0x60] sm:$0xf] }
  0xf4   : > { %5772 = vmatmul.mubr.msk.bf16.gmra.mxu1 %vm658_vm3, %v5196_v35  ;;  %v5957_v35 = vld [vmem:[%s6024_s23 + $0x6c] sm:$0xff]   ;;  %v7514_v62 = vrot.slane %v3651_v60, 5  ;;  %v3706_v37 = vrot.slane %v3704_v51, 4 }
  0xf5   : > { %5775 = vmatprep.mubr.msk.bf16.mxu1 %vm658_vm3, %v5197_v23  ;;  %v3680_v23 = vshrl.u32 %v5300_v3, 16  ;;  %v7512_v3 = vrot.slane %v3638_v44, 4  ;;  %v3671_v44 = vrot.slane %v3669_v33, 4  ;;  %v3717_v33 = vshrl.u32 %v7518_v17, 16 }
  0xf6   : > { %v7510_v16 = vpop.f32.mrf.mxu0  ;;  %v3696_v13 = vor.u32 %v3695_v39, %v7529_v10  ;;  %v4355_v39 = vrot.slane %v7481_v7, 5  ;;  %v8799_v7 = vcombine.low %v7233_v43, %v7250_v2  ;;  %v8801_v43 = vcombine.low %v7254_v59, %v7264_v50  ;;  %v5961_v2 = vld [vmem:[%s6024_s23 + $0x9c] sm:$0xff]  }
  0xf7   : > { %8792 = vst [vmem:[#allocation8_spill] sm:$0xff] %v7510_v16  ;;  %v3682_v60 = vrot.slane %v3680_v23, 4  ;;  %v5959_v23 = vld [vmem:[%s6024_s23 + $0x84] sm:$0xff]   ;;  %v7586_v16 = vld [vmem:[%s6024_s23 + $0x5c] sm:$0x1]  ;;  %v4362_v59 = vrot.slane %v7518_v17, 5 }
  0xf8   : > { %v7547_v28 = vpop.f32.mrf.mxu0 }
  0xf9   : > { %5810 = vmatmul.mubr.msk.bf16.gmra.mxu0 %vm658_vm3, %v5957_v35  ;;  %v7526_v35 = vrot.slane %v3665_v24, 5  ;;  %v3713_v24 = vshll.u32 %v7518_v17, 16  ;;  %8796 = vst [vmem:[#allocation12_spill] sm:$0xff] %v7547_v28  ;;  %v3709_v28 = vrot.slane %v3707_v19, 5 }
  0xfa   : > { %5813 = vmatprep.mubr.msk.bf16.mxu0 %vm658_vm3, %v5958_v8  ;;  %v7535_v4 = vpop.f32.mrf.mxu1  ;;  %v7538_v8 = vld [vmem:[%s6024_s23 + $0x50] sm:$0x1]  ;;  %v7579_v49 = vpop.f32.mrf.mxu0 }
  0xfb   : > { %8794 = vst [vmem:[#allocation7_spill] sm:$0xff] %v7535_v4  ;;  %v3672_v34 = vor.u32 %v3671_v44, %v7526_v35  ;;  %v7569_v4 = vrot.slane %v3662_v18, 4  ;;  %v7576_v11 = vrot.slane %v3713_v24, 5  ;;  %v3719_v44 = vrot.slane %v3717_v33, 4  ;;  %8798 = vst [vmem:[#allocation2_spill] sm:$0xff] %v7579_v49 }
  0xfc   : > { %5776 = vmatmul.mubr.msk.bf16.gmra.mxu1 %vm658_vm3, %v8793_v6  ;;  %v7555_v6 = vsel %vm6354_vm7, %v5387_v52, %v4341_v36  ;;  %v3686_v36 = vor.u32 %v3685_v45, %v3682_v60  ;;  %v3699_v52 = vshll.u32 %v7538_v8, 16  ;;  %v7574_v63 = vpop.f32.mrf.mxu1  ;;  %v4350_v18 = vrot.slane %v4348_v25, 4  ;;  %v5373_v24 = vld [vmem:[%s6024_s23 + $0x48] sm:$0xe] }
  0xfd   : > { %5779 = vmatprep.mubr.msk.bf16.mxu1 %vm658_vm3, %v8795_v21  ;;  %v3675_v21 = vshll.u32 %v7524_v58, 16  ;;  %8797 = vst [vmem:[#allocation10_spill] sm:$0xff] %v7574_v63  ;;  %v4351_v60 = vrot.slane %v7524_v58, 5  ;;  %v3673_v51 = vrot.slane %v3672_v34, 4  ;;  %v3728_v33 = vshrl.u32 %v5306_v41, 16 }
  0xfe   : > { %v7592_v63 = vsel %vm6354_vm7, %v5388_v1, %v4348_v25  ;;  %v3687_v45 = vrot.slane %v3686_v36, 4  ;;  %v3697_v49 = vrot.slane %v3696_v13, 4  ;;  %v3701_v58 = vrot.slane %v3699_v52, 5  ;;  %v7607_v36 = vld [vmem:[%s6024_s23 + $0x64] sm:$0xf]  ;;  %v7614_v13 = vpop.f32.mrf.mxu0 }
  0xff   : > { %v3677_v19 = vrot.slane %v3675_v21, 5  ;;  %v3668_v34 = vsel %vm6068_vm4, %v7569_v4, %v7526_v35  ;;  %v3710_v21 = vor.u32 %v3709_v28, %v3706_v37  ;;  %v3720_v1 = vor.u32 %v3719_v44, %v7576_v11  ;;  %8802 = vst [vmem:[#allocation14_spill] sm:$0xff] %v7614_v13  ;;  %v5374_v28 = vld [vmem:[%s6024_s23 + $0x54] sm:$0xe]  ;;  %v5965_v13 = vld [vmem:[%s6024_s23 + $0xcc] sm:$0xff]  }
 0x100   : > { %v3723_v25 = vshll.u32 %v7586_v16, 16  ;;  %v7618_v52 = vsel %vm6354_vm7, %v4350_v18, %v4351_v60  ;;  %v5389_v35 = vrot.slane %v5373_v24, 9  ;;  %v4357_v37 = vrot.slane %v4355_v39, 4 }
 0x101   : > { %5814 = vmatmul.mubr.msk.bf16.gmra.mxu0 %vm658_vm3, %v5959_v23  ;;  %v3731_v23 = vshll.u32 %v5306_v41, 16  ;;  %v4358_v4 = vrot.slane %v7538_v8, 5  ;;  %v5962_v41 = vld [vmem:[%s6024_s23 + $0xa8] sm:$0xff]   ;;  %v3678_v44 = vsel %vm6068_vm4, %v3673_v51, %v3677_v19  ;;  %v3730_v50 = vrot.slane %v3728_v33, 4 }
 0x102   : > { %5817 = vmatprep.mubr.msk.bf16.mxu0 %vm658_vm3, %v5960_v14  ;;  %v7598_v14 = vpop.f32.mrf.mxu1  ;;  %v3702_v18 = vsel %vm6068_vm4, %v3697_v49, %v3701_v58  ;;  %v3737_v60 = vshll.u32 %v7607_v36, 16  ;;  %v3741_v8 = vshrl.u32 %v7607_v36, 16  ;;  %v3721_v51 = vrot.slane %v3720_v1, 4  ;;  %v7636_v33 = vld [vmem:[%s6024_s23 + $0x68] sm:$0x1] }
 0x103   : > { %8800 = vst [vmem:[#allocation13_spill] sm:$0xff] %v7598_v14  ;;  %v3711_v14 = vrot.slane %v3710_v21, 4  ;;  %v3725_v17 = vrot.slane %v3723_v25, 5  ;;  %v5390_v19 = vrot.slane %v5374_v28, 9  ;;  %v8805_v49 = vsel %vm6068_vm4, %v7521_v26, %v7514_v62  ;;  %v5309_v25 = vld [vmem:[%s6024_s23 + $0x6c] sm:$0xf] }
 0x104   : > { %5780 = vmatmul.mubr.msk.bf16.gmra.mxu1 %vm658_vm3, %v8799_v7  ;;  %v3733_v7 = vrot.slane %v3731_v23, 5  ;;  %v7633_v24 = vpop.f32.mrf.mxu1  ;;  %v7657_v21 = vsel %vm6354_vm7, %v5389_v35, %v4355_v39  ;;  %v7661_v1 = vsel %vm6354_vm7, %v4357_v37, %v4358_v4  ;;  %v7664_v62 = vcombine.low %v3668_v34, %v3678_v44  ;;  %v5375_v4 = vld [vmem:[%s6024_s23 + $0x60] sm:$0xe]  ;;  %v5315_v44 = vld [vmem:[%s6024_s23 + $0x84] sm:$0xf] }
 0x105   : > { %5783 = vmatprep.mubr.msk.bf16.mxu1 %vm658_vm3, %v8801_v43  ;;  %v3692_v43 = vsel %vm6068_vm4, %v3687_v45, %v7529_v10  ;;  %8803 = vst [vmem:[#allocation15_spill] sm:$0xff] %v7633_v24  ;;  %v8806_v45 = vsel %vm6068_vm4, %v7512_v3, %v7448_v46  ;;  %v4364_v46 = vrot.slane %v4362_v59, 4  ;;  %v4365_v3 = vrot.slane %v7586_v16, 5 }
 0x106   : > { %v7651_v23 = vcombine.low %v8806_v45, %v8805_v49  ;;  %8807 = vst [vmem:[#allocation11_spill] sm:$0xff] %v7664_v62  ;;  %v3734_v26 = vor.u32 %v3733_v7, %v3730_v50  ;;  %v7671_v28 = vcombine.low %v3692_v43, %v3702_v18  ;;  %v7673_v39 = vrot.slane %v3737_v60, 5 }
 0x107   : > { %v7639_v10 = vpop.f32.mrf.mxu0  ;;  %v7675_v35 = vrot.slane %v3741_v8, 4  ;;  %v3747_v37 = vshll.u32 %v7636_v33, 16  ;;  %v8809_v34 = vcombine.low %v7272_v54, %v7287_v56  ;;  %v3716_v50 = vsel %vm6068_vm4, %v3711_v14, %v7576_v11  ;;  %v5312_v54 = vld [vmem:[%s6024_s23 + $0x78] sm:$0xf] }
 0x108   : > { %8804 = vst [vmem:[#allocation9_spill] sm:$0xff] %v7639_v10  ;;  %8808 = vst [vmem:[#allocation16_spill] sm:$0xff] %v7671_v28  ;;  %v3726_v7 = vsel %vm6068_vm4, %v3721_v51, %v3725_v17  ;;  %v7695_v43 = vsel %vm6354_vm7, %v5390_v19, %v4362_v59  ;;  %v8811_v56 = vcombine.low %v7279_v29, %v7300_v42  ;;  %v3752_v60 = vshrl.u32 %v5309_v25, 16  ;;  %v7707_v51 = vld [vmem:[%s6024_s23 + $0x7c] sm:$0xf]  ;;  %v5964_v59 = vld [vmem:[%s6024_s23 + $0xc0] sm:$0xff]  }
 0x109   : > { %5818 = vmatmul.mubr.msk.bf16.gmra.mxu0 %vm658_vm3, %v5961_v2  ;;  %v7669_v2 = vld [vmem:[%s6024_s23 + $0x70] sm:$0xf]  ;;  %v7702_v18 = vpop.f32.mrf.mxu0  ;;  %v3755_v8 = vshll.u32 %v5309_v25, 16  ;;  %v7712_v17 = vsel %vm6354_vm7, %v4364_v46, %v4365_v3  ;;  %v7714_v29 = vrot.slane %v3734_v26, 4  ;;  %v5391_v42 = vrot.slane %v5375_v4, 9 }
 0x10a   : > { %5821 = vmatprep.mubr.msk.bf16.mxu0 %vm658_vm3, %v5962_v41  ;;  %v5963_v41 = vld [vmem:[%s6024_s23 + $0xb4] sm:$0xff]   ;;  %8812 = vst [vmem:[#allocation18_spill] sm:$0xff] %v7702_v18  ;;  %v3761_v11 = vshll.u32 %v7669_v2, 16  ;;  %v3765_v14 = vshrl.u32 %v7669_v2, 16  ;;  %v4369_v19 = vrot.slane %v7607_v36, 5  ;;  %v7717_v49 = vcombine.low %v3716_v50, %v3726_v7 }
 0x10b   : > { %v3744_v45 = vor.u32 %v7675_v35, %v7673_v39  ;;  %v7721_v25 = vrot.slane %v3747_v37, 5  ;;  %v3776_v46 = vshrl.u32 %v5312_v54, 16  ;;  %v3779_v3 = vshll.u32 %v5312_v54, 16  ;;  %v7733_v4 = vld [vmem:[%s6024_s23 + $0x88] sm:$0xf]  ;;  %v7736_v35 = vpop.f32.mrf.mxu0 }
 0x10c   : > { %5784 = vmatmul.mubr.msk.bf16.gmra.mxu1 %vm658_vm3, %v8809_v34  ;;  %v7683_v16 = vpop.f32.mrf.mxu1  ;;  %8813 = vst [vmem:[#allocation19_spill] sm:$0xff] %v7717_v49  ;;  %v4372_v34 = vrot.slane %v7636_v33, 5  ;;  %v3785_v36 = vshll.u32 %v7707_v51, 16  ;;  %v3789_v26 = vshrl.u32 %v7707_v51, 16  ;;  %8815 = vst [vmem:[#allocation21_spill] sm:$0xff] %v7736_v35  ;;  %v3754_v33 = vrot.slane %v3752_v60, 4 }
 0x10d   : > { %8810 = vst [vmem:[#allocation17_spill] sm:$0xff] %v7683_v16  ;;  %5787 = vmatprep.mubr.msk.bf16.mxu1 %vm658_vm3, %v8811_v56  ;;  %v7725_v56 = vld [vmem:[%s6024_s23 + $0x74] sm:$0x1]  ;;  %v3757_v37 = vrot.slane %v3755_v8, 5  ;;  %v7738_v50 = vrot.slane %v3761_v11, 5  ;;  %v3767_v7 = vrot.slane %v3765_v14, 4  ;;  %v8816_v54 = vcombine.low %v7291_v30, %v7307_v55  ;;  %v7766_v49 = vpop.f32.mrf.mxu0 }
 0x10e   : > { %v7728_v58 = vpop.f32.mrf.mxu1  ;;  %v4371_v16 = vrot.slane %v4369_v19, 4  ;;  %v7751_v60 = vld [vmem:[%s6024_s23 + $0x80] sm:$0x1]  ;;  %v7754_v8 = vld [vmem:[%s6024_s23 + $0x6c] sm:$0xe]  ;;  %v3800_v11 = vshrl.u32 %v5315_v44, 16 }
 0x10f   : > { %8814 = vst [vmem:[#allocation20_spill] sm:$0xff] %v7728_v58  ;;  %v7747_v58 = vsel %vm6354_vm7, %v5391_v42, %v4369_v19  ;;  %v3803_v14 = vshll.u32 %v5315_v44, 16  ;;  %v3813_v24 = vshrl.u32 %v7733_v4, 16  ;;  %v3778_v19 = vrot.slane %v3776_v46, 4  ;;  %8818 = vst [vmem:[#allocation23_spill] sm:$0xff] %v7766_v49 }
 0x110   : > { %v7762_v42 = vpop.f32.mrf.mxu1  ;;  %v3781_v35 = vrot.slane %v3779_v3, 5  ;;  %v7764_v18 = vrot.slane %v3785_v36, 5  ;;  %v3791_v10 = vrot.slane %v3789_v26, 4  ;;  %v8819_v44 = vcombine.low %v7311_v15, %v7339_v32  ;;  %v7785_v32 = vld [vmem:[%s6024_s23 + $0x8c] sm:$0x1] }
 0x111   : > { %5822 = vmatmul.mubr.msk.bf16.gmra.mxu0 %vm658_vm3, %v5963_v41  ;;  %v3771_v41 = vshll.u32 %v7725_v56, 16  ;;  %8817 = vst [vmem:[#allocation22_spill] sm:$0xff] %v7762_v42  ;;  %v3758_v30 = vor.u32 %v3757_v37, %v3754_v33  ;;  %v3768_v55 = vor.u32 %v3767_v7, %v7738_v50  ;;  %v3795_v46 = vshll.u32 %v7751_v60, 16  ;;  %v5377_v33 = vld [vmem:[%s6024_s23 + $0x78] sm:$0xe] }
 0x112   : > { %5825 = vmatprep.mubr.msk.bf16.mxu0 %vm658_vm3, %v5964_v59  ;;  %v3809_v59 = vshll.u32 %v7733_v4, 16  ;;  %v7776_v3 = vrot.slane %v3744_v45, 4  ;;  %v7780_v36 = vsel %vm6354_vm7, %v4371_v16, %v4372_v34  ;;  %v5392_v26 = vrot.slane %v7754_v8, 9  ;;  %v7790_v42 = vpop.f32.mrf.mxu1  ;;  %v5318_v8 = vld [vmem:[%s6024_s23 + $0x90] sm:$0xf] }
 0x113   : > { %v4383_v15 = vrot.slane %v7707_v51, 5  ;;  %v3802_v37 = vrot.slane %v3800_v11, 4  ;;  %v3805_v7 = vrot.slane %v3803_v14, 5  ;;  %8820 = vst [vmem:[#allocation24_spill] sm:$0xff] %v7790_v42  ;;  %v3773_v45 = vrot.slane %v3771_v41, 5 }
 0x114   : > { %5788 = vmatmul.mubr.msk.bf16.gmra.mxu1 %vm658_vm3, %v8816_v54  ;;  %v4376_v54 = vrot.slane %v7669_v2, 5  ;;  %v7788_v2 = vrot.slane %v3809_v59, 5  ;;  %v4379_v49 = vrot.slane %v7725_v56, 5  ;;  %v3782_v16 = vor.u32 %v3781_v35, %v3778_v19  ;;  %v7799_v59 = vld [vmem:[%s6024_s23 + $0x94] sm:$0xf] }
 0x115   : > { %5791 = vmatprep.mubr.msk.bf16.mxu1 %vm658_vm3, %v8819_v44  ;;  %v3815_v44 = vrot.slane %v3813_v24, 4  ;;  %v3792_v34 = vor.u32 %v3791_v10, %v7764_v18  ;;  %v3759_v51 = vrot.slane %v3758_v30, 4  ;;  %v3769_v11 = vrot.slane %v3768_v55, 4 }
 0x116   : > { %v4378_v62 = vrot.slane %v4376_v54, 4  ;;  %v3797_v14 = vrot.slane %v3795_v46, 5  ;;  %v8821_v24 = vcombine.low %v7432_v61, %v7436_v40  ;;  %v5393_v56 = vrot.slane %v5377_v33, 9 }
 0x117   : > { %v4385_v35 = vrot.slane %v4383_v15, 4  ;;  %v4386_v10 = vrot.slane %v7751_v60, 5  ;;  %v3819_v41 = vshll.u32 %v7785_v32, 16  ;;  %v3816_v30 = vor.u32 %v3815_v44, %v7788_v2 }
 0x118   : > { %v3824_v55 = vshrl.u32 %v5318_v8, 16  ;;  %v3827_v46 = vshll.u32 %v5318_v8, 16  ;;  %v8823_v61 = vcombine.low %v7351_v9, %v7356_v47  ;;  %v3783_v40 = vrot.slane %v3782_v16, 4 }
 0x119   : > { %v7795_v28 = vpop.f32.mrf.mxu0  ;;  %5826 = vmatmul.mubr.msk.bf16.gmra.mxu0 %vm658_vm3, %v5965_v13  ;;  %v3806_v13 = vor.u32 %v3805_v7, %v3802_v37  ;;  %v3793_v33 = vrot.slane %v3792_v34, 4  ;;  %v3833_v60 = vshll.u32 %v7799_v59, 16  ;;  %v3750_v37 = vsel %vm6068_vm4, %v7776_v3, %v7721_v25 }
 0x11a   : > { %5865 = vmatprep.mubr.msk.bf16.mxu0 %vm658_vm3, %v8821_v24  ;;  %v3837_v24 = vshrl.u32 %v7799_v59, 16  ;;  %v3764_v9 = vsel %vm6068_vm4, %v3759_v51, %v7738_v50  ;;  %v7831_v47 = vsel %vm6354_vm7, %v5392_v26, %v4376_v54  ;;  %v7835_v7 = vsel %vm6354_vm7, %v4378_v62, %v4379_v49  ;;  %v5378_v54 = vld [vmem:[%s6024_s23 + $0x84] sm:$0xe]  ;;  %v8862_v31 = vld [vmem:[#allocation24_spill] sm:$0xff] }
 0x11b   : > { %v7807_v19 = vpop.f32.mrf.mxu0  ;;  %v7843_v25 = vsel %vm6354_vm7, %v5393_v56, %v4383_v15  ;;  %v7847_v50 = vsel %vm6354_vm7, %v4385_v35, %v4386_v10  ;;  %v3821_v3 = vrot.slane %v3819_v41, 5  ;;  %v3807_v62 = vrot.slane %v3806_v13, 4  ;;  %v7871_v13 = vld [vmem:[%s6024_s23 + $0x98] sm:$0x1] }
 0x11c   : > { %8822 = vst [vmem:[#allocation25_spill] sm:$0xff] %v7807_v19  ;;  %v7810_v42 = vpop.f32.mrf.mxu1  ;;  %5792 = vmatmul.mubr.msk.bf16.gmra.mxu1 %vm658_vm3, %v8823_v61  ;;  %v3817_v49 = vrot.slane %v3816_v30, 4  ;;  %v3826_v16 = vrot.slane %v3824_v55, 4  ;;  %v3829_v34 = vrot.slane %v3827_v46, 5  ;;  %v3788_v15 = vsel %vm6068_vm4, %v3783_v40, %v7764_v18  ;;  %v5321_v30 = vld [vmem:[%s6024_s23 + $0x9c] sm:$0xf] }
 0x11d   : > { %v7818_v19 = vpop.f32.mrf.mxu0  ;;  %5831 = vmatprep.mubr.msk.bf16.mxu1 %vm658_vm3, %v7502_v27  ;;  %v3774_v27 = vsel %vm6068_vm4, %v3769_v11, %v3773_v45  ;;  %v3798_v45 = vsel %vm6068_vm4, %v3793_v33, %v3797_v14  ;;  %v7859_v51 = vrot.slane %v3833_v60, 5  ;;  %v3839_v11 = vrot.slane %v3837_v24, 4  ;;  %v7902_v24 = vld [vmem:[%s6024_s23 + $0xa0] sm:$0xf] }
 0x11e   : > { %v7837_v44 = vpop.f32.mrf.mxu1  ;;  %v8824_v35 = vcombine.low %v7472_v48, %v7476_v38  ;;  %v5407_v10 = vcombine.low %v7695_v43, %v7712_v17  ;;  %v5408_v41 = vcombine.low %v7747_v58, %v7780_v36  ;;  %v5394_v18 = vrot.slane %v5378_v54, 9 }
 0x11f   : > { %v7850_v26 = vpop.f32.mrf.mxu0  ;;  %v4390_v14 = vrot.slane %v7733_v4, 5  ;;  %v8825_v48 = vcombine.low %v7555_v6, %v7559_v22  ;;  %v8826_v38 = vsel %vm6068_vm4, %v7714_v29, %v7673_v39  ;;  %v7887_v61 = vcombine.low %v3764_v9, %v3774_v27  ;;  %v5379_v29 = vld [vmem:[%s6024_s23 + $0x90] sm:$0xe]  ;;  %v8833_v4 = vld [vmem:[#allocation2_spill] sm:$0xff] }
 0x120   : > { %v7852_v8 = vpop.f32.mrf.mxu1  ;;  %v7885_v46 = vcombine.low %v8826_v38, %v3750_v37  ;;  %v7893_v60 = vcombine.low %v3788_v15, %v3798_v45  ;;  %v3812_v6 = vsel %vm6068_vm4, %v3807_v62, %v7788_v2  ;;  %v3822_v22 = vsel %vm6068_vm4, %v3817_v49, %v3821_v3 }
 0x121   : > { %v5663_v56 = vpop.f32.mrf.mxu0  ;;  %5866 = vmatmul.mubr.msk.bf16.vlgmr.msra.gmra.mxu0 %vm658_vm3, %v8824_v35  ;;  %v3830_v39 = vor.u32 %v3829_v34, %v3826_v16  ;;  %v3840_v9 = vor.u32 %v3839_v11, %v7859_v51  ;;  %v3843_v27 = vshll.u32 %v7871_v13, 16  ;;  %v3848_v54 = vshrl.u32 %v5321_v30, 16 }
 0x122   : > { %v7874_v55 = vpop.f32.mrf.mxu1  ;;  %5869 = vmatprep.mubr.msk.bf16.mxu0 %vm658_vm3, %v8825_v48  ;;  %v3851_v15 = vshll.u32 %v5321_v30, 16  ;;  %v7913_v3 = vsel %vm6354_vm7, %v5394_v18, %v4390_v14  ;;  %v4392_v62 = vrot.slane %v4390_v14, 4  ;;  %v4393_v49 = vrot.slane %v7785_v32, 5 }
 0x123   : > { %v1462_v33 = vpop.f32.mrf.mxu0  ;;  %v5395_v16 = vrot.slane %v5379_v29, 9  ;;  %v4397_v34 = vrot.slane %v7799_v59, 5  ;;  %v3857_v11 = vshll.u32 %v7902_v24, 16  ;;  %v3861_v35 = vshrl.u32 %v7902_v24, 16 }
 0x124   : > { %v5629_v37 = vpop.f32.mrf.mxu1  ;;  %5832 = vmatmul.mubr.msk.bf16.vlgmr.msra.gmra.mxu1 %vm658_vm3, %v7504_v57  ;;  %v7922_v48 = vcombine.low %v3812_v6, %v3822_v22  ;;  %v7924_v18 = vrot.slane %v3830_v39, 4  ;;  %v3841_v32 = vrot.slane %v3840_v9, 4  ;;  %v3845_v38 = vrot.slane %v3843_v27, 5  ;;  %v5324_v22 = vld [vmem:[%s6024_s23 + $0xa8] sm:$0xf] }
 0x125   : > { %v1046_v45 = vadd.f32 %v5629_v37, %v7400_v5  ;;  %v5664_v2 = vpop.f32.mrf.mxu0  ;;  %5835 = vmatprep.mubr.msk.bf16.mxu1 %vm658_vm3, %v7651_v23  ;;  %v3850_v29 = vrot.slane %v3848_v54, 4  ;;  %v3853_v59 = vrot.slane %v3851_v15, 5  ;;  %v4400_v6 = vrot.slane %v7871_v13, 5  ;;  %v7950_v27 = vld [vmem:[%s6024_s23 + $0xac] sm:$0xf] }
 0x126   : > { %v1037_v57 = vpop.f32.mrf.mxu1  ;;  %v3863_v9 = vrot.slane %v3861_v35, 4  ;;  %v8830_v35 = vld [vmem:[#allocation8_spill] sm:$0xff] }
 0x127   : > { %v7919_v5 = vadd.f32 %v5663_v56, %v1046_v45  ;;  %v1038_v23 = vadd.f32 %v1037_v57, %v7424_v20  ;;  %v1465_v30 = vpop.f32.mrf.mxu0  ;;  %v8827_v45 = vcombine.low %v7592_v63, %v7618_v52  ;;  %v7935_v20 = vsel %vm6354_vm7, %v4392_v62, %v4393_v49  ;;  %v5380_v62 = vld [vmem:[%s6024_s23 + $0x9c] sm:$0xe] }
 0x128   : > { %v5630_v14 = vpop.f32.mrf.mxu1  ;;  %v4399_v63 = vrot.slane %v4397_v34, 4  ;;  %v7947_v52 = vrot.slane %v3857_v11, 5  ;;  %v4404_v49 = vrot.slane %v7902_v24, 5  ;;  %v3881_v24 = vshll.u32 %v7950_v27, 16 }
 0x129   : > { %v7926_v37 = vadd.f32 %v1462_v33, %v1038_v23  ;;  %v1049_v40 = vadd.f32 %v5630_v14, %v7443_v53  ;;  %v5667_v56 = vpop.f32.mrf.mxu0  ;;  %5870 = vmatmul.mubr.msk.bf16.gmra.mxu0 %vm658_vm3, %v8827_v45  ;;  %v8828_v33 = vcombine.low %v7657_v21, %v7661_v1  ;;  %v7945_v53 = vsel %vm6354_vm7, %v5395_v16, %v4397_v34  ;;  %v5323_v1 = vld [vmem:[%s6024_s23 + $0xa4] sm:$0x1]  ;;  %v8829_v16 = vld [vmem:[#allocation11_spill] sm:$0xff] }
 0x12a   : > { %v1040_v39 = vpop.f32.mrf.mxu1  ;;  %v3836_v21 = vsel %vm6068_vm4, %v7924_v18, %v7859_v51  ;;  %v3872_v34 = vshrl.u32 %v5324_v22, 16  ;;  %v8831_v51 = vld [vmem:[#allocation16_spill] sm:$0xff]  ;;  %v3885_v18 = vshrl.u32 %v7950_v27, 16 }
 0x12b   : > { %5873 = vmatprep.mubr.msk.bf16.mxu0 %vm658_vm3, %v8828_v33  ;;  %v7952_v54 = vadd.f32 %v5664_v2, %v1049_v40  ;;  %v1041_v13 = vadd.f32 %v1040_v39, %v7488_v12  ;;  %v1478_v15 = vpop.f32.mrf.mxu0  ;;  %v3846_v40 = vsel %vm6068_vm4, %v3841_v32, %v3845_v38  ;;  %v3854_v2 = vor.u32 %v3853_v59, %v3850_v29  ;;  %v8832_v59 = vld [vmem:[#allocation12_spill] sm:$0xff] }
 0x12c   : > { %v5633_v57 = vpop.f32.mrf.mxu1  ;;  %5836 = vmatmul.mubr.msk.bf16.gmra.mxu1 %vm658_vm3, %v8829_v16  ;;  %v3875_v12 = vshll.u32 %v5324_v22, 16  ;;  %v7975_v39 = vsel %vm6354_vm7, %v4399_v63, %v4400_v6  ;;  %v3864_v32 = vor.u32 %v3863_v9, %v7947_v52  ;;  %v3867_v38 = vshll.u32 %v5323_v1, 16 }
 0x12d   : > { %v7966_v11 = vadd.f32 %v1465_v30, %v1041_v13  ;;  %v1062_v23 = vadd.f32 %v5633_v57, %v8830_v35  ;;  %v5668_v14 = vpop.f32.mrf.mxu0  ;;  %5839 = vmatprep.mubr.msk.bf16.mxu1 %vm658_vm3, %v8831_v51  ;;  %v5396_v30 = vrot.slane %v5380_v62, 9  ;;  %v4406_v13 = vrot.slane %v4404_v49, 4 }
 0x12e   : > { %v1053_v45 = vpop.f32.mrf.mxu1  ;;  %v4407_v57 = vrot.slane %v5323_v1, 5  ;;  %v7983_v51 = vrot.slane %v3854_v2, 4  ;;  %v3874_v6 = vrot.slane %v3872_v34, 4  ;;  %v3877_v63 = vrot.slane %v3875_v12, 5  ;;  %v7993_v1 = vld [vmem:[%s6024_s23 + $0xb0] sm:$0x1] }
 0x12f   : > { %v7978_v29 = vadd.f32 %v5667_v56, %v1062_v23  ;;  %v1054_v22 = vadd.f32 %v1053_v45, %v8832_v59  ;;  %v1481_v33 = vpop.f32.mrf.mxu0  ;;  %v7995_v23 = vrot.slane %v3881_v24, 5  ;;  %v3887_v2 = vrot.slane %v3885_v18, 4  ;;  %v8834_v12 = vld [vmem:[#allocation14_spill] sm:$0xff] }
 0x130   : > { %v5634_v16 = vpop.f32.mrf.mxu1  ;;  %v8005_v43 = vrot.slane %v3864_v32, 4  ;;  %v8007_v17 = vrot.slane %v3867_v38, 5  ;;  %v8015_v58 = vsel %vm6354_vm7, %v5396_v30, %v4404_v49  ;;  %v8019_v36 = vsel %vm6354_vm7, %v4406_v13, %v4407_v57  ;;  %v8031_v30 = vld [vmem:[%s6024_s23 + $0xb8] sm:$0xf] }
 0x131   : > { %v7985_v9 = vadd.f32 %v1478_v15, %v1054_v22  ;;  %v1065_v62 = vadd.f32 %v5634_v16, %v8833_v4  ;;  %v5671_v56 = vpop.f32.mrf.mxu0  ;;  %5874 = vmatmul.mubr.msk.bf16.gmra.mxu0 %vm658_vm3, %v5407_v10  ;;  %v8001_v15 = vcombine.low %v3836_v21, %v3846_v40  ;;  %v5381_v10 = vld [vmem:[%s6024_s23 + $0xa8] sm:$0xe]  ;;  %v3878_v32 = vor.u32 %v3877_v63, %v3874_v6  ;;  %v8836_v22 = vld [vmem:[#allocation9_spill] sm:$0xff] }
 0x132   : > { %v1056_v45 = vpop.f32.mrf.mxu1  ;;  %5877 = vmatprep.mubr.msk.bf16.mxu0 %vm658_vm3, %v5408_v41  ;;  %v5327_v41 = vld [vmem:[%s6024_s23 + $0xb4] sm:$0xf]  ;;  %v8835_v40 = vld [vmem:[#allocation19_spill] sm:$0xff]  ;;  %v3891_v38 = vshll.u32 %v7993_v1, 16  ;;  %v4411_v49 = vrot.slane %v7950_v27, 5  ;;  %v3888_v16 = vor.u32 %v3887_v2, %v7995_v23  ;;  %v3870_v27 = vsel %vm6068_vm4, %v8005_v43, %v8007_v17 }
 0x133   : > { %v8010_v34 = vadd.f32 %v5668_v14, %v1065_v62  ;;  %v1057_v24 = vadd.f32 %v1056_v45, %v8834_v12  ;;  %v1494_v18 = vpop.f32.mrf.mxu0  ;;  %v5397_v62 = vrot.slane %v5381_v10, 9  ;;  %v3896_v6 = vshrl.u32 %v5327_v41, 16 }
 0x134   : > { %v5637_v21 = vpop.f32.mrf.mxu1  ;;  %5840 = vmatmul.mubr.msk.bf16.gmra.mxu1 %vm658_vm3, %v8835_v40  ;;  %v3899_v63 = vshll.u32 %v5327_v41, 16  ;;  %v3905_v2 = vshll.u32 %v8031_v30, 16  ;;  %v3909_v10 = vshrl.u32 %v8031_v30, 16  ;;  %v5330_v40 = vld [vmem:[%s6024_s23 + $0xc0] sm:$0xf]  ;;  %v3879_v4 = vrot.slane %v3878_v32, 4 }
 0x135   : > { %v8033_v59 = vadd.f32 %v1481_v33, %v1057_v24  ;;  %v1078_v13 = vadd.f32 %v5637_v21, %v8836_v22  ;;  %v5672_v57 = vpop.f32.mrf.mxu0  ;;  %5843 = vmatprep.mubr.msk.bf16.mxu1 %vm658_vm3, %v7885_v46  ;;  %v8838_v24 = vld [vmem:[#allocation18_spill] sm:$0xff]  ;;  %v3893_v43 = vrot.slane %v3891_v38, 5  ;;  %v4413_v17 = vrot.slane %v4411_v49, 4 }
 0x136   : > { %v1069_v45 = vpop.f32.mrf.mxu1  ;;  %v4414_v33 = vrot.slane %v7993_v1, 5  ;;  %v8061_v14 = vsel %vm6354_vm7, %v5397_v62, %v4411_v49  ;;  %v8064_v32 = vld [vmem:[%s6024_s23 + $0xc4] sm:$0xf]  ;;  %v8842_v1 = vcombine.low %v7843_v25, %v7847_v50  ;;  %v8076_v62 = vrot.slane %v3905_v2, 5 }
 0x137   : > { %v8045_v12 = vadd.f32 %v5671_v56, %v1078_v13  ;;  %v1070_v21 = vadd.f32 %v1069_v45, %v8838_v24  ;;  %v1497_v46 = vpop.f32.mrf.mxu0  ;;  %v8840_v56 = vld [vmem:[#allocation21_spill] sm:$0xff]  ;;  %v8841_v45 = vcombine.low %v7831_v47, %v7835_v7  ;;  %v3889_v24 = vrot.slane %v3888_v16, 4  ;;  %v8843_v16 = vld [vmem:[#allocation23_spill] sm:$0xff] }
 0x138   : > { %v5638_v22 = vpop.f32.mrf.mxu1  ;;  %v3920_v47 = vshrl.u32 %v5330_v40, 16  ;;  %v3923_v7 = vshll.u32 %v5330_v40, 16  ;;  %v3884_v25 = vsel %vm6068_vm4, %v3879_v4, %v7995_v23  ;;  %v8085_v50 = vsel %vm6354_vm7, %v4413_v17, %v4414_v33  ;;  %v5382_v40 = vld [vmem:[%s6024_s23 + $0xb4] sm:$0xe] }
 0x139   : > { %8837 = vst [vmem:[#allocation11_spill] sm:$0xff] %v8045_v12  ;;  %v8052_v35 = vadd.f32 %v1494_v18, %v1070_v21  ;;  %v1081_v41 = vadd.f32 %v5638_v22, %v8840_v56  ;;  %v5675_v13 = vpop.f32.mrf.mxu0  ;;  %5878 = vmatmul.mubr.msk.bf16.gmra.mxu0 %vm658_vm3, %v8841_v45  ;;  %v8071_v18 = vld [vmem:[%s6024_s23 + $0xbc] sm:$0x1]  ;;  %v3898_v21 = vrot.slane %v3896_v6, 4  ;;  %v3901_v22 = vrot.slane %v3899_v63, 5 }
 0x13a   : > { %v1072_v38 = vpop.f32.mrf.mxu1  ;;  %5881 = vmatprep.mubr.msk.bf16.mxu0 %vm658_vm3, %v8842_v1  ;;  %v3933_v6 = vshrl.u32 %v8064_v32, 16  ;;  %v3915_v23 = vshll.u32 %v8071_v18, 16  ;;  %v4418_v17 = vrot.slane %v8031_v30, 5  ;;  %v8844_v1 = vld [vmem:[#allocation25_spill] sm:$0xff] }
 0x13b   : > { %8839 = vst [vmem:[#allocation8_spill] sm:$0xff] %v8052_v35  ;;  %v8073_v56 = vadd.f32 %v5672_v57, %v1081_v41  ;;  %v1073_v45 = vadd.f32 %v1072_v38, %v8843_v16  ;;  %v1510_v49 = vpop.f32.mrf.mxu0  ;;  %v3911_v35 = vrot.slane %v3909_v10, 4  ;;  %v3929_v57 = vshll.u32 %v8064_v32, 16 }
 0x13c   : > { %v5641_v12 = vpop.f32.mrf.mxu1  ;;  %5844 = vmatmul.mubr.msk.bf16.gmra.mxu1 %vm658_vm3, %v7887_v61  ;;  %v3894_v61 = vsel %vm6068_vm4, %v3889_v24, %v3893_v43  ;;  %v3902_v33 = vor.u32 %v3901_v22, %v3898_v21  ;;  %v3922_v41 = vrot.slane %v3920_v47, 4  ;;  %v3925_v38 = vrot.slane %v3923_v7, 5 }
 0x13d   : > { %v8089_v63 = vadd.f32 %v1497_v46, %v1073_v45  ;;  %v1094_v2 = vadd.f32 %v5641_v12, %v7795_v28  ;;  %v5676_v10 = vpop.f32.mrf.mxu0  ;;  %5847 = vmatprep.mubr.msk.bf16.mxu1 %vm658_vm3, %v7893_v60  ;;  %v8845_v60 = vsel %vm6068_vm4, %v7983_v51, %v7947_v52  ;;  %v3912_v24 = vor.u32 %v3911_v35, %v8076_v62 }
 0x13e   : > { %v1085_v4 = vpop.f32.mrf.mxu1  ;;  %v8107_v43 = vcombine.low %v8845_v60, %v3870_v27  ;;  %v8110_v30 = vcombine.low %v3884_v25, %v3894_v61  ;;  %v8114_v22 = vrot.slane %v3929_v57, 5  ;;  %v3935_v47 = vrot.slane %v3933_v6, 4  ;;  %v5332_v27 = vld [vmem:[%s6024_s23 + $0xc8] sm:$0x1] }
 0x13f   : > { %v8099_v46 = vadd.f32 %v5675_v13, %v1094_v2  ;;  %v1086_v28 = vadd.f32 %v1085_v4, %v8844_v1  ;;  %v1513_v12 = vpop.f32.mrf.mxu0  ;;  %v5414_v13 = vcombine.low %v8061_v14, %v8085_v50  ;;  %v8846_v52 = vcombine.low %v7913_v3, %v7935_v20  ;;  %v5333_v14 = vld [vmem:[%s6024_s23 + $0xcc] sm:$0xf]  ;;  %v8135_v20 = vld [vmem:[%s6024_s23 + $0xd0] sm:$0xf]  ;;  %v5383_v4 = vld [vmem:[%s6024_s23 + $0xc0] sm:$0xe] }
 0x140   : > { %v5642_v21 = vpop.f32.mrf.mxu1  ;;  %v8123_v35 = vrot.slane %v3915_v23, 5  ;;  %v5398_v51 = vrot.slane %v5382_v40, 9  ;;  %v8847_v50 = vcombine.low %v7945_v53, %v7975_v39  ;;  %v4421_v57 = vrot.slane %v8071_v18, 5 }
 0x141   : > { %v8116_v7 = vadd.f32 %v1510_v49, %v1086_v28  ;;  %v1097_v16 = vadd.f32 %v5642_v21, %v7818_v19  ;;  %v5679_v45 = vpop.f32.mrf.mxu0  ;;  %5882 = vmatmul.mubr.msk.bf16.gmra.mxu0 %vm658_vm3, %v8846_v52  ;;  %v8131_v49 = vrot.slane %v3902_v33, 4  ;;  %v4420_v19 = vrot.slane %v4418_v17, 4 }
 0x142   : > { %v1088_v25 = vpop.f32.mrf.mxu1  ;;  %5885 = vmatprep.mubr.msk.bf16.mxu0 %vm658_vm3, %v8847_v50  ;;  %v3926_v3 = vor.u32 %v3925_v38, %v3922_v41  ;;  %v8140_v23 = vrot.slane %v3912_v24, 4  ;;  %v4425_v53 = vrot.slane %v8064_v32, 5  ;;  %v3936_v33 = vor.u32 %v3935_v47, %v8114_v22 }
 0x143   : > { %v8137_v6 = vadd.f32 %v5676_v10, %v1097_v16  ;;  %v1089_v2 = vadd.f32 %v1088_v25, %v7850_v26  ;;  %v1526_v61 = vpop.f32.mrf.mxu0  ;;  %v3939_v18 = vshll.u32 %v5332_v27, 16  ;;  %v3944_v40 = vshrl.u32 %v5333_v14, 16  ;;  %v8850_v10 = vld [vmem:[#allocation4_spill] sm:$0xff]  ;;  %v8851_v16 = vld [vmem:[#allocation3_spill] sm:$0xff] }
 0x144   : > { %v5645_v39 = vpop.f32.mrf.mxu1  ;;  %5848 = vmatmul.mubr.msk.bf16.gmra.mxu1 %vm658_vm3, %v7922_v48  ;;  %v3947_v41 = vshll.u32 %v5333_v14, 16  ;;  %v3953_v28 = vshll.u32 %v8135_v20, 16  ;;  %v3957_v32 = vshrl.u32 %v8135_v20, 16  ;;  %v4419_v48 = vsel %vm6354_vm7, %v5398_v51, %v4418_v17  ;;  %v8852_v17 = vld [vmem:[#allocation6_spill] sm:$0xff] }
 0x145   : > { %8848 = vst [vmem:[#allocation16_spill] sm:$0xff] %v8137_v6  ;;  %v8147_v38 = vadd.f32 %v1513_v12, %v1089_v2  ;;  %v1110_v1 = vadd.f32 %v5645_v39, %v8850_v10  ;;  %v5680_v26 = vpop.f32.mrf.mxu0  ;;  %5851 = vmatprep.mubr.msk.bf16.mxu1 %vm658_vm3, %v8001_v15  ;;  %v4422_v24 = vsel %vm6354_vm7, %v4420_v19, %v4421_v57  ;;  %v3927_v21 = vrot.slane %v3926_v3, 4 }
 0x146   : > { %v1101_v60 = vpop.f32.mrf.mxu1  ;;  %v5399_v12 = vrot.slane %v5383_v4, 9  ;;  %v4427_v25 = vrot.slane %v4425_v53, 4  ;;  %v4428_v15 = vrot.slane %v5332_v27, 5  ;;  %v3937_v2 = vrot.slane %v3936_v33, 4  ;;  %v5335_v33 = vld [vmem:[%s6024_s23 + $0xd4] sm:$0x1] }
 0x147   : > { %8849 = vst [vmem:[#allocation12_spill] sm:$0xff] %v8147_v38  ;;  %v8158_v47 = vadd.f32 %v5679_v45, %v1110_v1  ;;  %v1102_v52 = vadd.f32 %v1101_v60, %v8851_v16  ;;  %v1529_v14 = vpop.f32.mrf.mxu0  ;;  %v3941_v39 = vrot.slane %v3939_v18, 5  ;;  %v3946_v10 = vrot.slane %v3944_v40, 4  ;;  %v8854_v18 = vld [vmem:[#allocation5_spill] sm:$0xff] }
 0x148   : > { %v5646_v50 = vpop.f32.mrf.mxu1  ;;  %v3949_v38 = vrot.slane %v3947_v41, 5  ;;  %v8853_v45 = vcombine.low %v8015_v58, %v8019_v36  ;;  %v8168_v57 = vrot.slane %v3953_v28, 5  ;;  %v3959_v27 = vrot.slane %v3957_v32, 4 }
 0x149   : > { %v8161_v6 = vadd.f32 %v1526_v61, %v1102_v52  ;;  %v1113_v51 = vadd.f32 %v5646_v50, %v8852_v17  ;;  %v5683_v19 = vpop.f32.mrf.mxu0  ;;  %v3908_v61 = vsel %vm6068_vm4, %v8131_v49, %v8076_v62  ;;  %v3918_v4 = vsel %vm6068_vm4, %v8140_v23, %v8123_v35  ;;  %v5384_v62 = vld [vmem:[%s6024_s23 + $0xcc] sm:$0xe] }
 0x14a   : > { %5886 = vmatmul.mubr.msk.bf16.gmra.mxu0 %vm658_vm3, %v8853_v45  ;;  %v1104_v3 = vpop.f32.mrf.mxu1  ;;  %v4432_v58 = vrot.slane %v8135_v20, 5  ;;  %v4429_v1 = vsel %vm6354_vm7, %v4427_v25, %v4428_v15  ;;  %v5415_v35 = vcombine.low %v4419_v48, %v4422_v24  ;;  %v3932_v20 = vsel %vm6068_vm4, %v3927_v21, %v8114_v22  ;;  %v8856_v25 = vld [vmem:[#allocation10_spill] sm:$0xff] }
 0x14b   : > { %5889 = vmatprep.mubr.msk.bf16.mxu0 %vm658_vm3, %v5414_v13  ;;  %v8181_v36 = vadd.f32 %v5680_v26, %v1113_v51  ;;  %v1105_v40 = vadd.f32 %v1104_v3, %v8854_v18  ;;  %v1542_v41 = vpop.f32.mrf.mxu0  ;;  %v4426_v13 = vsel %vm6354_vm7, %v5399_v12, %v4425_v53  ;;  %v3942_v23 = vsel %vm6068_vm4, %v3937_v2, %v3941_v39  ;;  %v8855_v53 = vld [vmem:[#allocation7_spill] sm:$0xff] }
 0x14c   : > { %v5649_v49 = vpop.f32.mrf.mxu1  ;;  %5852 = vmatmul.mubr.msk.bf16.gmra.mxu1 %vm658_vm3, %v8107_v43  ;;  %v3950_v26 = vor.u32 %v3949_v38, %v3946_v10  ;;  %v3960_v12 = vor.u32 %v3959_v27, %v8168_v57  ;;  %v3963_v43 = vshll.u32 %v5335_v33, 16  ;;  %v5416_v24 = vcombine.low %v4426_v13, %v4429_v1 }
 0x14d   : > { %v8196_v28 = vadd.f32 %v1529_v14, %v1105_v40  ;;  %v1126_v32 = vadd.f32 %v5649_v49, %v8855_v53  ;;  %v5684_v60 = vpop.f32.mrf.mxu0  ;;  %5855 = vmatprep.mubr.msk.bf16.mxu1 %vm658_vm3, %v8110_v30  ;;  %v5400_v16 = vrot.slane %v5384_v62, 9  ;;  %v4434_v52 = vrot.slane %v4432_v58, 4  ;;  %v8857_v30 = vld [vmem:[#allocation13_spill] sm:$0xff] }
 0x14e   : > { %v1117_v48 = vpop.f32.mrf.mxu1  ;;  %v4435_v22 = vrot.slane %v5335_v33, 5  ;;  %v5350_v50 = vcombine.low %v3908_v61, %v3918_v4  ;;  %v5351_v2 = vcombine.low %v3932_v20, %v3942_v23  ;;  %v3951_v39 = vrot.slane %v3950_v26, 4  ;;  %v8858_v33 = vld [vmem:[#allocation15_spill] sm:$0xff]  ;;  %v8859_v62 = vld [vmem:[#allocation17_spill] sm:$0xff]  ;;  %v8860_v26 = vld [vmem:[#allocation20_spill] sm:$0xff] }
 0x14f   : > { %v8202_v21 = vadd.f32 %v5683_v19, %v1126_v32  ;;  %v1118_v38 = vadd.f32 %v1117_v48, %v8856_v25  ;;  %v1545_v14 = vpop.f32.mrf.mxu0  ;;  %v3961_v45 = vrot.slane %v3960_v12, 4  ;;  %v3965_v27 = vrot.slane %v3963_v43, 5  ;;  %v8861_v43 = vld [vmem:[#allocation22_spill] sm:$0xff] }
 0x150   : > { %v5650_v15 = vpop.f32.mrf.mxu1  ;;  %v4433_v19 = vsel %vm6354_vm7, %v5400_v16, %v4432_v58  ;;  %v4436_v61 = vsel %vm6354_vm7, %v4434_v52, %v4435_v22  ;;  %v3956_v13 = vsel %vm6068_vm4, %v3951_v39, %v8168_v57 }
 0x151   : > { %v8205_v10 = vadd.f32 %v1542_v41, %v1118_v38  ;;  %v1129_v17 = vadd.f32 %v5650_v15, %v8857_v30  ;;  %v5687_v51 = vpop.f32.mrf.mxu0  ;;  %v3966_v0 = vsel %vm6068_vm4, %v3961_v45, %v3965_v27 }
 0x152   : > { %5890 = vmatmul.mubr.msk.bf16.gmra.mxu0 %vm658_vm3, %v5415_v35  ;;  %v1120_v3 = vpop.f32.mrf.mxu1  ;;  %v5417_v35 = vcombine.low %v4433_v19, %v4436_v61  ;;  %v5352_v12 = vcombine.low %v3956_v13, %v3966_v0 }
 0x153   : > { %5893 = vmatprep.mubr.msk.bf16.mxu0 %vm658_vm3, %v5416_v24  ;;  %v8214_v4 = vadd.f32 %v5684_v60, %v1129_v17  ;;  %v1121_v18 = vadd.f32 %v1120_v3, %v8858_v33  ;;  %v1558_v40 = vpop.f32.mrf.mxu0 }
 0x154   : > { %v5653_v41 = vpop.f32.mrf.mxu1  ;;  %5856 = vmatmul.mubr.msk.bf16.gmra.mxu1 %vm658_vm3, %v5350_v50 }
 0x155   : > { %v8221_v1 = vadd.f32 %v1545_v14, %v1121_v18  ;;  %v1142_v49 = vadd.f32 %v5653_v41, %v8859_v62  ;;  %v5688_v58 = vpop.f32.mrf.mxu0  ;;  %5859 = vmatprep.mubr.msk.bf16.mxu1 %vm658_vm3, %v5351_v2 }
 0x156   : > { %v1133_v20 = vpop.f32.mrf.mxu1 }
 0x157   : > { %v8227_v23 = vadd.f32 %v5687_v51, %v1142_v49  ;;  %v1134_v53 = vadd.f32 %v1133_v20, %v8860_v26  ;;  %v1561_v32 = vpop.f32.mrf.mxu0 }
 0x158   : > { %v5654_v60 = vpop.f32.mrf.mxu1 }
 0x159   : > { %v8230_v57 = vadd.f32 %v1558_v40, %v1134_v53  ;;  %v1145_v48 = vadd.f32 %v5654_v60, %v8861_v43  ;;  %v5691_v24 = vpop.f32.mrf.mxu0 }
 0x15a   : > { %5894 = vmatmul.mubr.msk.bf16.gmra.mxu0 %vm658_vm3, %v5417_v35  ;;  %v1136_v16 = vpop.f32.mrf.mxu1 }
 0x15b   : > { %v8234_v52 = vadd.f32 %v5688_v58, %v1145_v48  ;;  %v1137_v22 = vadd.f32 %v1136_v16, %v8862_v31  ;;  %v1574_v25 = vpop.f32.mrf.mxu0 }
 0x15c   : > { %v5657_v38 = vpop.f32.mrf.mxu1  ;;  %5860 = vmatmul.mubr.msk.bf16.gmra.mxu1 %vm658_vm3, %v5352_v12 }
 0x15d   : > { %v8238_v14 = vadd.f32 %v1561_v32, %v1137_v22  ;;  %v1158_v15 = vadd.f32 %v5657_v38, %v7810_v42  ;;  %v5692_v50 = vpop.f32.mrf.mxu0 }
 0x15e   : > { %v1149_v2 = vpop.f32.mrf.mxu1 }
 0x15f   : > { %v8241_v39 = vadd.f32 %v5691_v24, %v1158_v15  ;;  %v1150_v30 = vadd.f32 %v1149_v2, %v7837_v44  ;;  %v1577_v17 = vpop.f32.mrf.mxu0 }
 0x160   : > { %v5658_v51 = vpop.f32.mrf.mxu1 }
 0x161   : > { %v8244_v45 = vadd.f32 %v1574_v25, %v1150_v30  ;;  %v1161_v27 = vadd.f32 %v5658_v51, %v7852_v8  ;;  %v5731_v3 = vpop.f32.mrf.mxu0  ;;  %v8863_v30 = vld [vmem:[#allocation11_spill] sm:$0xff] }
 0x162   : > { %v1152_v19 = vpop.f32.mrf.mxu1 }
 0x163   : > { %v8247_v61 = vadd.f32 %v5692_v50, %v1161_v27  ;;  %v1153_v33 = vadd.f32 %v1152_v19, %v7874_v55  ;;  %v2547_v18 = vpop.f32.mrf.mxu0 }
 0x164   : > { %v5697_v42 = vpop.f32.mrf.mxu1 }
 0x165   : > { %v8250_v40 = vadd.f32 %v1577_v17, %v1153_v33  ;;  %v1950_v41 = vadd.f32 %v5697_v42, %v7919_v5  ;;  %v5732_v13 = vpop.f32.mrf.mxu0 }
 0x166   : > { %v1821_v44 = vpop.f32.mrf.mxu1 }
 0x167   : > { %v8253_v62 = vadd.f32 %v5731_v3, %v1950_v41  ;;  %v1948_v49 = vadd.f32 %v1821_v44, %v7926_v37  ;;  %v2550_v58 = vpop.f32.mrf.mxu0  ;;  %v8864_v3 = vld [vmem:[#allocation8_spill] sm:$0xff] }
 0x168   : > { %v5698_v8 = vpop.f32.mrf.mxu1 }
 0x169   : > { %v8256_v0 = vadd.f32 %v2547_v18, %v1948_v49  ;;  %v1951_v35 = vadd.f32 %v5698_v8, %v7952_v54  ;;  %v5735_v20 = vpop.f32.mrf.mxu0 }
 0x16a   : > { %v1824_v55 = vpop.f32.mrf.mxu1 }
 0x16b   : > { %v8259_v26 = vadd.f32 %v5732_v13, %v1951_v35  ;;  %v1949_v53 = vadd.f32 %v1824_v55, %v7966_v11  ;;  %v2563_v32 = vpop.f32.mrf.mxu0 }
 0x16c   : > { %v5701_v5 = vpop.f32.mrf.mxu1 }
 0x16d   : > { %v8262_v60 = vadd.f32 %v2550_v58, %v1949_v53  ;;  %v1954_v12 = vadd.f32 %v5701_v5, %v7978_v29  ;;  %v5736_v43 = vpop.f32.mrf.mxu0 }
 0x16e   : > { %v1837_v37 = vpop.f32.mrf.mxu1 }
 0x16f   : > { %v8265_v48 = vadd.f32 %v5735_v20, %v1954_v12  ;;  %v1952_v24 = vadd.f32 %v1837_v37, %v7985_v9  ;;  %v2566_v16 = vpop.f32.mrf.mxu0 }
 0x170   : > { %v5702_v54 = vpop.f32.mrf.mxu1 }
 0x171   : > { %v8268_v31 = vadd.f32 %v2563_v32, %v1952_v24  ;;  %v1955_v22 = vadd.f32 %v5702_v54, %v8010_v34  ;;  %v5739_v25 = vpop.f32.mrf.mxu0  ;;  %v8866_v54 = vld [vmem:[#allocation12_spill] sm:$0xff] }
 0x172   : > { %v1840_v11 = vpop.f32.mrf.mxu1 }
 0x173   : > { %v8271_v38 = vadd.f32 %v5736_v43, %v1955_v22  ;;  %v1953_v15 = vadd.f32 %v1840_v11, %v8033_v59  ;;  %v2579_v50 = vpop.f32.mrf.mxu0  ;;  %v8865_v43 = vld [vmem:[#allocation16_spill] sm:$0xff] }
 0x174   : > { %v5705_v29 = vpop.f32.mrf.mxu1 }
 0x175   : > { %v8274_v2 = vadd.f32 %v2566_v16, %v1953_v15  ;;  %v1958_v17 = vadd.f32 %v5705_v29, %v8863_v30  ;;  %v5740_v51 = vpop.f32.mrf.mxu0 }
 0x176   : > { %v1853_v9 = vpop.f32.mrf.mxu1 }
 0x177   : > { %v8277_v27 = vadd.f32 %v5739_v25, %v1958_v17  ;;  %v1956_v19 = vadd.f32 %v1853_v9, %v8864_v3  ;;  %v2582_v33 = vpop.f32.mrf.mxu0 }
 0x178   : > { %v5706_v34 = vpop.f32.mrf.mxu1 }
 0x179   : > { %v8280_v18 = vadd.f32 %v2579_v50, %v1956_v19  ;;  %v1959_v42 = vadd.f32 %v5706_v34, %v8073_v56  ;;  %v5743_v41 = vpop.f32.mrf.mxu0 }
 0x17a   : > { %v1856_v59 = vpop.f32.mrf.mxu1 }
 0x17b   : > { %v8283_v13 = vadd.f32 %v5740_v51, %v1959_v42  ;;  %v1957_v44 = vadd.f32 %v1856_v59, %v8089_v63  ;;  %v2595_v49 = vpop.f32.mrf.mxu0 }
 0x17c   : > { %v5709_v58 = vpop.f32.mrf.mxu1 }
 0x17d   : > { %v8286_v8 = vadd.f32 %v2582_v33, %v1957_v44  ;;  %v1962_v35 = vadd.f32 %v5709_v58, %v8099_v46  ;;  %v5744_v20 = vpop.f32.mrf.mxu0 }
 0x17e   : > { %v1869_v55 = vpop.f32.mrf.mxu1 }
 0x17f   : > { %v8289_v53 = vadd.f32 %v5743_v41, %v1962_v35  ;;  %v1960_v32 = vadd.f32 %v1869_v55, %v8116_v7  ;;  %v2598_v5 = vpop.f32.mrf.mxu0 }
 0x180   : > { %v5710_v56 = vpop.f32.mrf.mxu1 }
 0x181   : > { %v8292_v12 = vadd.f32 %v2595_v49, %v1960_v32  ;;  %v1963_v37 = vadd.f32 %v5710_v56, %v8865_v43  ;;  %v5747_v24 = vpop.f32.mrf.mxu0 }
 0x182   : > { %v1872_v63 = vpop.f32.mrf.mxu1 }
 0x183   : > { %v8295_v16 = vadd.f32 %v5744_v20, %v1963_v37  ;;  %v1961_v22 = vadd.f32 %v1872_v63, %v8866_v54  ;;  %v2611_v25 = vpop.f32.mrf.mxu0 }
 0x184   : > { %v5713_v46 = vpop.f32.mrf.mxu1 }
 0x185   : > { %v8298_v11 = vadd.f32 %v2598_v5, %v1961_v22  ;;  %v1966_v15 = vadd.f32 %v5713_v46, %v8158_v47  ;;  %v5748_v50 = vpop.f32.mrf.mxu0 }
 0x186   : > { %v1885_v7 = vpop.f32.mrf.mxu1 }
 0x187   : > { %v8301_v29 = vadd.f32 %v5747_v24, %v1966_v15  ;;  %v1964_v30 = vadd.f32 %v1885_v7, %v8161_v6  ;;  %v2614_v17 = vpop.f32.mrf.mxu0 }
 0x188   : > { %v5714_v51 = vpop.f32.mrf.mxu1 }
 0x189   : > { %v8304_v9 = vadd.f32 %v2611_v25, %v1964_v30  ;;  %v1967_v3 = vadd.f32 %v5714_v51, %v8181_v36  ;;  %v5751_v19 = vpop.f32.mrf.mxu0 }
 0x18a   : > { %v1888_v33 = vpop.f32.mrf.mxu1 }
 0x18b   : > { %v8307_v34 = vadd.f32 %v5748_v50, %v1967_v3  ;;  %v1965_v42 = vadd.f32 %v1888_v33, %v8196_v28  ;;  %v2627_v41 = vpop.f32.mrf.mxu0 }
 0x18c   : > { %v5717_v47 = vpop.f32.mrf.mxu1 }
 0x18d   : > { %8867 = vst [vmem:[#allocation2_spill] sm:$0xff] %v8307_v34  ;;  %v8310_v59 = vadd.f32 %v2614_v17, %v1965_v42  ;;  %v1970_v44 = vadd.f32 %v5717_v47, %v8202_v21  ;;  %v5752_v49 = vpop.f32.mrf.mxu0 }
 0x18e   : > { %v1901_v6 = vpop.f32.mrf.mxu1 }
 0x18f   : > { %8868 = vst [vmem:[#allocation14_spill] sm:$0xff] %v8310_v59  ;;  %v8313_v58 = vadd.f32 %v5751_v19, %v1970_v44  ;;  %v1968_v35 = vadd.f32 %v1901_v6, %v8205_v10  ;;  %v2630_v20 = vpop.f32.mrf.mxu0 }
 0x190   : > { %v5718_v36 = vpop.f32.mrf.mxu1 }
 0x191   : > { %8869 = vst [vmem:[#allocation19_spill] sm:$0xff] %v8313_v58  ;;  %v8316_v55 = vadd.f32 %v2627_v41, %v1968_v35  ;;  %v1971_v32 = vadd.f32 %v5718_v36, %v8214_v4  ;;  %v5755_v5 = vpop.f32.mrf.mxu0 }
 0x192   : > { %v1904_v28 = vpop.f32.mrf.mxu1 }
 0x193   : > { %8870 = vst [vmem:[#allocation9_spill] sm:$0xff] %v8316_v55  ;;  %v8319_v56 = vadd.f32 %v5752_v49, %v1971_v32  ;;  %v1969_v43 = vadd.f32 %v1904_v28, %v8221_v1  ;;  %v2643_v37 = vpop.f32.mrf.mxu0 }
 0x194   : > { %v5721_v21 = vpop.f32.mrf.mxu1 }
 0x195   : > { %8871 = vst [vmem:[#allocation18_spill] sm:$0xff] %v8319_v56  ;;  %v8322_v24 = vadd.f32 %v2630_v20, %v1969_v43  ;;  %v1974_v63 = vadd.f32 %v5721_v21, %v8227_v23  ;;  %v5756_v54 = vpop.f32.mrf.mxu0 }
 0x196   : > { %v1917_v10 = vpop.f32.mrf.mxu1 }
 0x197   : > { %8872 = vst [vmem:[#allocation21_spill] sm:$0xff] %v8322_v24  ;;  %v8325_v22 = vadd.f32 %v5755_v5, %v1974_v63  ;;  %v1972_v25 = vadd.f32 %v1917_v10, %v8230_v57  ;;  %v2646_v46 = vpop.f32.mrf.mxu0 }
 0x198   : > { %v5722_v4 = vpop.f32.mrf.mxu1 }
 0x199   : > { %8873 = vst [vmem:[#allocation23_spill] sm:$0xff] %v8325_v22  ;;  %v8328_v15 = vadd.f32 %v2643_v37, %v1972_v25  ;;  %v1975_v50 = vadd.f32 %v5722_v4, %v8234_v52  ;;  %v5759_v7 = vpop.f32.mrf.mxu0 }
 0x19a   : > { %v1920_v1 = vpop.f32.mrf.mxu1 }
 0x19b   : > { %8874 = vst [vmem:[#allocation25_spill] sm:$0xff] %v8328_v15  ;;  %v8331_v30 = vadd.f32 %v5756_v54, %v1975_v50  ;;  %v1973_v17 = vadd.f32 %v1920_v1, %v8238_v14  ;;  %v2659_v51 = vpop.f32.mrf.mxu0 }
 0x19c   : > { %v5725_v23 = vpop.f32.mrf.mxu1 }
 0x19d   : > { %8875 = vst [vmem:[#allocation4_spill] sm:$0xff] %v8331_v30  ;;  %v8334_v3 = vadd.f32 %v2646_v46, %v1973_v17  ;;  %v1978_v19 = vadd.f32 %v5725_v23, %v8241_v39  ;;  %v5760_v33 = vpop.f32.mrf.mxu0 }
 0x19e   : > { %v1933_v57 = vpop.f32.mrf.mxu1 }
 0x19f   : > { %8876 = vst [vmem:[#allocation3_spill] sm:$0xff] %v8334_v3  ;;  %v8337_v42 = vadd.f32 %v5759_v7, %v1978_v19  ;;  %v1976_v41 = vadd.f32 %v1933_v57, %v8244_v45  ;;  %v2662_v47 = vpop.f32.mrf.mxu0 }
 0x1a0   : > { %v5726_v52 = vpop.f32.mrf.mxu1 }
 0x1a1   : > { %8877 = vst [vmem:[#allocation6_spill] sm:$0xff] %v8337_v42  ;;  %v8340_v44 = vadd.f32 %v2659_v51, %v1976_v41  ;;  %v1979_v49 = vadd.f32 %v5726_v52, %v8247_v61  ;;  %v8343_v6 = vpop.f32.mrf.mxu0 }
 0x1a2   : > { %v1936_v14 = vpop.f32.mrf.mxu1 }
 0x1a3   : > { %8878 = vst [vmem:[#allocation5_spill] sm:$0xff] %v8340_v44  ;;  %v8345_v35 = vadd.f32 %v5760_v33, %v1979_v49  ;;  %v1977_v20 = vadd.f32 %v1936_v14, %v8250_v40  ;;  %v8348_v39 = vpop.f32.mrf.mxu0 }
 0x1a4   : > { %v5765_v36 = vpop.f32.mrf.mxu1 }
 0x1a5   : > { %8879 = vst [vmem:[#allocation7_spill] sm:$0xff] %v8345_v35  ;;  %v8350_v32 = vadd.f32 %v2662_v47, %v1977_v20  ;;  %v8352_v5 = vpop.f32.mrf.mxu0 }
 0x1a6   : > { %v3017_v45 = vpop.f32.mrf.mxu1 }
 0x1a7   : > { %8880 = vst [vmem:[#allocation10_spill] sm:$0xff] %v8350_v32  ;;  %v8354_v28 = vpop.f32.mrf.mxu0 }
 0x1a8   : > { %v5766_v43 = vpop.f32.mrf.mxu1 }
 0x1a9   : > { %v8356_v37 = vpop.f32.mrf.mxu0 }
 0x1aa   : > { %v8358_v61 = vpop.f32.mrf.mxu1 }
 0x1ab   : > { %v8360_v21 = vpop.f32.mrf.mxu0 }
 0x1ac   : > { %v8362_v63 = vpop.f32.mrf.mxu1 }
 0x1ad   : > { %v8364_v40 = vpop.f32.mrf.mxu0 }
 0x1ae   : > { %v8366_v54 = vpop.f32.mrf.mxu1 }
 0x1af   : > { %v8368_v10 = vpop.f32.mrf.mxu0 }
 0x1b0   : > { %v8370_v25 = vpop.f32.mrf.mxu1 }
 0x1b1   : > { %v8372_v46 = vpop.f32.mrf.mxu0 }
 0x1b2   : > { %v8374_v4 = vpop.f32.mrf.mxu1 }
 0x1b3   : > { %v8376_v50 = vpop.f32.mrf.mxu0 }
 0x1b4   : > { %v8378_v7 = vpop.f32.mrf.mxu1 }
 0x1b5   : > { %v8380_v1 = vpop.f32.mrf.mxu0 }
 0x1b6   : > { %v8382_v17 = vpop.f32.mrf.mxu1 }
 0x1b7   : > { %v8384_v51 = vpop.f32.mrf.mxu0 }
 0x1b8   : > { %v8386_v23 = vpop.f32.mrf.mxu1 }
 0x1b9   : > { %v8388_v19 = vpop.f32.mrf.mxu0 }
 0x1ba   : > { %v8390_v33 = vpop.f32.mrf.mxu1 }
 0x1bb   : > { %v8392_v57 = vpop.f32.mrf.mxu0 }
 0x1bc   : > { %v8394_v41 = vpop.f32.mrf.mxu1 }
 0x1bd   : > { %v8396_v47 = vpop.f32.mrf.mxu0 }
 0x1be   : > { %v8398_v52 = vpop.f32.mrf.mxu1 }
 0x1bf   : > { %v8400_v49 = vpop.f32.mrf.mxu0 }
 0x1c0   : > { %v8402_v14 = vpop.f32.mrf.mxu1 }
 0x1c1   : > { %v8404_v20 = vpop.f32.mrf.mxu0 }
 0x1c2   : > { %v8406_v32 = vpop.f32.mrf.mxu1 }
 0x1c3   : > { %v8408_v35 = vpop.f32.mrf.mxu0 }
 0x1c4   : > { %8881 = vst [vmem:[#allocation13_spill] sm:$0xff] %v8408_v35  ;;  %v8410_v44 = vpop.f32.mrf.mxu1 }
 0x1c5   : > { %v8412_v42 = vpop.f32.mrf.mxu0 }
 0x1c6   : > { %8882 = vst [vmem:[#allocation15_spill] sm:$0xff] %v8412_v42  ;;  %v8414_v3 = vpop.f32.mrf.mxu1 }
 0x1c7   : > { %v8416_v30 = vpop.f32.mrf.mxu0 }
 0x1c8   : > { %8883 = vst [vmem:[#allocation17_spill] sm:$0xff] %v8416_v30  ;;  %v8418_v15 = vpop.f32.mrf.mxu1 }
 0x1c9   : > { %8884 = vst [vmem:[#allocation20_spill] sm:$0xff] %v8418_v15  ;;  %v8420_v22 = vpop.f32.mrf.mxu0 }
 0x1ca   : > { %8885 = vst [vmem:[#allocation22_spill] sm:$0xff] %v8420_v22  ;;  %v8422_v24 = vpop.f32.mrf.mxu1 }
 0x1cb   : > { %8886 = vst [vmem:[#allocation24_spill] sm:$0xff] %v8422_v24  ;;  %v8424_v56 = vpop.f32.mrf.mxu0 }
 0x1cc   : > { %8887 = vst [vmem:[#allocation11_spill] sm:$0xff] %v8424_v56  ;;  %v8426_v55 = vpop.f32.mrf.mxu1 }
 0x1cd   : > { %8888 = vst [vmem:[#allocation8_spill] sm:$0xff] %v8426_v55  ;;  %v8428_v58 = vpop.f32.mrf.mxu0 }
 0x1ce   : > { %8889 = vst [vmem:[#allocation16_spill] sm:$0xff] %v8428_v58  ;;  %v8430_v59 = vpop.f32.mrf.mxu1 }
 0x1cf   : > { %8890 = vst [vmem:[#allocation12_spill] sm:$0xff] %v8430_v59  ;;  %v8432_v35 = vpop.f32.mrf.mxu0 }
 0x1d0   : > { %8891 = vst [vmem:[#allocation26_spill] sm:$0xff] %v8432_v35  ;;  %v8434_v42 = vpop.f32.mrf.mxu1 }
 0x1d1   : > { %8892 = vst [vmem:[#allocation27_spill] sm:$0xff] %v8434_v42  ;;  %v8436_v34 = vpop.f32.mrf.mxu0 }
 0x1d2   : > { %8893 = vst [vmem:[#allocation28_spill] sm:$0xff] %v8436_v34  ;;  %v8438_v30 = vpop.f32.mrf.mxu1 }
 0x1d3   : > { %8894 = vst [vmem:[#allocation29_spill] sm:$0xff] %v8438_v30  ;;  %v8440_v15 = vpop.f32.mrf.mxu0 }
 0x1d4   : > { %8895 = vst [vmem:[#allocation30_spill] sm:$0xff] %v8440_v15  ;;  %v8442_v22 = vpop.f32.mrf.mxu1 }
 0x1d5   : > { %8896 = vst [vmem:[#allocation31_spill] sm:$0xff] %v8442_v22  ;;  %v8444_v24 = vpop.f32.mrf.mxu0 }
 0x1d6   : > { %8897 = vst [vmem:[#allocation32_spill] sm:$0xff] %v8444_v24  ;;  %v8446_v56 = vpop.f32.mrf.mxu1  ;;  %v3146_v24 = vadd.f32 %v5765_v36, %v8253_v62  ;;  %v3145_v62 = vadd.f32 %v8358_v61, %v8262_v60  ;;  %v3148_v60 = vadd.f32 %v8366_v54, %v8268_v31 }
 0x1d7   : > { %8898 = vst [vmem:[#allocation33_spill] sm:$0xff] %v8446_v56  ;;  %v8448_v55 = vpop.f32.mrf.mxu0 }
 0x1d8   : > { %8899 = vst [vmem:[#allocation34_spill] sm:$0xff] %v8448_v55  ;;  %v8450_v58 = vpop.f32.mrf.mxu1  ;;  %v3144_v55 = vadd.f32 %v3017_v45, %v8256_v0  ;;  %v8482_v0 = vld [vmem:[%s8675_s2] ss:$0 sm:$0xff] }
 0x1d9   : > { %8900 = vst [vmem:[#allocation35_spill] sm:$0xff] %v8450_v58  ;;  %v8452_v59 = vpop.f32.mrf.mxu0 }
 0x1da   : > { %8901 = vst [vmem:[#allocation36_spill] sm:$0xff] %v8452_v59  ;;  %v8454_v35 = vpop.f32.mrf.mxu1 }
 0x1db   : > { %8902 = vst [vmem:[#allocation37_spill] sm:$0xff] %v8454_v35  ;;  %v8456_v42 = vpop.f32.mrf.mxu0 }
 0x1dc   : > { %8903 = vst [vmem:[#allocation38_spill] sm:$0xff] %v8456_v42  ;;  %v8458_v34 = vpop.f32.mrf.mxu1  ;;  %v3505_v42 = vadd.f32 %v8343_v6, %v3146_v24 }
 0x1dd   : > { %8904 = vst [vmem:[#allocation39_spill] sm:$0xff] %v8458_v34  ;;  %v8460_v30 = vpop.f32.mrf.mxu0  ;;  %v3147_v34 = vadd.f32 %v5766_v43, %v8259_v26 }
 0x1de   : > { %8905 = vst [vmem:[#allocation40_spill] sm:$0xff] %v8460_v30  ;;  %v8462_v15 = vpop.f32.mrf.mxu1 }
 0x1df   : > { %8906 = vst [vmem:[#allocation41_spill] sm:$0xff] %v8462_v15  ;;  %v8465_v22 = vpop.f32.mrf.mxu0  ;;  %v3503_v15 = vadd.f32 %v8348_v39, %v3144_v55  ;;  %v3506_v26 = vadd.f32 %v8352_v5, %v3147_v34  ;;  %v3151_v34 = vadd.f32 %v8370_v25, %v8271_v38  ;;  %v3149_v38 = vadd.f32 %v8374_v4, %v8274_v2 }
 0x1e0   : > { %8907 = vst [vmem:[#allocation42_spill] sm:$0xff] %v8465_v22  ;;  %v8467_v56 = vpop.f32.mrf.mxu1 }
 0x1e1   : > { %8908 = vst [vmem:[#allocation43_spill] sm:$0xff] %v8467_v56  ;;  %v5867_v59 = vpop.f32.mrf.mxu0  ;;  %v3150_v56 = vadd.f32 %v8362_v63, %v8265_v48 }
 0x1e2   : > { %v8470_v58 = vpop.f32.mrf.mxu1 }
 0x1e3   : > { %v4572_v35 = vpop.f32.mrf.mxu0  ;;  %v3509_v63 = vadd.f32 %v8356_v37, %v3150_v56  ;;  %v3507_v56 = vadd.f32 %v8360_v21, %v3148_v60 }
 0x1e4   : > { %v5833_v30 = vpop.f32.mrf.mxu1 }
 0x1e5   : > { %v4231_v36 = vadd.f32 %v5833_v30, %v3505_v42  ;;  %v5868_v22 = vpop.f32.mrf.mxu0  ;;  %v3504_v42 = vadd.f32 %v8354_v28, %v3145_v62 }
 0x1e6   : > { %v4102_v24 = vpop.f32.mrf.mxu1 }
 0x1e7   : > { %v4701_v6 = vadd.f32 %v5867_v59, %v4231_v36  ;;  %v4229_v45 = vadd.f32 %v4102_v24, %v3503_v15  ;;  %v4575_v55 = vpop.f32.mrf.mxu0 }
 0x1e8   : > { %v5834_v30 = vpop.f32.mrf.mxu1 }
 0x1e9   : > { %v4740_v48 = vadd.f32 %v8482_v0, %v4701_v6  ;;  %v4699_v39 = vadd.f32 %v4572_v35, %v4229_v45  ;;  %v4232_v43 = vadd.f32 %v5834_v30, %v3506_v26  ;;  %v5871_v61 = vpop.f32.mrf.mxu0  ;;  %v3510_v26 = vadd.f32 %v8364_v40, %v3151_v34 }
 0x1ea   : > { %v4105_v31 = vpop.f32.mrf.mxu1  ;;  %v3508_v30 = vadd.f32 %v8368_v10, %v3149_v38  ;;  %v3158_v38 = vadd.f32 %v8394_v41, %v8289_v53 }
 0x1eb   : > { %v4772_v59 = vmax.f32 %v4740_v48, 0.0  ;;  %v4738_v15 = vadd.f32 %v8482_v0, %v4699_v39  ;;  %v4702_v35 = vadd.f32 %v5868_v22, %v4232_v43  ;;  %v4230_v5 = vadd.f32 %v4105_v31, %v3504_v42  ;;  %v4588_v28 = vpop.f32.mrf.mxu0 }
 0x1ec   : > { %v5837_v37 = vpop.f32.mrf.mxu1  ;;  %v3154_v22 = vadd.f32 %v8378_v7, %v8277_v27 }
 0x1ed   : > { %4805 = vst.msk [vmem:[%s8496_s15 + $0x10] sm:$0xff] %vm4802_vm8, %v4772_v59  ;;  %v4770_v54 = vmax.f32 %v4738_v15, 0.0  ;;  %v4741_v25 = vadd.f32 %v8482_v0, %v4702_v35  ;;  %v4700_v62 = vadd.f32 %v4575_v55, %v4230_v5  ;;  %v4235_v36 = vadd.f32 %v5837_v37, %v3509_v63  ;;  %v5872_v24 = vpop.f32.mrf.mxu0 }
 0x1ee   : > { %v4118_v6 = vpop.f32.mrf.mxu1  ;;  %v3152_v55 = vadd.f32 %v8382_v17, %v8280_v18  ;;  %v3513_v43 = vadd.f32 %v8372_v46, %v3154_v22  ;;  %v3153_v15 = vadd.f32 %v8390_v33, %v8286_v8 }
 0x1ef   : > { %4803 = vst.msk [vmem:[%s8496_s15] sm:$0xff] %vm4802_vm8, %v4770_v54  ;;  %v4773_v21 = vmax.f32 %v4741_v25, 0.0  ;;  %v4739_v2 = vadd.f32 %v8482_v0, %v4700_v62  ;;  %v4705_v4 = vadd.f32 %v5871_v61, %v4235_v36  ;;  %v4233_v45 = vadd.f32 %v4118_v6, %v3507_v56  ;;  %v4591_v60 = vpop.f32.mrf.mxu0 }
 0x1f0   : > { %v5838_v42 = vpop.f32.mrf.mxu1  ;;  %v3155_v61 = vadd.f32 %v8386_v23, %v8283_v13  ;;  %v3511_v59 = vadd.f32 %v8376_v50, %v3152_v55  ;;  %v3512_v62 = vadd.f32 %v8384_v51, %v3153_v15  ;;  %v3156_v36 = vadd.f32 %v8398_v52, %v8292_v12 }
 0x1f1   : > { %4806 = vst.msk [vmem:[%s8496_s15 + $0x18] sm:$0xff] %vm4802_vm8, %v4773_v21  ;;  %v4771_v40 = vmax.f32 %v4739_v2, 0.0  ;;  %v4744_v27 = vadd.f32 %v8482_v0, %v4705_v4  ;;  %v4703_v7 = vadd.f32 %v4588_v28, %v4233_v45  ;;  %v4236_v48 = vadd.f32 %v5838_v42, %v3510_v26  ;;  %v5875_v39 = vpop.f32.mrf.mxu0 }
 0x1f2   : > { %v4121_v63 = vpop.f32.mrf.mxu1  ;;  %v3514_v56 = vadd.f32 %v8380_v1, %v3155_v61  ;;  %v3517_v6 = vadd.f32 %v8388_v19, %v3158_v38  ;;  %v3159_v21 = vadd.f32 %v8402_v14, %v8295_v16 }
 0x1f3   : > { %4804 = vst.msk [vmem:[%s8496_s15 + $0x8] sm:$0xff] %vm4802_vm8, %v4771_v40  ;;  %v4776_v10 = vmax.f32 %v4744_v27, 0.0  ;;  %v4742_v18 = vadd.f32 %v8482_v0, %v4703_v7  ;;  %v4706_v17 = vadd.f32 %v5872_v24, %v4236_v48  ;;  %v4234_v34 = vadd.f32 %v4121_v63, %v3508_v30  ;;  %v4604_v31 = vpop.f32.mrf.mxu0 }
 0x1f4   : > { %v5841_v35 = vpop.f32.mrf.mxu1  ;;  %v3157_v30 = vadd.f32 %v8406_v32, %v8298_v11  ;;  %v3518_v27 = vadd.f32 %v8396_v47, %v3159_v21  ;;  %v3162_v7 = vadd.f32 %v8410_v44, %v8301_v29  ;;  %v3160_v63 = vadd.f32 %v8414_v3, %v8304_v9 }
 0x1f5   : > { %4809 = vst.msk [vmem:[%s8496_s15 + $0x30] sm:$0xff] %vm4802_vm8, %v4776_v10  ;;  %v4774_v46 = vmax.f32 %v4742_v18, 0.0  ;;  %v4745_v13 = vadd.f32 %v8482_v0, %v4706_v17  ;;  %v4704_v23 = vadd.f32 %v4591_v60, %v4234_v34  ;;  %v4239_v5 = vadd.f32 %v5841_v35, %v3513_v43  ;;  %v5876_v28 = vpop.f32.mrf.mxu0 }
 0x1f6   : > { %v4134_v37 = vpop.f32.mrf.mxu1  ;;  %v3515_v60 = vadd.f32 %v8392_v57, %v3156_v36  ;;  %v3516_v61 = vadd.f32 %v8400_v49, %v3157_v30  ;;  %v3521_v34 = vadd.f32 %v8404_v20, %v3162_v7  ;;  %v8915_v36 = vld [vmem:[#allocation19_spill] sm:$0xff] }
 0x1f7   : > { %4807 = vst.msk [vmem:[%s8496_s15 + $0x20] sm:$0xff] %vm4802_vm8, %v4774_v46  ;;  %v4777_v50 = vmax.f32 %v4745_v13, 0.0  ;;  %v4743_v8 = vadd.f32 %v8482_v0, %v4704_v23  ;;  %v4709_v33 = vadd.f32 %v5875_v39, %v4239_v5  ;;  %v4237_v54 = vadd.f32 %v4134_v37, %v3511_v59  ;;  %v4607_v25 = vpop.f32.mrf.mxu0  ;;  %v8910_v59 = vld [vmem:[#allocation20_spill] sm:$0xff]  ;;  %v8911_v23 = vld [vmem:[#allocation13_spill] sm:$0xff] }
 0x1f8   : > { %v5842_v24 = vpop.f32.mrf.mxu1  ;;  %v3519_v5 = vadd.f32 %v8911_v23, %v3160_v63 }
 0x1f9   : > { %4810 = vst.msk [vmem:[%s8496_s15 + $0x38] sm:$0xff] %vm4802_vm8, %v4777_v50  ;;  %v4775_v1 = vmax.f32 %v4743_v8, 0.0  ;;  %v4748_v53 = vadd.f32 %v8482_v0, %v4709_v33  ;;  %v4707_v41 = vadd.f32 %v4604_v31, %v4237_v54  ;;  %v4240_v26 = vadd.f32 %v5842_v24, %v3514_v56  ;;  %v5879_v22 = vpop.f32.mrf.mxu0  ;;  %v8909_v31 = vld [vmem:[#allocation2_spill] sm:$0xff]  ;;  %v8913_v56 = vld [vmem:[#allocation24_spill] sm:$0xff] }
 0x1fa   : > { %v4137_v2 = vpop.f32.mrf.mxu1  ;;  %v3163_v15 = vadd.f32 %v8910_v59, %v8909_v31  ;;  %v8916_v24 = vld [vmem:[#allocation8_spill] sm:$0xff] }
 0x1fb   : > { %4808 = vst.msk [vmem:[%s8496_s15 + $0x28] sm:$0xff] %vm4802_vm8, %v4775_v1  ;;  %v4780_v51 = vmax.f32 %v4748_v53, 0.0  ;;  %v4746_v12 = vadd.f32 %v8482_v0, %v4707_v41  ;;  %v4710_v52 = vadd.f32 %v5876_v28, %v4240_v26  ;;  %v4238_v4 = vadd.f32 %v4137_v2, %v3512_v62  ;;  %v4620_v45 = vpop.f32.mrf.mxu0  ;;  %v8912_v28 = vld [vmem:[#allocation14_spill] sm:$0xff]  ;;  %v8917_v2 = vld [vmem:[#allocation17_spill] sm:$0xff] }
 0x1fc   : > { %v5845_v55 = vpop.f32.mrf.mxu1  ;;  %v3161_v38 = vadd.f32 %v8913_v56, %v8912_v28  ;;  %v3166_v1 = vadd.f32 %v8916_v24, %v8915_v36 }
 0x1fd   : > { %4813 = vst.msk [vmem:[%s8496_s15 + $0x50] sm:$0xff] %vm4802_vm8, %v4780_v51  ;;  %v4778_v19 = vmax.f32 %v4746_v12, 0.0  ;;  %v4749_v16 = vadd.f32 %v8482_v0, %v4710_v52  ;;  %v4708_v14 = vadd.f32 %v4607_v25, %v4238_v4  ;;  %v4243_v42 = vadd.f32 %v5845_v55, %v3517_v6  ;;  %v5880_v40 = vpop.f32.mrf.mxu0  ;;  %v8914_v25 = vld [vmem:[#allocation15_spill] sm:$0xff]  ;;  %v8918_v12 = vld [vmem:[#allocation9_spill] sm:$0xff]  ;;  %v8919_v52 = vld [vmem:[#allocation12_spill] sm:$0xff] }
 0x1fe   : > { %v4150_v48 = vpop.f32.mrf.mxu1  ;;  %v3522_v62 = vadd.f32 %v8914_v25, %v3163_v15  ;;  %v3520_v51 = vadd.f32 %v8917_v2, %v3161_v38  ;;  %v3164_v4 = vadd.f32 %v8919_v52, %v8918_v12  ;;  %v8926_v15 = vld [vmem:[#allocation16_spill] sm:$0xff]  ;;  %v8929_v38 = vld [vmem:[#allocation26_spill] sm:$0xff] }
 0x1ff   : > { %4811 = vst.msk [vmem:[%s8496_s15 + $0x40] sm:$0xff] %vm4802_vm8, %v4778_v19  ;;  %v4781_v57 = vmax.f32 %v4749_v16, 0.0  ;;  %v4747_v11 = vadd.f32 %v8482_v0, %v4708_v14  ;;  %v4713_v32 = vadd.f32 %v5879_v22, %v4243_v42  ;;  %v4241_v39 = vadd.f32 %v4150_v48, %v3515_v60  ;;  %v4623_v43 = vpop.f32.mrf.mxu0  ;;  %v8920_v14 = vld [vmem:[#allocation22_spill] sm:$0xff] }
 0x200   : > { %v5846_v10 = vpop.f32.mrf.mxu1  ;;  %v3525_v42 = vadd.f32 %v8920_v14, %v3166_v1  ;;  %v8932_v1 = vld [vmem:[#allocation28_spill] sm:$0xff] }
 0x201   : > { %4814 = vst.msk [vmem:[%s8496_s15 + $0x58] sm:$0xff] %vm4802_vm8, %v4781_v57  ;;  %v4779_v47 = vmax.f32 %v4747_v11, 0.0  ;;  %v4752_v29 = vadd.f32 %v8482_v0, %v4713_v32  ;;  %v4711_v44 = vadd.f32 %v4620_v45, %v4241_v39  ;;  %v4244_v18 = vadd.f32 %v5846_v10, %v3518_v27  ;;  %v5883_v17 = vpop.f32.mrf.mxu0  ;;  %v8922_v27 = vld [vmem:[#allocation27_spill] sm:$0xff]  ;;  %v8924_v10 = vld [vmem:[#allocation21_spill] sm:$0xff] }
 0x202   : > { %v4153_v35 = vpop.f32.mrf.mxu1 }
 0x203   : > { %4812 = vst.msk [vmem:[%s8496_s15 + $0x48] sm:$0xff] %vm4802_vm8, %v4779_v47  ;;  %v4784_v49 = vmax.f32 %v4752_v29, 0.0  ;;  %v4750_v9 = vadd.f32 %v8482_v0, %v4711_v44  ;;  %v4714_v3 = vadd.f32 %v5880_v40, %v4244_v18  ;;  %v4242_v46 = vadd.f32 %v4153_v35, %v3516_v61  ;;  %v4636_v13 = vpop.f32.mrf.mxu0  ;;  %v8921_v40 = vld [vmem:[#allocation18_spill] sm:$0xff]  ;;  %v8923_v61 = vld [vmem:[#allocation11_spill] sm:$0xff]  ;;  %v8925_v47 = vld [vmem:[#allocation29_spill] sm:$0xff] }
 0x204   : > { %v5849_v37 = vpop.f32.mrf.mxu1  ;;  %v3167_v7 = vadd.f32 %v8922_v27, %v8921_v40  ;;  %v3523_v63 = vadd.f32 %v8923_v61, %v3164_v4  ;;  %v3165_v29 = vadd.f32 %v8925_v47, %v8924_v10  ;;  %v8935_v4 = vld [vmem:[#allocation30_spill] sm:$0xff] }
 0x205   : > { %4817 = vst.msk [vmem:[%s8496_s15 + $0x70] sm:$0xff] %vm4802_vm8, %v4784_v49  ;;  %v4782_v20 = vmax.f32 %v4750_v9, 0.0  ;;  %v4753_v50 = vadd.f32 %v8482_v0, %v4714_v3  ;;  %v4712_v8 = vadd.f32 %v4623_v43, %v4242_v46  ;;  %v4247_v33 = vadd.f32 %v5849_v37, %v3521_v34  ;;  %v5884_v54 = vpop.f32.mrf.mxu0  ;;  %v8927_v49 = vld [vmem:[#allocation23_spill] sm:$0xff] }
 0x206   : > { %v4166_v53 = vpop.f32.mrf.mxu1  ;;  %v3526_v35 = vadd.f32 %v8926_v15, %v3167_v7  ;;  %v8928_v9 = vld [vmem:[#allocation31_spill] sm:$0xff]  ;;  %v3524_v37 = vadd.f32 %v8929_v38, %v3165_v29  ;;  %v8938_v7 = vld [vmem:[#allocation32_spill] sm:$0xff]  ;;  %v8941_v29 = vld [vmem:[#allocation34_spill] sm:$0xff] }
 0x207   : > { %4815 = vst.msk [vmem:[%s8496_s15 + $0x60] sm:$0xff] %vm4802_vm8, %v4782_v20  ;;  %v4785_v41 = vmax.f32 %v4753_v50, 0.0  ;;  %v4751_v26 = vadd.f32 %v8482_v0, %v4712_v8  ;;  %v4717_v22 = vadd.f32 %v5883_v17, %v4247_v33  ;;  %v4245_v6 = vadd.f32 %v4166_v53, %v3519_v5  ;;  %v4639_v21 = vpop.f32.mrf.mxu0  ;;  %v8930_v20 = vld [vmem:[#allocation25_spill] sm:$0xff] }
 0x208   : > { %v5850_v45 = vpop.f32.mrf.mxu1  ;;  %v3170_v3 = vadd.f32 %v8928_v9, %v8927_v49  ;;  %v8931_v50 = vld [vmem:[#allocation33_spill] sm:$0xff] }
 0x209   : > { %4818 = vst.msk [vmem:[%s8496_s15 + $0x78] sm:$0xff] %vm4802_vm8, %v4785_v41  ;;  %v4783_v60 = vmax.f32 %v4751_v26, 0.0  ;;  %v4756_v30 = vadd.f32 %v8482_v0, %v4717_v22  ;;  %v4715_v55 = vadd.f32 %v4636_v13, %v4245_v6  ;;  %v4248_v19 = vadd.f32 %v5850_v45, %v3522_v62  ;;  %v8933_v41 = vld [vmem:[#allocation4_spill] sm:$0xff]  ;;  %v8934_v26 = vld [vmem:[#allocation35_spill] sm:$0xff] }
 0x20a   : > { %v5887_v16 = vpop.f32.mrf.mxu0  ;;  %v4169_v48 = vpop.f32.mrf.mxu1  ;;  %v3168_v8 = vadd.f32 %v8931_v50, %v8930_v20  ;;  %v3529_v53 = vadd.f32 %v8932_v1, %v3170_v3  ;;  %v3171_v22 = vadd.f32 %v8934_v26, %v8933_v41  ;;  %v8944_v3 = vld [vmem:[#allocation36_spill] sm:$0xff]  ;;  %v8947_v50 = vld [vmem:[#allocation38_spill] sm:$0xff] }
 0x20b   : > { %4816 = vst.msk [vmem:[%s8496_s15 + $0x68] sm:$0xff] %vm4802_vm8, %v4783_v60  ;;  %v4788_v57 = vmax.f32 %v4756_v30, 0.0  ;;  %v4754_v11 = vadd.f32 %v8482_v0, %v4715_v55  ;;  %v4718_v32 = vadd.f32 %v5884_v54, %v4248_v19  ;;  %v4246_v39 = vadd.f32 %v4169_v48, %v3520_v51  ;;  %v8936_v60 = vld [vmem:[#allocation3_spill] sm:$0xff]  ;;  %v8937_v30 = vld [vmem:[#allocation37_spill] sm:$0xff]  ;;  %v8949_v41 = vld [vmem:[#allocation40_spill] sm:$0xff] }
 0x20c   : > { %v4652_v43 = vpop.f32.mrf.mxu0  ;;  %v5853_v44 = vpop.f32.mrf.mxu1  ;;  %v3527_v45 = vadd.f32 %v8935_v4, %v3168_v8  ;;  %v3169_v55 = vadd.f32 %v8937_v30, %v8936_v60  ;;  %v3530_v48 = vadd.f32 %v8938_v7, %v3171_v22 }
 0x20d   : > { %4821 = vst.msk [vmem:[%s8496_s15 + $0x90] sm:$0xff] %vm4802_vm8, %v4788_v57  ;;  %v4786_v18 = vmax.f32 %v4754_v11, 0.0  ;;  %v4757_v17 = vadd.f32 %v8482_v0, %v4718_v32  ;;  %v4716_v34 = vadd.f32 %v4639_v21, %v4246_v39  ;;  %v4251_v31 = vadd.f32 %v5853_v44, %v3525_v42  ;;  %v8939_v57 = vld [vmem:[#allocation6_spill] sm:$0xff]  ;;  %v8940_v11 = vld [vmem:[#allocation39_spill] sm:$0xff] }
 0x20e   : > { %v5888_v59 = vpop.f32.mrf.mxu0  ;;  %v4182_v46 = vpop.f32.mrf.mxu1  ;;  %v3174_v32 = vadd.f32 %v8940_v11, %v8939_v57  ;;  %v3528_v44 = vadd.f32 %v8941_v29, %v3169_v55 }
 0x20f   : > { %4819 = vst.msk [vmem:[%s8496_s15 + $0x80] sm:$0xff] %vm4802_vm8, %v4786_v18  ;;  %v4789_v13 = vmax.f32 %v4757_v17, 0.0  ;;  %v4755_v23 = vadd.f32 %v8482_v0, %v4716_v34  ;;  %v4721_v5 = vadd.f32 %v5887_v16, %v4251_v31  ;;  %v4249_v28 = vadd.f32 %v4182_v46, %v3523_v63  ;;  %v8942_v18 = vld [vmem:[#allocation5_spill] sm:$0xff] }
 0x210   : > { %v4655_v56 = vpop.f32.mrf.mxu0  ;;  %v5854_v33 = vpop.f32.mrf.mxu1  ;;  %v8943_v17 = vld [vmem:[#allocation41_spill] sm:$0xff]  ;;  %v3533_v46 = vadd.f32 %v8944_v3, %v3174_v32 }
 0x211   : > { %4822 = vst.msk [vmem:[%s8496_s15 + $0x98] sm:$0xff] %vm4802_vm8, %v4789_v13  ;;  %v4787_v54 = vmax.f32 %v4755_v23, 0.0  ;;  %v4760_v25 = vadd.f32 %v8482_v0, %v4721_v5  ;;  %v4719_v62 = vadd.f32 %v4652_v43, %v4249_v28  ;;  %v4252_v36 = vadd.f32 %v5854_v33, %v3526_v35  ;;  %v8945_v13 = vld [vmem:[#allocation7_spill] sm:$0xff]  ;;  %v8948_v33 = vld [vmem:[#allocation10_spill] sm:$0xff] }
 0x212   : > { %v5891_v24 = vpop.f32.mrf.mxu0  ;;  %v4185_v6 = vpop.f32.mrf.mxu1  ;;  %v3172_v34 = vadd.f32 %v8943_v17, %v8942_v18  ;;  %v8946_v23 = vld [vmem:[#allocation43_spill] sm:$0xff] }
 0x213   : > { %4820 = vst.msk [vmem:[%s8496_s15 + $0x88] sm:$0xff] %vm4802_vm8, %v4787_v54  ;;  %v4792_v21 = vmax.f32 %v4760_v25, 0.0  ;;  %v4758_v2 = vadd.f32 %v8482_v0, %v4719_v62  ;;  %v4722_v51 = vadd.f32 %v5888_v59, %v4252_v36  ;;  %v4250_v12 = vadd.f32 %v4185_v6, %v3524_v37 }
 0x214   : > { %v4668_v52 = vpop.f32.mrf.mxu0  ;;  %v5857_v19 = vpop.f32.mrf.mxu1  ;;  %v3175_v5 = vadd.f32 %v8946_v23, %v8945_v13  ;;  %v3531_v8 = vadd.f32 %v8947_v50, %v3172_v34  ;;  %v3173_v54 = vadd.f32 %v8470_v58, %v8948_v33 }
 0x215   : > { %4825 = vst.msk [vmem:[%s8496_s15 + $0xb0] sm:$0xff] %vm4802_vm8, %v4792_v21  ;;  %v4790_v16 = vmax.f32 %v4758_v2, 0.0  ;;  %v4761_v14 = vadd.f32 %v8482_v0, %v4722_v51  ;;  %v4720_v42 = vadd.f32 %v4655_v56, %v4250_v12  ;;  %v4255_v40 = vadd.f32 %v5857_v19, %v3529_v53  ;;  %v8950_v51 = vld [vmem:[#allocation42_spill] sm:$0xff] }
 0x216   : > { %v5892_v27 = vpop.f32.mrf.mxu0  ;;  %v4198_v39 = vpop.f32.mrf.mxu1  ;;  %v3534_v26 = vadd.f32 %v8949_v41, %v3175_v5  ;;  %v3532_v12 = vadd.f32 %v8950_v51, %v3173_v54 }
 0x217   : > { %4823 = vst.msk [vmem:[%s8496_s15 + $0xa0] sm:$0xff] %vm4802_vm8, %v4790_v16  ;;  %v4793_v43 = vmax.f32 %v4761_v14, 0.0  ;;  %v4759_v61 = vadd.f32 %v8482_v0, %v4720_v42  ;;  %v4725_v63 = vadd.f32 %v5891_v24, %v4255_v40  ;;  %v4253_v10 = vadd.f32 %v4198_v39, %v3527_v45 }
 0x218   : > { %v4671_v47 = vpop.f32.mrf.mxu0  ;;  %v5858_v31 = vpop.f32.mrf.mxu1 }
 0x219   : > { %4826 = vst.msk [vmem:[%s8496_s15 + $0xb8] sm:$0xff] %vm4802_vm8, %v4793_v43  ;;  %v4791_v59 = vmax.f32 %v4759_v61, 0.0  ;;  %v4764_v15 = vadd.f32 %v8482_v0, %v4725_v63  ;;  %v4723_v35 = vadd.f32 %v4668_v52, %v4253_v10  ;;  %v4256_v49 = vadd.f32 %v5858_v31, %v3530_v48 }
 0x21a   : > { %v5895_v9 = vpop.f32.mrf.mxu0  ;;  %v4201_v28 = vpop.f32.mrf.mxu1 }
 0x21b   : > { %4824 = vst.msk [vmem:[%s8496_s15 + $0xa8] sm:$0xff] %vm4802_vm8, %v4791_v59  ;;  %v4796_v56 = vmax.f32 %v4764_v15, 0.0  ;;  %v4762_v38 = vadd.f32 %v8482_v0, %v4723_v35  ;;  %v4726_v37 = vadd.f32 %v5892_v27, %v4256_v49  ;;  %v4254_v20 = vadd.f32 %v4201_v28, %v3528_v44 }
 0x21c   : > { %v5861_v25 = vpop.f32.mrf.mxu1  ;;  %v4684_v62 = vpop.f32.mrf.mxu0 }
 0x21d   : > { %4829 = vst.msk [vmem:[%s8496_s15 + $0xd0] sm:$0xff] %vm4802_vm8, %v4796_v56  ;;  %v4794_v36 = vmax.f32 %v4762_v38, 0.0  ;;  %v4765_v24 = vadd.f32 %v8482_v0, %v4726_v37  ;;  %v4724_v1 = vadd.f32 %v4671_v47, %v4254_v20  ;;  %v4259_v53 = vadd.f32 %v5861_v25, %v3533_v46 }
 0x21e   : > { %v4214_v22 = vpop.f32.mrf.mxu1  ;;  %v5896_v4 = vpop.f32.mrf.mxu0 }
 0x21f   : > { %4827 = vst.msk [vmem:[%s8496_s15 + $0xc0] sm:$0xff] %vm4802_vm8, %v4794_v36  ;;  %v4797_v6 = vmax.f32 %v4765_v24, 0.0  ;;  %v4763_v21 = vadd.f32 %v8482_v0, %v4724_v1  ;;  %v4729_v58 = vadd.f32 %v5895_v9, %v4259_v53  ;;  %v4257_v2 = vadd.f32 %v4214_v22, %v3531_v8 }
 0x220   : > { %v5862_v52 = vpop.f32.mrf.mxu1  ;;  %v4687_v27 = vpop.f32.mrf.mxu0 }
 0x221   : > { %4830 = vst.msk [vmem:[%s8496_s15 + $0xd8] sm:$0xff] %vm4802_vm8, %v4797_v6  ;;  %v4795_v45 = vmax.f32 %v4763_v21, 0.0  ;;  %v4768_v60 = vadd.f32 %v8482_v0, %v4729_v58  ;;  %v4727_v30 = vadd.f32 %v4684_v62, %v4257_v2  ;;  %v4260_v55 = vadd.f32 %v5862_v52, %v3534_v26 }
 0x222   : > { %v4217_v19 = vpop.f32.mrf.mxu1 }
 0x223   : > { %4828 = vst.msk [vmem:[%s8496_s15 + $0xc8] sm:$0xff] %vm4802_vm8, %v4795_v45  ;;  %v4800_v16 = vmax.f32 %v4768_v60, 0.0  ;;  %v4766_v14 = vadd.f32 %v8482_v0, %v4727_v30  ;;  %v4730_v42 = vadd.f32 %v5896_v4, %v4260_v55  ;;  %v4258_v40 = vadd.f32 %v4217_v19, %v3532_v12 }
 0x225   : > { %4833 = vst.msk [vmem:[%s8496_s15 + $0xf0] sm:$0xff] %vm4802_vm8, %v4800_v16  ;;  %v4798_v7 = vmax.f32 %v4766_v14, 0.0  ;;  %v4769_v48 = vadd.f32 %v8482_v0, %v4730_v42  ;;  %v4728_v57 = vadd.f32 %v4687_v27, %v4258_v40 }
 0x227   : > { %4831 = vst.msk [vmem:[%s8496_s15 + $0xe0] sm:$0xff] %vm4802_vm8, %v4798_v7  ;;  %v4801_v11 = vmax.f32 %v4769_v48, 0.0  ;;  %v4767_v32 = vadd.f32 %v8482_v0, %v4728_v57 }
 0x229   : > { %4834 = vst.msk [vmem:[%s8496_s15 + $0xf8] sm:$0xff] %vm4802_vm8, %v4801_v11  ;;  %v4799_v39 = vmax.f32 %v4767_v32, 0.0 }
 0x22b   : > { %4832 = vst.msk [vmem:[%s8496_s15 + $0xe8] sm:$0xff] %vm4802_vm8, %v4799_v39 }
 0x22c PF: > { %s13_s12 = sadd.s32 1, %s5974_s12  }
 0x22d   : > { %p10_p4 = scmp.ge.s32.totalorder %s13_s12, 4  }
 0x22f   :  { %12 = sbr.rel (!%p10_p4) target bundleno = 1 (0x1), region = 72 }

</bundles_post_ra>
